<compile_context>
chip_gen: v7x
topology: tpu7x:2x2x1
jax: 0.10.0
libtpu: 0.0.40
codegen_flags: <defaults>
</compile_context>

<pallas_src>
import numpy as np
import jax
import jax.numpy as jnp
from jax.experimental import pallas as pl
from jax.experimental.pallas import tpu as pltpu

# fc1 constants (K pre-padded once at init; zero rows/cols keep the dot unchanged).
FC1_IN = 15202
FC1_KPAD = 15232                   # round_up(15202, 128) = 119 * 128
FC1_TN = 128                       # N split: 256 -> 2 parallel blocks (v7x megacore)


# ---------------------------------------------------------------------------
# Pallas kernel: o = relu(x @ w + b).  Single full-K dot per grid step; grid is only
# over N (2 lane-dense blocks of 128), marked "parallel" for megacore sharding.
# ---------------------------------------------------------------------------
def _linear_relu_kernel(x_ref, w_ref, b_ref, o_ref):
    acc = jnp.dot(x_ref[...], w_ref[...], preferred_element_type=jnp.float32)
    o_ref[...] = jnp.maximum(acc + b_ref[...], 0.0)


def linear_relu_pallas(x, w, b, *, tn):
    """x: (M, K) bf16, w: (K, N) bf16 (K pre-padded), b: (N,) f32 -> (M, N) f32."""
    M, K = x.shape
    Kw, N = w.shape
    assert K == Kw and N % tn == 0
    b2 = b.reshape(1, N).astype(jnp.float32)

    return pl.pallas_call(
        _linear_relu_kernel,
        out_shape=jax.ShapeDtypeStruct((M, N), jnp.float32),
        grid_spec=pltpu.PrefetchScalarGridSpec(
            num_scalar_prefetch=0,
            grid=(N // tn,),
            in_specs=[
                pl.BlockSpec((M, K), lambda n: (0, 0)),     # whole activation (tiny)
                pl.BlockSpec((K, tn), lambda n: (0, n)),     # half the weight per step
                pl.BlockSpec((1, tn), lambda n: (0, n)),     # bias slice
            ],
            out_specs=pl.BlockSpec((M, tn), lambda n: (0, n)),
        ),
        compiler_params=pltpu.CompilerParams(
            dimension_semantics=("parallel",)),
        cost_estimate=pl.CostEstimate(
            flops=2 * M * K * N,
            transcendentals=0,
            bytes_accessed=(M * K * x.dtype.itemsize
                            + K * N * w.dtype.itemsize
                            + M * N * 4)),
    )(x, w, b2)


# ---------------------------------------------------------------------------
# Tiny conv layers in plain XLA (Pallas launch/glue would dominate the <0.5 MFLOP of work).
# ---------------------------------------------------------------------------
def _conv3d_relu(x, w, b, stride):
    y = jax.lax.conv_general_dilated(
        x, w, window_strides=(stride,) * 3, padding="VALID",
        dimension_numbers=("NCDHW", "OIDHW", "NCDHW"))
    return jax.nn.relu(y + b[None, :, None, None, None])


# ---------------------------------------------------------------------------
# MultiAgentCNNCritic forward
# ---------------------------------------------------------------------------
def multi_agent_cnn_critic_forward(params, state, action):
    x = _conv3d_relu(state, params["conv1_w"], params["conv1_b"], 4)
    x = _conv3d_relu(x, params["conv2_w"], params["conv2_b"], 2)
    B = x.shape[0]
    x = x.reshape(B, -1)                                   # x.view(B, -1): NCDHW C-order flatten
    # concat action and zero-pad the feature axis up to the pre-padded fc1 K in one shot;
    # cast the tiny activation to bf16 here (the weight is never re-padded / re-cast).
    pad = jnp.zeros((B, FC1_KPAD - FC1_IN), x.dtype)
    x = jnp.concatenate([x, action, pad], axis=1).astype(jnp.bfloat16)   # (B, 15232)
    h = linear_relu_pallas(x, params["fc1_w"], params["fc1_b"], tn=FC1_TN)
    # fc2 (B x 256 x 2, ~2 KFLOP): plain jnp; a separate pallas_call costs more than the math.
    return h @ params["fc2_w"] + params["fc2_b"]


def init_params(key):
    ks = jax.random.split(key, 8)

    def uni(k, shape, fan_in):
        bound = 1.0 / np.sqrt(fan_in)
        return jax.random.uniform(k, shape, jnp.float32, -bound, bound)

    # fc1 weight: bf16 storage (halves the dominant HBM stream), pre-padded with zero rows
    # so the dot is unchanged and no per-call jnp.pad copy is needed.
    fc1_w = uni(ks[4], (FC1_IN, 256), FC1_IN).astype(jnp.bfloat16)
    fc1_w = jnp.pad(fc1_w, ((0, FC1_KPAD - FC1_IN), (0, 0)))

    return {
        "conv1_w": uni(ks[0], (16, 4, 2, 3, 3), 4 * 2 * 3 * 3),
        "conv1_b": uni(ks[1], (16,), 4 * 2 * 3 * 3),
        "conv2_w": uni(ks[2], (32, 16, 1, 3, 3), 16 * 1 * 3 * 3),
        "conv2_b": uni(ks[3], (32,), 16 * 1 * 3 * 3),
        "fc1_w": fc1_w,                      # (15232, 256) bf16, pre-padded once
        "fc1_b": uni(ks[5], (256,), FC1_IN),
        "fc2_w": uni(ks[6], (256, 2), 256),  # stored as (in, out)
        "fc2_b": uni(ks[7], (2,), 256),
    }


# Pure-JAX reference (validates the Pallas fc1 path).
def reference_forward(params, state, action):
    x = _conv3d_relu(state, params["conv1_w"], params["conv1_b"], 4)
    x = _conv3d_relu(x, params["conv2_w"], params["conv2_b"], 2)
    x = x.reshape(x.shape[0], -1)
    x = jnp.concatenate([x, action], axis=1)
    w1 = params["fc1_w"][:FC1_IN].astype(jnp.float32)      # same (bf16-rounded) weight values
    x = jax.nn.relu(x @ w1 + params["fc1_b"])
    return x @ params["fc2_w"] + params["fc2_b"]


if __name__ == "__main__":
    key = jax.random.PRNGKey(0)
    kp, kstate, kact = jax.random.split(key, 3)
    params = init_params(kp)

    # state (B=2, C=4, D=6, H=19, W=19):
    #   conv1 (k=(2,3,3), s=4) -> (2, 16, 2, 5, 5)
    #   conv2 (k=(1,3,3), s=2) -> (2, 32, 1, 2, 2) -> 128 flattened features.
    # fc1 expects 15202 inputs, so the action tensor supplies 15202 - 128 = 15074 features.
    B = 2
    state = jax.random.normal(kstate, (B, 4, 6, 19, 19), jnp.float32)
    action = jax.random.normal(kact, (B, FC1_IN - 32 * 1 * 2 * 2), jnp.float32)

    fwd = jax.jit(multi_agent_cnn_critic_forward)
    out = jax.block_until_ready(fwd(params, state, action))
    assert out.shape == (B, 2), out.shape

    ref = reference_forward(params, state, action)
    np.testing.assert_allclose(np.asarray(out), np.asarray(ref), rtol=2e-2, atol=2e-2)

    print("KERNEL_OK")
</pallas_src>

<mosaic_0001>
module attributes {stable_mosaic.version = 11 : i64} {
  func.func @_linear_relu_kernel(%arg0: i32, %arg1: memref<2x15232xbf16, #tpu.memory_space<vmem>>, %arg2: memref<15232x128xbf16, #tpu.memory_space<vmem>>, %arg3: memref<1x128xf32, #tpu.memory_space<vmem>>, %arg4: memref<2x128xf32, #tpu.memory_space<vmem>>) attributes {dimension_semantics = [#tpu.dimension_semantics<parallel>], iteration_bounds = array<i64: 2>, scalar_prefetch = 0 : i64, scratch_operands = 0 : i64, tpu.core_type = #tpu.core_type<tc>, window_params = [{pipeline_mode = #tpu.pipeline_mode<synchronous>, transform_indices = @transform_0, window_bounds = array<i64: 2, 15232>}, {transform_indices = @transform_1, window_bounds = array<i64: 15232, 128>}, {transform_indices = @transform_2, window_bounds = array<i64: 1, 128>}, {transform_indices = @transform_3, window_bounds = array<i64: 2, 128>}]} {
    %c0 = arith.constant 0 : index
    %c0_0 = arith.constant 0 : index
    %0 = vector.load %arg1[%c0, %c0_0] : memref<2x15232xbf16, #tpu.memory_space<vmem>>, vector<2x15232xbf16>
    %c0_1 = arith.constant 0 : index
    %c0_2 = arith.constant 0 : index
    %1 = vector.load %arg2[%c0_1, %c0_2] : memref<15232x128xbf16, #tpu.memory_space<vmem>>, vector<15232x128xbf16>
    %cst = arith.constant dense<0.000000e+00> : vector<2x128xf32>
    %2 = tpu.matmul %0, %1, %cst {dimension_numbers = #tpu.dot_dimension_numbers<[1], [0], [0], [1], [0, 0, 1, 1], [], []>} : vector<2x15232xbf16>, vector<15232x128xbf16>, vector<2x128xf32> -> vector<2x128xf32>
    %c0_3 = arith.constant 0 : index
    %c0_4 = arith.constant 0 : index
    %3 = vector.load %arg3[%c0_3, %c0_4] : memref<1x128xf32, #tpu.memory_space<vmem>>, vector<1x128xf32>
    %4 = vector.broadcast %3 : vector<1x128xf32> to vector<2x128xf32>
    %5 = arith.addf %2, %4 : vector<2x128xf32>
    %cst_5 = arith.constant 0.000000e+00 : f32
    %6 = vector.broadcast %cst_5 : f32 to vector<2x128xf32>
    %7 = arith.maximumf %5, %6 : vector<2x128xf32>
    %c0_6 = arith.constant 0 : index
    %c0_7 = arith.constant 0 : index
    %8 = vector.load %arg4[%c0_6, %c0_7] : memref<2x128xf32, #tpu.memory_space<vmem>>, vector<2x128xf32>
    tpu.vector_store %arg4[%c0_6, %c0_7], %7 {strides = array<i32>} : memref<2x128xf32, #tpu.memory_space<vmem>>, vector<2x128xf32>,
    return
  }
  func.func @transform_0(%arg0: i32) -> (i32, i32) {
    %c0_i32 = arith.constant 0 : i32
    %c0_i32_0 = arith.constant 0 : i32
    %c0_i32_1 = arith.constant 0 : i32
    return %c0_i32, %c0_i32_0 : i32, i32
  }
  func.func @transform_1(%arg0: i32) -> (i32, i32) {
    %c0_i32 = arith.constant 0 : i32
    %c0_i32_0 = arith.constant 0 : i32
    return %c0_i32, %arg0 : i32, i32
  }
  func.func @transform_2(%arg0: i32) -> (i32, i32) {
    %c0_i32 = arith.constant 0 : i32
    %c0_i32_0 = arith.constant 0 : i32
    return %c0_i32, %arg0 : i32, i32
  }
  func.func @transform_3(%arg0: i32) -> (i32, i32) {
    %c0_i32 = arith.constant 0 : i32
    %c0_i32_0 = arith.constant 0 : i32
    return %c0_i32, %arg0 : i32, i32
  }
}

</mosaic_0001>

<bundles_post_ra>
// kernel: multi_agent_cnn_critic_forward.1
= control target key start
LH: loop header
LB: loop body
LE: loop exit
PB: predicated region body
PF: predicated region fallthrough
CT: control target
= control target key end

     0   :  { %8 = vsyncpa [#allocation3], 0  ;;  %s15934_s0 = inlined_call_operand.vmem [shape: bf16[2,15232], index: 0, kind: input, shape index: {}]   ;;  %s15935_s1 = inlined_call_operand.hbm [shape: bf16[15232,256], index: 1, kind: input, shape index: {}]   ;;  %s15936_s2 = inlined_call_operand.vmem [shape: f32[1,256], index: 2, kind: input, shape index: {}]   ;;  %s15937_s3 = inlined_call_operand.vmem [shape: f32[2,256], index: 3, kind: output, shape index: {}]  }
   0x1   :  { %10 = vsyncpa [#allocation3 + $0x1], 0  ;;  %s14580_s12 = smov 0   ;;  %s14582_s13 = smov 0  }
   0x2   :  { %s14584_s14 = smov 0   ;;  %s14586_s15 = smov 0  }
   0x3 LB: > { %s14599_s16 = sadd.s32 4294967295, %s14551_s15   ;;  %s14602_s17 = sadd.s32 1, %s14551_s15   ;;  %s14551_s15 = sphi %s14586_s15, %s15943_s15   ;;  %s14547_s14 = sphi %s14584_s14, %s15942_s14   ;;  %s14543_s13 = sphi %s14582_s13, %s15941_s13   ;;  %s14539_s12 = sphi %s14580_s12, %s15940_s12  }
   0x4   : > { %s41_s18 = ssub.s32 %s14551_s15, %s14602_s17  ;;  %s44_s19 = sadd.s32 1, %s14547_s14 }
   0x5   : > { %p42_p0 = scmp.eq.s32.totalorder %s41_s18, 0  ;;  %p51_p1 = scmp.ne.s32.totalorder %s14547_s14, %s14543_s13 }
   0x6   : > { %p52_p2 = scmp.eq.s32.totalorder %s14551_s15, 0  ;;  %p57_p3 = scmp.ne.s32.totalorder %s14543_s13, %s14539_s12 }
   0x7   : > { %s14612_s20 = scalar_select %p42_p0, %s14547_s14, %s44_s19  }
   0x8   : > { %p53_p4 = por %p52_p2, %p51_p1  ;;  %p58_p5 = scmp.eq.s32.totalorder %s14599_s16, 0 }
   0x9   : > { %p13481_p6 = scmp.lt.s32.totalorder %s14551_s15, 2  ;;  %s136_s22 = sand.u32 1, %s14547_s14  }
   0xa   : > { %p14616_p7 = por %p58_p5, %p57_p3  ;;  %s13473_s23 = smul.u32 7616, %s136_s22 }
   0xb   : > { %s11188_s24 = sshll.u32 %s14551_s15, 6  ;;  %p14622_p8 = pnand %p13481_p6, %p53_p4 }
   0xc   : > { %s14629_s28 = scalar_lea.hbm %s15935_s1, %s11188_s24  ;;  %s140_s29 = scalar_lea.vmem [#allocation2], %s13473_s23 }
   0xd   : > { %s146_s30 = sshll.u32 %s140_s29, 4  ;;  %s14633_s4 = scalar_lea.sflag [#allocation3], %s136_s22  ;;  %s14631_s30 = int_to_ptr.vmem [resolvable:$true] %s146_s30 }
   0xe   : > { %s14487_s5 = scalar_lea.hbm %s14629_s28, 121856  ;;  %p14489_p10 = pneg %p14622_p8 }
   0xf   : > { %p14488_p9 = scmp.ne.s32.totalorder %s14629_s28, %s14487_s5  ;;  %s14492_s8 = scalar_lea.hbm %s15935_s1, 243712 }
  0x10   : > { %p14493_p13 = scmp.lt.u32.totalorder %s14629_s28, %s15935_s1  ;;  %p14494_p0 = scmp.lt.u32.totalorder %s14492_s8, %s14487_s5 }
  0x11   : > { %p14490_p11 = pnand %p14489_p10, %p14488_p9  ;;  %p14496_p2 = scmp.lt.u32.totalorder %s14487_s5, %s14629_s28 }
  0x12   : > { %p14495_p1 = por %p14494_p0, %p14493_p13 }
  0x13   : > { %p14491_p12 = pneg %p14490_p11 }
  0x14   : > { %p14497_p3 = por %p14496_p2, %p14495_p1 }
  0x16   : > { %p14498_p4 = pnand %p14497_p3, %p14491_p12 }
  0x18   : > { %14501 = shalt.err (!%p14498_p4)
}
  0x19   : > { %s14502_s11 = scalar_lea.vmem %s14631_s30, 121856  ;;  %s14553_s12 = smov [#allocation2]  }
  0x1a   : > { %p14503_p5 = scmp.ne.s32.totalorder %s14631_s30, %s14502_s11  ;;  %s14507_s18 = sshll.u32 %s14553_s12, 4  ;;  %s14508_s18 = int_to_ptr.vmem [resolvable:$false] %s14507_s18 }
  0x1b   : > { %s14509_s19 = scalar_lea.vmem %s14508_s18, 243712  ;;  %p14510_p11 = scmp.lt.s32.totalorder %s14631_s30, %s14508_s18 }
  0x1c   : > { %p14505_p6 = pnand %p14503_p5, %p14489_p10  ;;  %p14511_p13 = scmp.lt.s32.totalorder %s14509_s19, %s14502_s11 }
  0x1e   : > { %p14506_p9 = pneg %p14505_p6  ;;  %p14512_p0 = por %p14511_p13, %p14510_p11 }
  0x20   : > { %p14513_p1 = pnand %p14512_p0, %p14506_p9 }
  0x22   : > { %14516 = shalt.err (!%p14513_p1)
}
  0x23   : > { %s14554_s22 = smov 128   ;;  %s14555_s23 = smov 64  }
  0x24   : > { %s14556_s24 = smov 4   ;;  %p11189_p10 = scmp.ge.s32.totalorder %s14551_s15, 1 }
  0x25   : > { %13480 = dma.hbm_to_vmem [thread:$0]  (!%p14622_p8), %s14629_s28, 121856, %s14631_s30, %s14633_s4, %s14554_s22, %s14555_s23, %s14556_s24  }
  0x26   : > { %p160_p12 = scmp.lt.s32.totalorder %s14551_s15, 3 }
  0x28   : > { %p161_p2 = pnand %p11189_p10, %p160_p12 }
  0x29   : > { %s166_s26 = sand.u32 (!%p161_p2), 1, %s14543_s13  }
  0x2a   : > { %164 = sbr.rel (%p161_p2) target bundleno = 1233 (0x4d1), region = 32  ;;  %s167_s29 = scalar_lea.sflag (!%p161_p2), [#allocation3], %s166_s26 }
  0x2b   : > { %s13474_s27 = smul.u32 (!%p161_p2), 7616, %s166_s26 }
  0x2d   : > { %s14664_s5 = scalar_lea.vmem (!%p161_p2), [#allocation2], %s13474_s27 }
  0x31   : > { %14534 = dma.done.wait (%p14616_p7), %s167_s29, 121856  }
  0x32   : > { %14536 = vsyncadd (%p14616_p7), %s167_s29, 4294845440  ;;  %v13520_v0 = vld [vmem:[%s14664_s5 + $0x40] sm:$0xff]   ;;  %v13524_v4 = vld [vmem:[%s14664_s5 + $0x48] sm:$0xff]   ;;  %v14557_v21 = vmov 1966171168   ;;  %v2148_v23 = vlaneseq  ;;  %p195_p7 = scmp.lt.s32.totalorder %s14599_s16, 1 }
  0x33   : > { %v13521_v1 = vld [vmem:[%s14664_s5] sm:$0xff]   ;;  %12146 = vmatprep.subr.bf16.mxu0 %v13520_v0  ;;  %v13525_v5 = vld [vmem:[%s14664_s5 + $0x8] sm:$0xff]   ;;  %v13528_v8 = vld [vmem:[%s14664_s5 + $0x50] sm:$0xff]   ;;  %v2146_v22 = vunpack.c.l.s4 %v14557_v21  ;;  %vm14559_vm0 = vmmov 0  }
  0x34   : > { %v13522_v2 = vld [vmem:[%s14664_s5 + $0xc0] sm:$0xff]   ;;  %12147 = vmatpush3.bf16.msra.mxu0 %v13521_v1  ;;  %v13526_v6 = vld [vmem:[%s14664_s5 + $0xc8] sm:$0xff]   ;;  %v13529_v9 = vld [vmem:[%s14664_s5 + $0x10] sm:$0xff]   ;;  %v2149_v29 = vshrl.u32 %v2148_v23, 7  ;;  %s15945_s16 = smov (!%p195_p7, %s14599_s16), 1 }
  0x35   : > { %v13523_v3 = vld [vmem:[%s14664_s5 + $0x80] sm:$0xff]   ;;  %12168 = vmatprep.subr.bf16.mxu1 %v13522_v2  ;;  %12148 = vmatprep.subr.bf16.mxu0 %v13524_v4  ;;  %v13527_v7 = vld [vmem:[%s14664_s5 + $0x88] sm:$0xff]   ;;  %v13530_v10 = vld [vmem:[%s14664_s5 + $0xd0] sm:$0xff]   ;;  %v2147_v28 = vunpack.c.0.s8 %v2146_v22  ;;  %s197_s10 = scalar_lea.vmem %s15936_s2, %s15945_s16 }
  0x36   : > { %12169 = vmatpush3.bf16.msra.mxu1 %v13523_v3  ;;  %v13531_v11 = vld [vmem:[%s14664_s5 + $0x90] sm:$0xff]   ;;  %v13532_v12 = vld [vmem:[%s14664_s5 + $0x58] sm:$0xff]   ;;  %v13536_v16 = vld [vmem:[%s14664_s5 + $0x60] sm:$0xff]  }
  0x37   : > { %12170 = vmatprep.subr.bf16.mxu1 %v13526_v6  ;;  %v13533_v13 = vld [vmem:[%s14664_s5 + $0x18] sm:$0xff]   ;;  %v13537_v17 = vld [vmem:[%s14664_s5 + $0x20] sm:$0xff]   ;;  %v13540_v20 = vld [vmem:[%s14664_s5 + $0x68] sm:$0xff]   ;;  %v14699_v34 = vsub.s32 %v2147_v28, %v2149_v29 }
  0x38   : > { %12149 = vmatpush3.bf16.msra.mxu0 %v13525_v5  ;;  %v13534_v14 = vld [vmem:[%s14664_s5 + $0xd8] sm:$0xff]   ;;  %v13538_v18 = vld [vmem:[%s14664_s5 + $0xe0] sm:$0xff]   ;;  %v13541_v24 = vld [vmem:[%s14664_s5 + $0x28] sm:$0xff]  }
  0x39   : > { %12150 = vmatprep.subr.bf16.mxu0 %v13528_v8  ;;  %v13535_v15 = vld [vmem:[%s14664_s5 + $0x98] sm:$0xff]   ;;  %v13539_v19 = vld [vmem:[%s14664_s5 + $0xa0] sm:$0xff]   ;;  %v13542_v25 = vld [vmem:[%s14664_s5 + $0xe8] sm:$0xff]  }
  0x3a   : > { %12171 = vmatpush3.bf16.msra.mxu1 %v13527_v7  ;;  %v13543_v26 = vld [vmem:[%s14664_s5 + $0xa8] sm:$0xff]   ;;  %v13544_v27 = vld [vmem:[%s14664_s5 + $0x70] sm:$0xff]   ;;  %v13548_v33 = vld [vmem:[%s14664_s5 + $0x78] sm:$0xff]  }
  0x3b   : > { %12172 = vmatprep.subr.bf16.mxu1 %v13530_v10  ;;  %v13545_v30 = vld [vmem:[%s14664_s5 + $0x30] sm:$0xff]   ;;  %v13549_v35 = vld [vmem:[%s14664_s5 + $0x38] sm:$0xff]   ;;  %v203_v37 = vld [vmem:[%s15934_s0] sm:$0xff] }
  0x3c   : > { %12151 = vmatpush3.bf16.msra.mxu0 %v13529_v9  ;;  %v13546_v31 = vld [vmem:[%s14664_s5 + $0xf0] sm:$0xff]   ;;  %v13550_v36 = vld [vmem:[%s14664_s5 + $0xf8] sm:$0xff]   ;;  %v2144_v38 = vcombine.high %v203_v37, %v203_v37  ;;  %v2151_v39 = vrot.slane %v203_v37, %v14699_v34  ;;  %v13553_v41 = vld [vmem:[%s14664_s5 + $0x140] sm:$0xff]  }
  0x3d   : > { %12152 = vmatprep.subr.bf16.mxu0 %v13532_v12  ;;  %v13547_v32 = vld [vmem:[%s14664_s5 + $0xb0] sm:$0xff]   ;;  %v13552_v40 = vld [vmem:[%s14664_s5 + $0xb8] sm:$0xff]   ;;  %v13554_v44 = vld [vmem:[%s14664_s5 + $0x100] sm:$0xff]  }
  0x3e   : > { %12173 = vmatpush3.bf16.msra.mxu1 %v13531_v11  ;;  %v2159_v42 = vcombine.high %v2151_v39, %v2151_v39  ;;  %v2167_v43 = vrot.slane %v2151_v39, %v14699_v34  ;;  %v14712_v45 = vrot.slane %v2144_v38, %v14699_v34  ;;  %v13555_v46 = vld [vmem:[%s14664_s5 + $0x1c0] sm:$0xff]   ;;  %v13557_v51 = vld [vmem:[%s14664_s5 + $0x148] sm:$0xff]   ;;  %v13561_v58 = vld [vmem:[%s14664_s5 + $0x150] sm:$0xff]  }
  0x3f   : > { %12174 = vmatprep.subr.bf16.mxu1 %v13534_v14  ;;  %v13556_v48 = vld [vmem:[%s14664_s5 + $0x180] sm:$0xff]   ;;  %v13558_v53 = vld [vmem:[%s14664_s5 + $0x108] sm:$0xff]   ;;  %v13562_v59 = vld [vmem:[%s14664_s5 + $0x110] sm:$0xff]  }
  0x40   : > { %12153 = vmatpush3.bf16.msra.mxu0 %v13533_v13  ;;  %v2181_v47 = vrot.slane %v2159_v42, %v14699_v34  ;;  %v2160_v49 = vcombine.high %v14712_v45, %v14712_v45  ;;  %v2189_v50 = vcombine.high %v2167_v43, %v2167_v43  ;;  %v13559_v55 = vld [vmem:[%s14664_s5 + $0x1c8] sm:$0xff]   ;;  %v13563_v60 = vld [vmem:[%s14664_s5 + $0x1d0] sm:$0xff]   ;;  %v13565_v62 = vld [vmem:[%s14664_s5 + $0x158] sm:$0xff]  }
  0x41   : > { %12154 = vmatprep.subr.bf16.mxu0 %v13536_v16  ;;  %v13560_v56 = vld [vmem:[%s14664_s5 + $0x188] sm:$0xff]   ;;  %v13564_v61 = vld [vmem:[%s14664_s5 + $0x190] sm:$0xff]   ;;  %v13566_v63 = vld [vmem:[%s14664_s5 + $0x118] sm:$0xff]  }
  0x42   : > { %12175 = vmatpush3.bf16.msra.mxu1 %v13535_v15  ;;  %8741 = vmatprep.mubr.bf16.mxu0 %v2181_v47  ;;  %v2191_v52 = vcombine.high %v2181_v47, %v2181_v47  ;;  %v2188_v54 = vrot.slane %v2160_v49, %v14699_v34  ;;  %v13567_v0 = vld [vmem:[%s14664_s5 + $0x1d8] sm:$0xff]   ;;  %v13569_v2 = vld [vmem:[%s14664_s5 + $0x160] sm:$0xff]   ;;  %v13573_v6 = vld [vmem:[%s14664_s5 + $0x168] sm:$0xff]  }
  0x43   : > { %12176 = vmatprep.subr.bf16.mxu1 %v13538_v18  ;;  %v13568_v1 = vld [vmem:[%s14664_s5 + $0x198] sm:$0xff]   ;;  %v13570_v3 = vld [vmem:[%s14664_s5 + $0x120] sm:$0xff]   ;;  %v13574_v7 = vld [vmem:[%s14664_s5 + $0x128] sm:$0xff]   ;;  %v2174_v18 = vrot.slane %v14712_v45, %v14699_v34 }
  0x44   : > { %12155 = vmatpush3.bf16.msra.mxu0 %v13537_v17  ;;  %8781 = vmatprep.mubr.bf16.mxu1 %v2191_v52  ;;  %v2192_v57 = vcombine.high %v2188_v54, %v2188_v54  ;;  %v13571_v4 = vld [vmem:[%s14664_s5 + $0x1e0] sm:$0xff]   ;;  %v13575_v8 = vld [vmem:[%s14664_s5 + $0x1e8] sm:$0xff]   ;;  %v13577_v10 = vld [vmem:[%s14664_s5 + $0x170] sm:$0xff]  }
  0x45   : > { %12156 = vmatprep.subr.bf16.mxu0 %v13540_v20  ;;  %v13572_v5 = vld [vmem:[%s14664_s5 + $0x1a0] sm:$0xff]   ;;  %v13576_v9 = vld [vmem:[%s14664_s5 + $0x1a8] sm:$0xff]   ;;  %v13578_v11 = vld [vmem:[%s14664_s5 + $0x130] sm:$0xff]   ;;  %v2190_v23 = vcombine.high %v2174_v18, %v2174_v18 }
  0x46   : > { %12177 = vmatpush3.bf16.msra.mxu1 %v13539_v19  ;;  %v13579_v12 = vld [vmem:[%s14664_s5 + $0x1f0] sm:$0xff]   ;;  %v13581_v14 = vld [vmem:[%s14664_s5 + $0x178] sm:$0xff]   ;;  %v13585_v19 = vld [vmem:[%s14664_s5 + $0x240] sm:$0xff]  }
  0x47   : > { %12178 = vmatprep.subr.bf16.mxu1 %v13542_v25  ;;  %v13580_v13 = vld [vmem:[%s14664_s5 + $0x1b0] sm:$0xff]   ;;  %v13582_v15 = vld [vmem:[%s14664_s5 + $0x138] sm:$0xff]   ;;  %v13586_v20 = vld [vmem:[%s14664_s5 + $0x200] sm:$0xff]  }
  0x48   : > { %12157 = vmatpush3.bf16.msra.mxu0 %v13541_v24  ;;  %v13583_v16 = vld [vmem:[%s14664_s5 + $0x1f8] sm:$0xff]   ;;  %v13587_v21 = vld [vmem:[%s14664_s5 + $0x2c0] sm:$0xff]   ;;  %v13589_v24 = vld [vmem:[%s14664_s5 + $0x248] sm:$0xff]  }
  0x49   : > { %12158 = vmatprep.subr.bf16.mxu0 %v13544_v27  ;;  %v13584_v17 = vld [vmem:[%s14664_s5 + $0x1b8] sm:$0xff]   ;;  %v13588_v22 = vld [vmem:[%s14664_s5 + $0x280] sm:$0xff]   ;;  %v13590_v25 = vld [vmem:[%s14664_s5 + $0x208] sm:$0xff]  }
  0x4a   : > { %12179 = vmatpush3.bf16.msra.mxu1 %v13543_v26  ;;  %v13591_v26 = vld [vmem:[%s14664_s5 + $0x2c8] sm:$0xff]   ;;  %v13593_v28 = vld [vmem:[%s14664_s5 + $0x250] sm:$0xff]   ;;  %v13601_v37 = vld [vmem:[%s14664_s5 + $0x260] sm:$0xff]  }
  0x4b   : > { %12180 = vmatprep.subr.bf16.mxu1 %v13546_v31  ;;  %v13592_v27 = vld [vmem:[%s14664_s5 + $0x288] sm:$0xff]   ;;  %v13594_v29 = vld [vmem:[%s14664_s5 + $0x210] sm:$0xff]   ;;  %v13602_v38 = vld [vmem:[%s14664_s5 + $0x220] sm:$0xff]  }
  0x4c   : > { %12159 = vmatpush3.bf16.msra.mxu0 %v13545_v30  ;;  %v13595_v30 = vld [vmem:[%s14664_s5 + $0x2d0] sm:$0xff]   ;;  %v13603_v39 = vld [vmem:[%s14664_s5 + $0x2e0] sm:$0xff]   ;;  %v13606_v42 = vld [vmem:[%s14664_s5 + $0x228] sm:$0xff]  }
  0x4d   : > { %12160 = vmatprep.subr.bf16.mxu0 %v13548_v33  ;;  %v13596_v31 = vld [vmem:[%s14664_s5 + $0x290] sm:$0xff]   ;;  %v13598_v33 = vld [vmem:[%s14664_s5 + $0x218] sm:$0xff]   ;;  %v204_v52 = vld [vmem:[%s15934_s0 + $0x8] sm:$0xff] }
  0x4e   : > { %12181 = vmatpush3.bf16.msra.mxu1 %v13547_v32  ;;  %v13597_v32 = vld [vmem:[%s14664_s5 + $0x258] sm:$0xff]   ;;  %v13609_v45 = vld [vmem:[%s14664_s5 + $0x270] sm:$0xff]  }
  0x4f   : > { %12182 = vmatprep.subr.bf16.mxu1 %v13550_v36  ;;  %v13600_v36 = vld [vmem:[%s14664_s5 + $0x298] sm:$0xff]   ;;  %v13611_v47 = vld [vmem:[%s14664_s5 + $0x2f0] sm:$0xff]  }
  0x50   : > { %12161 = vmatpush3.bf16.msra.mxu0 %v13549_v35  ;;  %v13599_v35 = vld [vmem:[%s14664_s5 + $0x2d8] sm:$0xff]  }
  0x51   : > { %12190 = vmatprep.subr.bf16.mxu0 %v13553_v41  ;;  %v13605_v41 = vld [vmem:[%s14664_s5 + $0x268] sm:$0xff]   ;;  %v13613_v49 = vld [vmem:[%s14664_s5 + $0x278] sm:$0xff]  }
  0x52   : > { %12183 = vmatpush3.bf16.msra.mxu1 %v13552_v40  ;;  %v13604_v40 = vld [vmem:[%s14664_s5 + $0x2a0] sm:$0xff]  }
  0x53   : > { %12212 = vmatprep.subr.bf16.mxu1 %v13555_v46  ;;  %8742 = vmatmul.mubr.bf16.vlgmr.msra.gmra.mrb[0].mxu0 %v2167_v43  ;;  %v13607_v43 = vld [vmem:[%s14664_s5 + $0x2e8] sm:$0xff]   ;;  %v13610_v46 = vld [vmem:[%s14664_s5 + $0x230] sm:$0xff]  }
  0x54   : > { %12191 = vmatpush3.bf16.msra.mxu0 %v13554_v44  ;;  %8821 = vmatprep.mubr.bf16.mxu0 %v2188_v54  ;;  %v13608_v44 = vld [vmem:[%s14664_s5 + $0x2a8] sm:$0xff]   ;;  %v13616_v54 = vld [vmem:[%s14664_s5 + $0x2b8] sm:$0xff]  }
  0x55   : > { %8782 = vmatmul.mubr.bf16.vlgmr.msra.gmra.mrb[0].mxu1 %v2189_v50  ;;  %12192 = vmatprep.subr.bf16.mxu0 %v13557_v51  ;;  %v13614_v50 = vld [vmem:[%s14664_s5 + $0x238] sm:$0xff]  }
  0x56   : > { %12213 = vmatpush3.bf16.msra.mxu1 %v13556_v48  ;;  %8861 = vmatprep.mubr.bf16.mxu1 %v2192_v57  ;;  %v13612_v48 = vld [vmem:[%s14664_s5 + $0x2b0] sm:$0xff]   ;;  %v13615_v51 = vld [vmem:[%s14664_s5 + $0x2f8] sm:$0xff]  }
  0x57   : > { %12214 = vmatprep.subr.bf16.mxu1 %v13559_v55  ;;  %v2193_v55 = vcombine.high %v204_v52, %v204_v52 }
  0x58   : > { %12193 = vmatpush3.bf16.msra.mxu0 %v13558_v53  ;;  %v2200_v53 = vrot.slane %v204_v52, %v14699_v34  ;;  %v13666_v52 = vld [vmem:[%s14664_s5 + $0x460] sm:$0xff]  }
  0x59   : > { %12194 = vmatprep.subr.bf16.mxu0 %v13561_v58 }
  0x5a   : > { %12215 = vmatpush3.bf16.msra.mxu1 %v13560_v56  ;;  %v13617_v56 = vld [vmem:[%s14664_s5 + $0x340] sm:$0xff]   ;;  %v2208_v57 = vcombine.high %v2200_v53, %v2200_v53  ;;  %v2216_v58 = vrot.slane %v2200_v53, %v14699_v34 }
  0x5b   : > { %12216 = vmatprep.subr.bf16.mxu1 %v13563_v60  ;;  %v14790_v60 = vrot.slane %v2193_v55, %v14699_v34  ;;  %v13667_v53 = vld [vmem:[%s14664_s5 + $0x420] sm:$0xff]  }
  0x5c   : > { %12195 = vmatpush3.bf16.msra.mxu0 %v13562_v59  ;;  %v13618_v59 = vld [vmem:[%s14664_s5 + $0x300] sm:$0xff]  }
  0x5d   : > { %12196 = vmatprep.subr.bf16.mxu0 %v13565_v62  ;;  %v2230_v62 = vrot.slane %v2208_v57, %v14699_v34  ;;  %v13669_v55 = vld [vmem:[%s14664_s5 + $0x4a0] sm:$0xff]   ;;  %v13671_v57 = vld [vmem:[%s14664_s5 + $0x428] sm:$0xff]  }
  0x5e   : > { %12217 = vmatpush3.bf16.msra.mxu1 %v13564_v61  ;;  %v13619_v61 = vld [vmem:[%s14664_s5 + $0x3c0] sm:$0xff]  }
  0x5f   : > { %12218 = vmatprep.subr.bf16.mxu1 %v13567_v0  ;;  %v2209_v0 = vcombine.high %v14790_v60, %v14790_v60 }
  0x60   : > { %12197 = vmatpush3.bf16.msra.mxu0 %v13566_v63  ;;  %v13620_v63 = vld [vmem:[%s14664_s5 + $0x380] sm:$0xff]  }
  0x61   : > { %12198 = vmatprep.subr.bf16.mxu0 %v13569_v2  ;;  %v13621_v2 = vld [vmem:[%s14664_s5 + $0x348] sm:$0xff]  }
  0x62   : > { %12219 = vmatpush3.bf16.msra.mxu1 %v13568_v1  ;;  %v2238_v1 = vcombine.high %v2216_v58, %v2216_v58 }
  0x63   : > { %12220 = vmatprep.subr.bf16.mxu1 %v13571_v4  ;;  %v13622_v4 = vld [vmem:[%s14664_s5 + $0x308] sm:$0xff]  }
  0x64   : > { %12199 = vmatpush3.bf16.msra.mxu0 %v13570_v3  ;;  %v2240_v3 = vcombine.high %v2230_v62, %v2230_v62 }
  0x65   : > { %12200 = vmatprep.subr.bf16.mxu0 %v13573_v6  ;;  %v13623_v6 = vld [vmem:[%s14664_s5 + $0x3c8] sm:$0xff]  }
  0x66   : > { %12221 = vmatpush3.bf16.msra.mxu1 %v13572_v5  ;;  %v2237_v5 = vrot.slane %v2209_v0, %v14699_v34  ;;  %v13678_v0 = vld [vmem:[%s14664_s5 + $0x478] sm:$0xff]  }
  0x67   : > { %12222 = vmatprep.subr.bf16.mxu1 %v13575_v8 }
  0x68   : > { %12201 = vmatpush3.bf16.msra.mxu0 %v13574_v7  ;;  %v13624_v7 = vld [vmem:[%s14664_s5 + $0x388] sm:$0xff]   ;;  %v2241_v8 = vcombine.high %v2237_v5, %v2237_v5 }
  0x69   : > { %12202 = vmatprep.subr.bf16.mxu0 %v13577_v10  ;;  %v13626_v10 = vld [vmem:[%s14664_s5 + $0x310] sm:$0xff]  }
  0x6a   : > { %12223 = vmatpush3.bf16.msra.mxu1 %v13576_v9  ;;  %v13625_v9 = vld [vmem:[%s14664_s5 + $0x350] sm:$0xff]  }
  0x6b   : > { %12224 = vmatprep.subr.bf16.mxu1 %v13579_v12  ;;  %v13628_v12 = vld [vmem:[%s14664_s5 + $0x390] sm:$0xff]  }
  0x6c   : > { %12203 = vmatpush3.bf16.msra.mxu0 %v13578_v11  ;;  %v13627_v11 = vld [vmem:[%s14664_s5 + $0x3d0] sm:$0xff]  }
  0x6d   : > { %12204 = vmatprep.subr.bf16.mxu0 %v13581_v14  ;;  %v13630_v14 = vld [vmem:[%s14664_s5 + $0x318] sm:$0xff]  }
  0x6e   : > { %12225 = vmatpush3.bf16.msra.mxu1 %v13580_v13  ;;  %v13629_v13 = vld [vmem:[%s14664_s5 + $0x358] sm:$0xff]  }
  0x6f   : > { %12226 = vmatprep.subr.bf16.mxu1 %v13583_v16  ;;  %v13632_v16 = vld [vmem:[%s14664_s5 + $0x398] sm:$0xff]  }
  0x70   : > { %12205 = vmatpush3.bf16.msra.mxu0 %v13582_v15  ;;  %v13631_v15 = vld [vmem:[%s14664_s5 + $0x3d8] sm:$0xff]  }
  0x71   : > { %12234 = vmatprep.subr.bf16.mxu0 %v13585_v19  ;;  %v13635_v19 = vld [vmem:[%s14664_s5 + $0x3e0] sm:$0xff]  }
  0x72   : > { %12227 = vmatpush3.bf16.msra.mxu1 %v13584_v17  ;;  %v13633_v17 = vld [vmem:[%s14664_s5 + $0x360] sm:$0xff]  }
  0x73   : > { %8822 = vmatmul.mubr.bf16.vlgmr.msra.gmra.mrb[4].mxu0 %v2174_v18  ;;  %12256 = vmatprep.subr.bf16.mxu1 %v13587_v21  ;;  %v13634_v18 = vld [vmem:[%s14664_s5 + $0x320] sm:$0xff]   ;;  %v13637_v21 = vld [vmem:[%s14664_s5 + $0x368] sm:$0xff]  }
  0x74   : > { %12235 = vmatpush3.bf16.msra.mxu0 %v13586_v20  ;;  %8901 = vmatprep.mubr.bf16.mxu0 %v2230_v62  ;;  %v13636_v20 = vld [vmem:[%s14664_s5 + $0x3a0] sm:$0xff]   ;;  %v13676_v62 = vld [vmem:[%s14664_s5 + $0x4f0] sm:$0xff]  }
  0x75   : > { %8862 = vmatmul.mubr.bf16.vlgmr.msra.gmra.mrb[4].mxu1 %v2190_v23  ;;  %12236 = vmatprep.subr.bf16.mxu0 %v13589_v24  ;;  %v13639_v23 = vld [vmem:[%s14664_s5 + $0x3e8] sm:$0xff]  }
  0x76   : > { %12257 = vmatpush3.bf16.msra.mxu1 %v13588_v22  ;;  %8941 = vmatprep.mubr.bf16.mxu1 %v2240_v3  ;;  %v13638_v22 = vld [vmem:[%s14664_s5 + $0x328] sm:$0xff]   ;;  %v205_v3 = vld [vmem:[%s15934_s0 + $0x10] sm:$0xff] }
  0x77   : > { %12258 = vmatprep.subr.bf16.mxu1 %v13591_v26  ;;  %v13640_v24 = vld [vmem:[%s14664_s5 + $0x3a8] sm:$0xff]   ;;  %v13642_v26 = vld [vmem:[%s14664_s5 + $0x330] sm:$0xff]  }
  0x78   : > { %12237 = vmatpush3.bf16.msra.mxu0 %v13590_v25  ;;  %v13641_v25 = vld [vmem:[%s14664_s5 + $0x370] sm:$0xff]  }
  0x79   : > { %12238 = vmatprep.subr.bf16.mxu0 %v13593_v28  ;;  %v13644_v28 = vld [vmem:[%s14664_s5 + $0x3b0] sm:$0xff]  }
  0x7a   : > { %12259 = vmatpush3.bf16.msra.mxu1 %v13592_v27  ;;  %v13643_v27 = vld [vmem:[%s14664_s5 + $0x3f0] sm:$0xff]  }
  0x7b   : > { %12260 = vmatprep.subr.bf16.mxu1 %v13595_v30  ;;  %v13646_v30 = vld [vmem:[%s14664_s5 + $0x338] sm:$0xff]  }
  0x7c   : > { %12239 = vmatpush3.bf16.msra.mxu0 %v13594_v29  ;;  %v13645_v29 = vld [vmem:[%s14664_s5 + $0x378] sm:$0xff]  }
  0x7d   : > { %12240 = vmatprep.subr.bf16.mxu0 %v13597_v32  ;;  %v13649_v32 = vld [vmem:[%s14664_s5 + $0x3b8] sm:$0xff]  }
  0x7e   : > { %12261 = vmatpush3.bf16.msra.mxu1 %v13596_v31  ;;  %v13647_v31 = vld [vmem:[%s14664_s5 + $0x3f8] sm:$0xff]  }
  0x7f   : > { %12262 = vmatprep.subr.bf16.mxu1 %v13599_v35  ;;  %v13650_v35 = vld [vmem:[%s14664_s5 + $0x440] sm:$0xff]  }
  0x80   : > { %12241 = vmatpush3.bf16.msra.mxu0 %v13598_v33  ;;  %v2223_v33 = vrot.slane %v14790_v60, %v14699_v34  ;;  %v13674_v60 = vld [vmem:[%s14664_s5 + $0x470] sm:$0xff]  }
  0x81   : > { %12242 = vmatprep.subr.bf16.mxu0 %v13601_v37  ;;  %v13652_v37 = vld [vmem:[%s14664_s5 + $0x4c0] sm:$0xff]  }
  0x82   : > { %12263 = vmatpush3.bf16.msra.mxu1 %v13600_v36  ;;  %v13651_v36 = vld [vmem:[%s14664_s5 + $0x400] sm:$0xff]  }
  0x83   : > { %12264 = vmatprep.subr.bf16.mxu1 %v13603_v39  ;;  %v2239_v39 = vcombine.high %v2223_v33, %v2223_v33 }
  0x84   : > { %12243 = vmatpush3.bf16.msra.mxu0 %v13602_v38  ;;  %v13653_v38 = vld [vmem:[%s14664_s5 + $0x480] sm:$0xff]  }
  0x85   : > { %12244 = vmatprep.subr.bf16.mxu0 %v13605_v41  ;;  %v13655_v41 = vld [vmem:[%s14664_s5 + $0x408] sm:$0xff]  }
  0x86   : > { %12265 = vmatpush3.bf16.msra.mxu1 %v13604_v40  ;;  %v13654_v40 = vld [vmem:[%s14664_s5 + $0x448] sm:$0xff]  }
  0x87   : > { %12266 = vmatprep.subr.bf16.mxu1 %v13607_v43  ;;  %v13657_v43 = vld [vmem:[%s14664_s5 + $0x488] sm:$0xff]  }
  0x88   : > { %12245 = vmatpush3.bf16.msra.mxu0 %v13606_v42  ;;  %v13656_v42 = vld [vmem:[%s14664_s5 + $0x4c8] sm:$0xff]  }
  0x89   : > { %12246 = vmatprep.subr.bf16.mxu0 %v13609_v45  ;;  %v13659_v45 = vld [vmem:[%s14664_s5 + $0x410] sm:$0xff]  }
  0x8a   : > { %12267 = vmatpush3.bf16.msra.mxu1 %v13608_v44  ;;  %v13658_v44 = vld [vmem:[%s14664_s5 + $0x450] sm:$0xff]  }
  0x8b   : > { %12268 = vmatprep.subr.bf16.mxu1 %v13611_v47  ;;  %v13661_v47 = vld [vmem:[%s14664_s5 + $0x490] sm:$0xff]  }
  0x8c   : > { %12247 = vmatpush3.bf16.msra.mxu0 %v13610_v46  ;;  %v13660_v46 = vld [vmem:[%s14664_s5 + $0x4d0] sm:$0xff]  }
  0x8d   : > { %12248 = vmatprep.subr.bf16.mxu0 %v13613_v49  ;;  %v13663_v49 = vld [vmem:[%s14664_s5 + $0x418] sm:$0xff]  }
  0x8e   : > { %12269 = vmatpush3.bf16.msra.mxu1 %v13612_v48  ;;  %v13662_v48 = vld [vmem:[%s14664_s5 + $0x458] sm:$0xff]  }
  0x8f   : > { %12270 = vmatprep.subr.bf16.mxu1 %v13615_v51  ;;  %v13665_v51 = vld [vmem:[%s14664_s5 + $0x498] sm:$0xff]  }
  0x90   : > { %12249 = vmatpush3.bf16.msra.mxu0 %v13614_v50  ;;  %v13664_v50 = vld [vmem:[%s14664_s5 + $0x4d8] sm:$0xff]  }
  0x91   : > { %12278 = vmatprep.subr.bf16.mxu0 %v13617_v56  ;;  %v13670_v56 = vld [vmem:[%s14664_s5 + $0x468] sm:$0xff]  }
  0x92   : > { %12271 = vmatpush3.bf16.msra.mxu1 %v13616_v54  ;;  %v13668_v54 = vld [vmem:[%s14664_s5 + $0x4e0] sm:$0xff]  }
  0x93   : > { %8902 = vmatmul.mubr.bf16.vlgmr.msra.gmra.mrb[8].mxu0 %v2216_v58  ;;  %12300 = vmatprep.subr.bf16.mxu1 %v13619_v61  ;;  %v13672_v58 = vld [vmem:[%s14664_s5 + $0x4e8] sm:$0xff]   ;;  %v13675_v61 = vld [vmem:[%s14664_s5 + $0x430] sm:$0xff]  }
  0x94   : > { %12279 = vmatpush3.bf16.msra.mxu0 %v13618_v59  ;;  %8981 = vmatprep.mubr.bf16.mxu0 %v2237_v5  ;;  %v13673_v59 = vld [vmem:[%s14664_s5 + $0x4a8] sm:$0xff]   ;;  %v13681_v5 = vld [vmem:[%s14664_s5 + $0x4b8] sm:$0xff]  }
  0x95   : > { %8942 = vmatmul.mubr.bf16.vlgmr.msra.gmra.mrb[8].mxu1 %v2238_v1  ;;  %12280 = vmatprep.subr.bf16.mxu0 %v13621_v2  ;;  %v13679_v1 = vld [vmem:[%s14664_s5 + $0x438] sm:$0xff]  }
  0x96   : > { %12301 = vmatpush3.bf16.msra.mxu1 %v13620_v63  ;;  %9021 = vmatprep.mubr.bf16.mxu1 %v2241_v8  ;;  %v13677_v63 = vld [vmem:[%s14664_s5 + $0x4b0] sm:$0xff]   ;;  %v13680_v2 = vld [vmem:[%s14664_s5 + $0x4f8] sm:$0xff]  }
  0x97   : > { %12302 = vmatprep.subr.bf16.mxu1 %v13623_v6  ;;  %v2242_v6 = vcombine.high %v205_v3, %v205_v3 }
  0x98   : > { %12281 = vmatpush3.bf16.msra.mxu0 %v13622_v4  ;;  %v2249_v4 = vrot.slane %v205_v3, %v14699_v34  ;;  %v13731_v3 = vld [vmem:[%s14664_s5 + $0x660] sm:$0xff]  }
  0x99   : > { %12282 = vmatprep.subr.bf16.mxu0 %v13625_v9 }
  0x9a   : > { %12303 = vmatpush3.bf16.msra.mxu1 %v13624_v7  ;;  %v13682_v7 = vld [vmem:[%s14664_s5 + $0x540] sm:$0xff]   ;;  %v2257_v8 = vcombine.high %v2249_v4, %v2249_v4  ;;  %v2265_v9 = vrot.slane %v2249_v4, %v14699_v34 }
  0x9b   : > { %12304 = vmatprep.subr.bf16.mxu1 %v13627_v11  ;;  %v14868_v11 = vrot.slane %v2242_v6, %v14699_v34  ;;  %v13732_v4 = vld [vmem:[%s14664_s5 + $0x620] sm:$0xff]  }
  0x9c   : > { %12283 = vmatpush3.bf16.msra.mxu0 %v13626_v10  ;;  %v13683_v10 = vld [vmem:[%s14664_s5 + $0x500] sm:$0xff]  }
  0x9d   : > { %12284 = vmatprep.subr.bf16.mxu0 %v13629_v13  ;;  %v2279_v13 = vrot.slane %v2257_v8, %v14699_v34  ;;  %v13734_v6 = vld [vmem:[%s14664_s5 + $0x6a0] sm:$0xff]   ;;  %v13736_v8 = vld [vmem:[%s14664_s5 + $0x628] sm:$0xff]  }
  0x9e   : > { %12305 = vmatpush3.bf16.msra.mxu1 %v13628_v12  ;;  %v13684_v12 = vld [vmem:[%s14664_s5 + $0x5c0] sm:$0xff]  }
  0x9f   : > { %12306 = vmatprep.subr.bf16.mxu1 %v13631_v15  ;;  %v2258_v15 = vcombine.high %v14868_v11, %v14868_v11 }
  0xa0   : > { %12285 = vmatpush3.bf16.msra.mxu0 %v13630_v14  ;;  %v13685_v14 = vld [vmem:[%s14664_s5 + $0x580] sm:$0xff]  }
  0xa1   : > { %12286 = vmatprep.subr.bf16.mxu0 %v13633_v17  ;;  %v13686_v17 = vld [vmem:[%s14664_s5 + $0x548] sm:$0xff]  }
  0xa2   : > { %12307 = vmatpush3.bf16.msra.mxu1 %v13632_v16  ;;  %v2287_v16 = vcombine.high %v2265_v9, %v2265_v9 }
  0xa3   : > { %12308 = vmatprep.subr.bf16.mxu1 %v13635_v19  ;;  %v13687_v19 = vld [vmem:[%s14664_s5 + $0x508] sm:$0xff]  }
  0xa4   : > { %12287 = vmatpush3.bf16.msra.mxu0 %v13634_v18  ;;  %v2289_v18 = vcombine.high %v2279_v13, %v2279_v13 }
  0xa5   : > { %12288 = vmatprep.subr.bf16.mxu0 %v13637_v21  ;;  %v13688_v21 = vld [vmem:[%s14664_s5 + $0x5c8] sm:$0xff]  }
  0xa6   : > { %12309 = vmatpush3.bf16.msra.mxu1 %v13636_v20  ;;  %v2286_v20 = vrot.slane %v2258_v15, %v14699_v34  ;;  %v13743_v15 = vld [vmem:[%s14664_s5 + $0x678] sm:$0xff]  }
  0xa7   : > { %12310 = vmatprep.subr.bf16.mxu1 %v13639_v23 }
  0xa8   : > { %12289 = vmatpush3.bf16.msra.mxu0 %v13638_v22  ;;  %v13689_v22 = vld [vmem:[%s14664_s5 + $0x588] sm:$0xff]   ;;  %v2290_v23 = vcombine.high %v2286_v20, %v2286_v20 }
  0xa9   : > { %12290 = vmatprep.subr.bf16.mxu0 %v13641_v25  ;;  %v13691_v25 = vld [vmem:[%s14664_s5 + $0x510] sm:$0xff]  }
  0xaa   : > { %12311 = vmatpush3.bf16.msra.mxu1 %v13640_v24  ;;  %v13690_v24 = vld [vmem:[%s14664_s5 + $0x550] sm:$0xff]  }
  0xab   : > { %12312 = vmatprep.subr.bf16.mxu1 %v13643_v27  ;;  %v13693_v27 = vld [vmem:[%s14664_s5 + $0x590] sm:$0xff]  }
  0xac   : > { %12291 = vmatpush3.bf16.msra.mxu0 %v13642_v26  ;;  %v13692_v26 = vld [vmem:[%s14664_s5 + $0x5d0] sm:$0xff]  }
  0xad   : > { %12292 = vmatprep.subr.bf16.mxu0 %v13645_v29  ;;  %v13695_v29 = vld [vmem:[%s14664_s5 + $0x518] sm:$0xff]  }
  0xae   : > { %12313 = vmatpush3.bf16.msra.mxu1 %v13644_v28  ;;  %v13694_v28 = vld [vmem:[%s14664_s5 + $0x558] sm:$0xff]  }
  0xaf   : > { %12314 = vmatprep.subr.bf16.mxu1 %v13647_v31  ;;  %v13697_v31 = vld [vmem:[%s14664_s5 + $0x598] sm:$0xff]  }
  0xb0   : > { %12293 = vmatpush3.bf16.msra.mxu0 %v13646_v30  ;;  %v13696_v30 = vld [vmem:[%s14664_s5 + $0x5d8] sm:$0xff]  }
  0xb1   : > { %12322 = vmatprep.subr.bf16.mxu0 %v13650_v35  ;;  %v13700_v35 = vld [vmem:[%s14664_s5 + $0x5e0] sm:$0xff]  }
  0xb2   : > { %12315 = vmatpush3.bf16.msra.mxu1 %v13649_v32  ;;  %v13698_v32 = vld [vmem:[%s14664_s5 + $0x560] sm:$0xff]  }
  0xb3   : > { %8982 = vmatmul.mubr.bf16.vlgmr.msra.gmra.mrb[12].mxu0 %v2223_v33  ;;  %12344 = vmatprep.subr.bf16.mxu1 %v13652_v37  ;;  %v13699_v33 = vld [vmem:[%s14664_s5 + $0x520] sm:$0xff]   ;;  %v13702_v37 = vld [vmem:[%s14664_s5 + $0x568] sm:$0xff]  }
  0xb4   : > { %12323 = vmatpush3.bf16.msra.mxu0 %v13651_v36  ;;  %9061 = vmatprep.mubr.bf16.mxu0 %v2279_v13  ;;  %v13701_v36 = vld [vmem:[%s14664_s5 + $0x5a0] sm:$0xff]   ;;  %v13741_v13 = vld [vmem:[%s14664_s5 + $0x6f0] sm:$0xff]  }
  0xb5   : > { %9022 = vmatmul.mubr.bf16.vlgmr.msra.gmra.mrb[12].mxu1 %v2239_v39  ;;  %12324 = vmatprep.subr.bf16.mxu0 %v13654_v40  ;;  %v13704_v39 = vld [vmem:[%s14664_s5 + $0x5e8] sm:$0xff]  }
  0xb6   : > { %12345 = vmatpush3.bf16.msra.mxu1 %v13653_v38  ;;  %9101 = vmatprep.mubr.bf16.mxu1 %v2289_v18  ;;  %v13703_v38 = vld [vmem:[%s14664_s5 + $0x528] sm:$0xff]   ;;  %v206_v18 = vld [vmem:[%s15934_s0 + $0x18] sm:$0xff] }
  0xb7   : > { %12346 = vmatprep.subr.bf16.mxu1 %v13656_v42  ;;  %v13705_v40 = vld [vmem:[%s14664_s5 + $0x5a8] sm:$0xff]   ;;  %v13707_v42 = vld [vmem:[%s14664_s5 + $0x530] sm:$0xff]  }
  0xb8   : > { %12325 = vmatpush3.bf16.msra.mxu0 %v13655_v41  ;;  %v13706_v41 = vld [vmem:[%s14664_s5 + $0x570] sm:$0xff]  }
  0xb9   : > { %12326 = vmatprep.subr.bf16.mxu0 %v13658_v44  ;;  %v13709_v44 = vld [vmem:[%s14664_s5 + $0x5b0] sm:$0xff]  }
  0xba   : > { %12347 = vmatpush3.bf16.msra.mxu1 %v13657_v43  ;;  %v13708_v43 = vld [vmem:[%s14664_s5 + $0x5f0] sm:$0xff]  }
  0xbb   : > { %12348 = vmatprep.subr.bf16.mxu1 %v13660_v46  ;;  %v13711_v46 = vld [vmem:[%s14664_s5 + $0x538] sm:$0xff]  }
  0xbc   : > { %12327 = vmatpush3.bf16.msra.mxu0 %v13659_v45  ;;  %v13710_v45 = vld [vmem:[%s14664_s5 + $0x578] sm:$0xff]  }
  0xbd   : > { %12328 = vmatprep.subr.bf16.mxu0 %v13662_v48  ;;  %v13714_v48 = vld [vmem:[%s14664_s5 + $0x5b8] sm:$0xff]  }
  0xbe   : > { %12349 = vmatpush3.bf16.msra.mxu1 %v13661_v47  ;;  %v13712_v47 = vld [vmem:[%s14664_s5 + $0x5f8] sm:$0xff]  }
  0xbf   : > { %12350 = vmatprep.subr.bf16.mxu1 %v13664_v50  ;;  %v13715_v50 = vld [vmem:[%s14664_s5 + $0x640] sm:$0xff]  }
  0xc0   : > { %12329 = vmatpush3.bf16.msra.mxu0 %v13663_v49  ;;  %v2272_v49 = vrot.slane %v14868_v11, %v14699_v34  ;;  %v13739_v11 = vld [vmem:[%s14664_s5 + $0x670] sm:$0xff]  }
  0xc1   : > { %12330 = vmatprep.subr.bf16.mxu0 %v13666_v52  ;;  %v13717_v52 = vld [vmem:[%s14664_s5 + $0x6c0] sm:$0xff]  }
  0xc2   : > { %12351 = vmatpush3.bf16.msra.mxu1 %v13665_v51  ;;  %v13716_v51 = vld [vmem:[%s14664_s5 + $0x600] sm:$0xff]  }
  0xc3   : > { %12352 = vmatprep.subr.bf16.mxu1 %v13668_v54  ;;  %v2288_v54 = vcombine.high %v2272_v49, %v2272_v49 }
  0xc4   : > { %12331 = vmatpush3.bf16.msra.mxu0 %v13667_v53  ;;  %v13718_v53 = vld [vmem:[%s14664_s5 + $0x680] sm:$0xff]  }
  0xc5   : > { %12332 = vmatprep.subr.bf16.mxu0 %v13670_v56  ;;  %v13720_v56 = vld [vmem:[%s14664_s5 + $0x608] sm:$0xff]  }
  0xc6   : > { %12353 = vmatpush3.bf16.msra.mxu1 %v13669_v55  ;;  %v13719_v55 = vld [vmem:[%s14664_s5 + $0x648] sm:$0xff]  }
  0xc7   : > { %12354 = vmatprep.subr.bf16.mxu1 %v13672_v58  ;;  %v13722_v58 = vld [vmem:[%s14664_s5 + $0x688] sm:$0xff]  }
  0xc8   : > { %12333 = vmatpush3.bf16.msra.mxu0 %v13671_v57  ;;  %v13721_v57 = vld [vmem:[%s14664_s5 + $0x6c8] sm:$0xff]  }
  0xc9   : > { %12334 = vmatprep.subr.bf16.mxu0 %v13674_v60  ;;  %v13724_v60 = vld [vmem:[%s14664_s5 + $0x610] sm:$0xff]  }
  0xca   : > { %12355 = vmatpush3.bf16.msra.mxu1 %v13673_v59  ;;  %v13723_v59 = vld [vmem:[%s14664_s5 + $0x650] sm:$0xff]  }
  0xcb   : > { %12356 = vmatprep.subr.bf16.mxu1 %v13676_v62  ;;  %v13726_v62 = vld [vmem:[%s14664_s5 + $0x690] sm:$0xff]  }
  0xcc   : > { %12335 = vmatpush3.bf16.msra.mxu0 %v13675_v61  ;;  %v13725_v61 = vld [vmem:[%s14664_s5 + $0x6d0] sm:$0xff]  }
  0xcd   : > { %12336 = vmatprep.subr.bf16.mxu0 %v13678_v0  ;;  %v13728_v0 = vld [vmem:[%s14664_s5 + $0x618] sm:$0xff]  }
  0xce   : > { %12357 = vmatpush3.bf16.msra.mxu1 %v13677_v63  ;;  %v13727_v63 = vld [vmem:[%s14664_s5 + $0x658] sm:$0xff]  }
  0xcf   : > { %12358 = vmatprep.subr.bf16.mxu1 %v13680_v2  ;;  %v13730_v2 = vld [vmem:[%s14664_s5 + $0x698] sm:$0xff]  }
  0xd0   : > { %12337 = vmatpush3.bf16.msra.mxu0 %v13679_v1  ;;  %v13729_v1 = vld [vmem:[%s14664_s5 + $0x6d8] sm:$0xff]  }
  0xd1   : > { %12366 = vmatprep.subr.bf16.mxu0 %v13682_v7  ;;  %v13735_v7 = vld [vmem:[%s14664_s5 + $0x668] sm:$0xff]  }
  0xd2   : > { %12359 = vmatpush3.bf16.msra.mxu1 %v13681_v5  ;;  %v13733_v5 = vld [vmem:[%s14664_s5 + $0x6e0] sm:$0xff]  }
  0xd3   : > { %9062 = vmatmul.mubr.bf16.vlgmr.msra.gmra.mrb[16].mxu0 %v2265_v9  ;;  %12388 = vmatprep.subr.bf16.mxu1 %v13684_v12  ;;  %v13737_v9 = vld [vmem:[%s14664_s5 + $0x6e8] sm:$0xff]   ;;  %v13740_v12 = vld [vmem:[%s14664_s5 + $0x630] sm:$0xff]  }
  0xd4   : > { %12367 = vmatpush3.bf16.msra.mxu0 %v13683_v10  ;;  %9141 = vmatprep.mubr.bf16.mxu0 %v2286_v20  ;;  %v13738_v10 = vld [vmem:[%s14664_s5 + $0x6a8] sm:$0xff]   ;;  %v13746_v20 = vld [vmem:[%s14664_s5 + $0x6b8] sm:$0xff]  }
  0xd5   : > { %9102 = vmatmul.mubr.bf16.vlgmr.msra.gmra.mrb[16].mxu1 %v2287_v16  ;;  %12368 = vmatprep.subr.bf16.mxu0 %v13686_v17  ;;  %v13744_v16 = vld [vmem:[%s14664_s5 + $0x638] sm:$0xff]  }
  0xd6   : > { %12389 = vmatpush3.bf16.msra.mxu1 %v13685_v14  ;;  %9181 = vmatprep.mubr.bf16.mxu1 %v2290_v23  ;;  %v13742_v14 = vld [vmem:[%s14664_s5 + $0x6b0] sm:$0xff]   ;;  %v13745_v17 = vld [vmem:[%s14664_s5 + $0x6f8] sm:$0xff]  }
  0xd7   : > { %12390 = vmatprep.subr.bf16.mxu1 %v13688_v21  ;;  %v2291_v21 = vcombine.high %v206_v18, %v206_v18 }
  0xd8   : > { %12369 = vmatpush3.bf16.msra.mxu0 %v13687_v19  ;;  %v2298_v19 = vrot.slane %v206_v18, %v14699_v34 }
  0xd9   : > { %12370 = vmatprep.subr.bf16.mxu0 %v13690_v24 }
  0xda   : > { %12391 = vmatpush3.bf16.msra.mxu1 %v13689_v22  ;;  %v13747_v22 = vld [vmem:[%s14664_s5 + $0x740] sm:$0xff]   ;;  %v2306_v23 = vcombine.high %v2298_v19, %v2298_v19  ;;  %v2314_v24 = vrot.slane %v2298_v19, %v14699_v34  ;;  %v13784_v19 = vld [vmem:[%s14664_s5 + $0x848] sm:$0xff]  }
  0xdb   : > { %12392 = vmatprep.subr.bf16.mxu1 %v13692_v26  ;;  %v13749_v26 = vld [vmem:[%s14664_s5 + $0x7c0] sm:$0xff]  }
  0xdc   : > { %12371 = vmatpush3.bf16.msra.mxu0 %v13691_v25  ;;  %v14945_v25 = vrot.slane %v2291_v21, %v14699_v34  ;;  %v13786_v21 = vld [vmem:[%s14664_s5 + $0x8c8] sm:$0xff]  }
  0xdd   : > { %12372 = vmatprep.subr.bf16.mxu0 %v13694_v28  ;;  %v13748_v28 = vld [vmem:[%s14664_s5 + $0x700] sm:$0xff]  }
  0xde   : > { %12393 = vmatpush3.bf16.msra.mxu1 %v13693_v27  ;;  %v2328_v27 = vrot.slane %v2306_v23, %v14699_v34  ;;  %v13788_v23 = vld [vmem:[%s14664_s5 + $0x850] sm:$0xff]  }
  0xdf   : > { %12394 = vmatprep.subr.bf16.mxu1 %v13696_v30  ;;  %v2336_v30 = vcombine.high %v2314_v24, %v2314_v24 }
  0xe0   : > { %12373 = vmatpush3.bf16.msra.mxu0 %v13695_v29  ;;  %v2307_v29 = vcombine.high %v14945_v25, %v14945_v25 }
  0xe1   : > { %12374 = vmatprep.subr.bf16.mxu0 %v13698_v32  ;;  %v2338_v32 = vcombine.high %v2328_v27, %v2328_v27 }
  0xe2   : > { %12395 = vmatpush3.bf16.msra.mxu1 %v13697_v31  ;;  %v13751_v31 = vld [vmem:[%s14664_s5 + $0x748] sm:$0xff]  }
  0xe3   : > { %12396 = vmatprep.subr.bf16.mxu1 %v13700_v35  ;;  %v2335_v35 = vrot.slane %v2307_v29, %v14699_v34  ;;  %v13794_v29 = vld [vmem:[%s14664_s5 + $0x8d8] sm:$0xff]  }
  0xe4   : > { %12375 = vmatpush3.bf16.msra.mxu0 %v13699_v33  ;;  %v13750_v33 = vld [vmem:[%s14664_s5 + $0x780] sm:$0xff]  }
  0xe5   : > { %12376 = vmatprep.subr.bf16.mxu0 %v13702_v37  ;;  %v13752_v37 = vld [vmem:[%s14664_s5 + $0x708] sm:$0xff]  }
  0xe6   : > { %12397 = vmatpush3.bf16.msra.mxu1 %v13701_v36  ;;  %v13753_v36 = vld [vmem:[%s14664_s5 + $0x7c8] sm:$0xff]  }
  0xe7   : > { %12398 = vmatprep.subr.bf16.mxu1 %v13704_v39  ;;  %v13755_v39 = vld [vmem:[%s14664_s5 + $0x750] sm:$0xff]  }
  0xe8   : > { %12377 = vmatpush3.bf16.msra.mxu0 %v13703_v38  ;;  %v2339_v38 = vcombine.high %v2335_v35, %v2335_v35 }
  0xe9   : > { %12378 = vmatprep.subr.bf16.mxu0 %v13706_v41  ;;  %v13757_v41 = vld [vmem:[%s14664_s5 + $0x7d0] sm:$0xff]  }
  0xea   : > { %12399 = vmatpush3.bf16.msra.mxu1 %v13705_v40  ;;  %v13754_v40 = vld [vmem:[%s14664_s5 + $0x788] sm:$0xff]  }
  0xeb   : > { %12400 = vmatprep.subr.bf16.mxu1 %v13708_v43  ;;  %v13759_v43 = vld [vmem:[%s14664_s5 + $0x758] sm:$0xff]  }
  0xec   : > { %12379 = vmatpush3.bf16.msra.mxu0 %v13707_v42  ;;  %v13756_v42 = vld [vmem:[%s14664_s5 + $0x710] sm:$0xff]  }
  0xed   : > { %12380 = vmatprep.subr.bf16.mxu0 %v13710_v45  ;;  %v13761_v45 = vld [vmem:[%s14664_s5 + $0x7d8] sm:$0xff]  }
  0xee   : > { %12401 = vmatpush3.bf16.msra.mxu1 %v13709_v44  ;;  %v13758_v44 = vld [vmem:[%s14664_s5 + $0x790] sm:$0xff]  }
  0xef   : > { %12402 = vmatprep.subr.bf16.mxu1 %v13712_v47  ;;  %v13763_v47 = vld [vmem:[%s14664_s5 + $0x760] sm:$0xff]  }
  0xf0   : > { %12381 = vmatpush3.bf16.msra.mxu0 %v13711_v46  ;;  %v13760_v46 = vld [vmem:[%s14664_s5 + $0x718] sm:$0xff]  }
  0xf1   : > { %12410 = vmatprep.subr.bf16.mxu0 %v13715_v50  ;;  %v13764_v50 = vld [vmem:[%s14664_s5 + $0x720] sm:$0xff]  }
  0xf2   : > { %12403 = vmatpush3.bf16.msra.mxu1 %v13714_v48  ;;  %v13762_v48 = vld [vmem:[%s14664_s5 + $0x798] sm:$0xff]  }
  0xf3   : > { %9142 = vmatmul.mubr.bf16.vlgmr.msra.gmra.mrb[20].mxu0 %v2272_v49  ;;  %12432 = vmatprep.subr.bf16.mxu1 %v13717_v52  ;;  %v13765_v49 = vld [vmem:[%s14664_s5 + $0x7e0] sm:$0xff]  }
  0xf4   : > { %12411 = vmatpush3.bf16.msra.mxu0 %v13716_v51  ;;  %9221 = vmatprep.mubr.bf16.mxu0 %v2328_v27  ;;  %v13767_v51 = vld [vmem:[%s14664_s5 + $0x768] sm:$0xff]   ;;  %v13766_v52 = vld [vmem:[%s14664_s5 + $0x7a0] sm:$0xff]   ;;  %v13792_v27 = vld [vmem:[%s14664_s5 + $0x858] sm:$0xff]  }
  0xf5   : > { %9182 = vmatmul.mubr.bf16.vlgmr.msra.gmra.mrb[20].mxu1 %v2288_v54  ;;  %12412 = vmatprep.subr.bf16.mxu0 %v13719_v55  ;;  %v11191_v54 = vld [vmem:[%s197_s10] ss:$0 sm:$0xff]  ;;  %v13768_v55 = vld [vmem:[%s14664_s5 + $0x728] sm:$0xff]  }
  0xf6   : > { %12433 = vmatpush3.bf16.msra.mxu1 %v13718_v53  ;;  %9261 = vmatprep.mubr.bf16.mxu1 %v2338_v32  ;;  %v13769_v53 = vld [vmem:[%s14664_s5 + $0x7e8] sm:$0xff]   ;;  %v13797_v32 = vld [vmem:[%s14664_s5 + $0x820] sm:$0xff]  }
  0xf7   : > { %12434 = vmatprep.subr.bf16.mxu1 %v13721_v57  ;;  %v13771_v57 = vld [vmem:[%s14664_s5 + $0x770] sm:$0xff]  }
  0xf8   : > { %12413 = vmatpush3.bf16.msra.mxu0 %v13720_v56 }
  0xf9   : > { %12414 = vmatprep.subr.bf16.mxu0 %v13723_v59  ;;  %v13770_v59 = vld [vmem:[%s14664_s5 + $0x7a8] sm:$0xff]  }
  0xfa   : > { %12435 = vmatpush3.bf16.msra.mxu1 %v13722_v58 }
  0xfb   : > { %12436 = vmatprep.subr.bf16.mxu1 %v13725_v61 }
  0xfc   : > { %12415 = vmatpush3.bf16.msra.mxu0 %v13724_v60 }
  0xfd   : > { %12416 = vmatprep.subr.bf16.mxu0 %v13727_v63  ;;  %v13772_v63 = vld [vmem:[%s14664_s5 + $0x730] sm:$0xff]  }
  0xfe   : > { %12437 = vmatpush3.bf16.msra.mxu1 %v13726_v62 }
  0xff   : > { %12438 = vmatprep.subr.bf16.mxu1 %v13729_v1 }
 0x100   : > { %12417 = vmatpush3.bf16.msra.mxu0 %v13728_v0  ;;  %v13773_v0 = vld [vmem:[%s14664_s5 + $0x7f0] sm:$0xff]  }
 0x101   : > { %12418 = vmatprep.subr.bf16.mxu0 %v13731_v3  ;;  %v13774_v3 = vld [vmem:[%s14664_s5 + $0x7b0] sm:$0xff]  }
 0x102   : > { %12439 = vmatpush3.bf16.msra.mxu1 %v13730_v2 }
 0x103   : > { %12440 = vmatprep.subr.bf16.mxu1 %v13733_v5 }
 0x104   : > { %12419 = vmatpush3.bf16.msra.mxu0 %v13732_v4 }
 0x105   : > { %12420 = vmatprep.subr.bf16.mxu0 %v13735_v7  ;;  %v13775_v7 = vld [vmem:[%s14664_s5 + $0x778] sm:$0xff]  }
 0x106   : > { %12441 = vmatpush3.bf16.msra.mxu1 %v13734_v6 }
 0x107   : > { %12442 = vmatprep.subr.bf16.mxu1 %v13737_v9  ;;  %v13776_v9 = vld [vmem:[%s14664_s5 + $0x738] sm:$0xff]  }
 0x108   : > { %12421 = vmatpush3.bf16.msra.mxu0 %v13736_v8 }
 0x109   : > { %12422 = vmatprep.subr.bf16.mxu0 %v13739_v11  ;;  %v13777_v11 = vld [vmem:[%s14664_s5 + $0x7f8] sm:$0xff]  }
 0x10a   : > { %12443 = vmatpush3.bf16.msra.mxu1 %v13738_v10 }
 0x10b   : > { %12444 = vmatprep.subr.bf16.mxu1 %v13741_v13  ;;  %v2321_v13 = vrot.slane %v14945_v25, %v14699_v34  ;;  %v13790_v25 = vld [vmem:[%s14664_s5 + $0x8d0] sm:$0xff]  }
 0x10c   : > { %12423 = vmatpush3.bf16.msra.mxu0 %v13740_v12  ;;  %v13779_v12 = vld [vmem:[%s14664_s5 + $0x7b8] sm:$0xff]  }
 0x10d   : > { %12424 = vmatprep.subr.bf16.mxu0 %v13743_v15  ;;  %v13781_v15 = vld [vmem:[%s14664_s5 + $0x800] sm:$0xff]   ;;  %v2337_v18 = vcombine.high %v2321_v13, %v2321_v13 }
 0x10e   : > { %12445 = vmatpush3.bf16.msra.mxu1 %v13742_v14  ;;  %v13780_v14 = vld [vmem:[%s14664_s5 + $0x840] sm:$0xff]  }
 0x10f   : > { %12446 = vmatprep.subr.bf16.mxu1 %v13745_v17  ;;  %v13783_v17 = vld [vmem:[%s14664_s5 + $0x880] sm:$0xff]  }
 0x110   : > { %12425 = vmatpush3.bf16.msra.mxu0 %v13744_v16  ;;  %v13782_v16 = vld [vmem:[%s14664_s5 + $0x8c0] sm:$0xff]  }
 0x111   : > { %12454 = vmatprep.subr.bf16.mxu0 %v13747_v22  ;;  %v13787_v22 = vld [vmem:[%s14664_s5 + $0x888] sm:$0xff]  }
 0x112   : > { %12447 = vmatpush3.bf16.msra.mxu1 %v13746_v20  ;;  %v13785_v20 = vld [vmem:[%s14664_s5 + $0x808] sm:$0xff]  }
 0x113   : > { %12476 = vmatprep.subr.bf16.mxu1 %v13749_v26  ;;  %9222 = vmatmul.mubr.bf16.vlgmr.msra.gmra.mrb[24].mxu0 %v2314_v24  ;;  %v13789_v24 = vld [vmem:[%s14664_s5 + $0x810] sm:$0xff]  }
 0x114   : > { %12455 = vmatpush3.bf16.msra.mxu0 %v13748_v28  ;;  %9301 = vmatprep.mubr.bf16.mxu0 %v2335_v35  ;;  %v13791_v26 = vld [vmem:[%s14664_s5 + $0x890] sm:$0xff]   ;;  %v13793_v28 = vld [vmem:[%s14664_s5 + $0x818] sm:$0xff]   ;;  %v13799_v35 = vld [vmem:[%s14664_s5 + $0x8a0] sm:$0xff]  }
 0x115   : > { %9262 = vmatmul.mubr.bf16.vlgmr.msra.gmra.mrb[24].mxu1 %v2336_v30  ;;  %12456 = vmatprep.subr.bf16.mxu0 %v13751_v31  ;;  %v13795_v30 = vld [vmem:[%s14664_s5 + $0x898] sm:$0xff]   ;;  %v13796_v31 = vld [vmem:[%s14664_s5 + $0x860] sm:$0xff]  }
 0x116   : > { %12477 = vmatpush3.bf16.msra.mxu1 %v13750_v33  ;;  %9341 = vmatprep.mubr.bf16.mxu1 %v2339_v38  ;;  %v13798_v33 = vld [vmem:[%s14664_s5 + $0x8e0] sm:$0xff]   ;;  %v13802_v38 = vld [vmem:[%s14664_s5 + $0x8e8] sm:$0xff]  }
 0x117   : > { %12478 = vmatprep.subr.bf16.mxu1 %v13753_v36  ;;  %v13800_v36 = vld [vmem:[%s14664_s5 + $0x868] sm:$0xff]  }
 0x118   : > { %12457 = vmatpush3.bf16.msra.mxu0 %v13752_v37  ;;  %v13801_v37 = vld [vmem:[%s14664_s5 + $0x828] sm:$0xff]  }
 0x119   : > { %12458 = vmatprep.subr.bf16.mxu0 %v13755_v39  ;;  %v13803_v39 = vld [vmem:[%s14664_s5 + $0x8a8] sm:$0xff]  }
 0x11a   : > { %12479 = vmatpush3.bf16.msra.mxu1 %v13754_v40 }
 0x11b   : > { %12480 = vmatprep.subr.bf16.mxu1 %v13757_v41  ;;  %v13804_v41 = vld [vmem:[%s14664_s5 + $0x870] sm:$0xff]  }
 0x11c   : > { %12459 = vmatpush3.bf16.msra.mxu0 %v13756_v42 }
 0x11d   : > { %12460 = vmatprep.subr.bf16.mxu0 %v13759_v43  ;;  %v13805_v43 = vld [vmem:[%s14664_s5 + $0x830] sm:$0xff]  }
 0x11e   : > { %12481 = vmatpush3.bf16.msra.mxu1 %v13758_v44 }
 0x11f   : > { %12482 = vmatprep.subr.bf16.mxu1 %v13761_v45 }
 0x120   : > { %12461 = vmatpush3.bf16.msra.mxu0 %v13760_v46 }
 0x121   : > { %12462 = vmatprep.subr.bf16.mxu0 %v13763_v47 }
 0x122   : > { %12483 = vmatpush3.bf16.msra.mxu1 %v13762_v48 }
 0x123   : > { %12484 = vmatprep.subr.bf16.mxu1 %v13765_v49  ;;  %v13806_v49 = vld [vmem:[%s14664_s5 + $0x8f0] sm:$0xff]  }
 0x124   : > { %12463 = vmatpush3.bf16.msra.mxu0 %v13764_v50  ;;  %v13807_v50 = vld [vmem:[%s14664_s5 + $0x8b0] sm:$0xff]  }
 0x125   : > { %12464 = vmatprep.subr.bf16.mxu0 %v13767_v51 }
 0x126   : > { %v12162_v56 = vpop.f32.mrb[0].mxu0  ;;  %12485 = vmatpush3.bf16.msra.mxu1 %v13766_v52 }
 0x127   : > { %v12163_v58 = vpop.f32.mrb[1].mxu0  ;;  %12486 = vmatprep.subr.bf16.mxu1 %v13769_v53 }
 0x128   : > { %v12164_v60 = vadd.f32 %v12163_v58, %v12162_v56  ;;  %v12165_v61 = vpop.f32.mrb[2].mxu0  ;;  %v12184_v62 = vpop.f32.mrb[0].mxu1  ;;  %12465 = vmatpush3.bf16.msra.mxu0 %v13768_v55  ;;  %v13809_v56 = vld [vmem:[%s14664_s5 + $0x838] sm:$0xff]  }
 0x129   : > { %v12166_v1 = vpop.f32.mrb[3].mxu0  ;;  %v12185_v2 = vpop.f32.mrb[1].mxu1  ;;  %12466 = vmatprep.subr.bf16.mxu0 %v13771_v57  ;;  %v13810_v58 = vld [vmem:[%s14664_s5 + $0x8f8] sm:$0xff]  }
 0x12a   : > { %v8744_v4 = vadd.f32 %v12164_v60, %v11191_v54  ;;  %v12186_v5 = vadd.f32 %v12185_v2, %v12184_v62  ;;  %v12187_v6 = vpop.f32.mrb[2].mxu1  ;;  %12487 = vmatpush3.bf16.msra.mxu1 %v13770_v59  ;;  %v13808_v54 = vld [vmem:[%s14664_s5 + $0x878] sm:$0xff]   ;;  %v207_v59 = vld [vmem:[%s15934_s0 + $0x20] sm:$0xff] }
 0x12b   : > { %v12188_v8 = vpop.f32.mrb[3].mxu1  ;;  %12488 = vmatprep.subr.bf16.mxu1 %v13773_v0  ;;  %v2347_v60 = vrot.slane %v207_v59, %v14699_v34  ;;  %v13811_v61 = vld [vmem:[%s14664_s5 + $0x8b8] sm:$0xff]   ;;  %v2340_v62 = vcombine.high %v207_v59, %v207_v59  ;;  %v13813_v2 = vld [vmem:[%s14664_s5 + $0x900] sm:$0xff]   ;;  %v13849_v59 = vld [vmem:[%s14664_s5 + $0xa48] sm:$0xff]  }
 0x12c   : > { %v14988_v10 = vadd.f32 %v12186_v5, %v8744_v4  ;;  %12467 = vmatpush3.bf16.msra.mxu0 %v13772_v63  ;;  %v13812_v63 = vld [vmem:[%s14664_s5 + $0x940] sm:$0xff]  }
 0x12d   : > { %12468 = vmatprep.subr.bf16.mxu0 %v13775_v7  ;;  %v2355_v0 = vcombine.high %v2347_v60, %v2347_v60  ;;  %v2363_v1 = vrot.slane %v2347_v60, %v14699_v34  ;;  %v13814_v4 = vld [vmem:[%s14664_s5 + $0x9c0] sm:$0xff]   ;;  %v13850_v60 = vld [vmem:[%s14664_s5 + $0xa08] sm:$0xff]  }
 0x12e   : > { %12489 = vmatpush3.bf16.msra.mxu1 %v13774_v3  ;;  %v15037_v3 = vrot.slane %v2340_v62, %v14699_v34  ;;  %v13815_v6 = vld [vmem:[%s14664_s5 + $0x980] sm:$0xff]   ;;  %v13852_v62 = vld [vmem:[%s14664_s5 + $0xa88] sm:$0xff]  }
 0x12f   : > { %12490 = vmatprep.subr.bf16.mxu1 %v13777_v11  ;;  %v2377_v5 = vrot.slane %v2355_v0, %v14699_v34  ;;  %v2385_v8 = vcombine.high %v2363_v1, %v2363_v1  ;;  %v13817_v11 = vld [vmem:[%s14664_s5 + $0x908] sm:$0xff]   ;;  %v13854_v0 = vld [vmem:[%s14664_s5 + $0xa10] sm:$0xff]  }
 0x130   : > { %12469 = vmatpush3.bf16.msra.mxu0 %v13776_v9  ;;  %v2356_v7 = vcombine.high %v15037_v3, %v15037_v3  ;;  %v13816_v9 = vld [vmem:[%s14664_s5 + $0x948] sm:$0xff]  }
 0x131   : > { %12498 = vmatprep.subr.bf16.mxu0 %v13780_v14  ;;  %v13819_v14 = vld [vmem:[%s14664_s5 + $0x988] sm:$0xff]  }
 0x132   : > { %12491 = vmatpush3.bf16.msra.mxu1 %v13779_v12  ;;  %v2384_v12 = vrot.slane %v2356_v7, %v14699_v34  ;;  %v13861_v7 = vld [vmem:[%s14664_s5 + $0xa60] sm:$0xff]  }
 0x133   : > { %9302 = vmatmul.mubr.bf16.vlgmr.msra.gmra.mrb[28].mxu0 %v2321_v13  ;;  %12520 = vmatprep.subr.bf16.mxu1 %v13782_v16  ;;  %v13818_v13 = vld [vmem:[%s14664_s5 + $0x9c8] sm:$0xff]   ;;  %v13820_v16 = vld [vmem:[%s14664_s5 + $0x950] sm:$0xff]  }
 0x134   : > { %12499 = vmatpush3.bf16.msra.mxu0 %v13781_v15  ;;  %9381 = vmatprep.mubr.bf16.mxu0 %v2377_v5  ;;  %v2388_v15 = vcombine.high %v2384_v12, %v2384_v12 }
 0x135   : > { %9342 = vmatmul.mubr.bf16.vlgmr.msra.gmra.mrb[28].mxu1 %v2337_v18  ;;  %12500 = vmatprep.subr.bf16.mxu0 %v13784_v19  ;;  %v13822_v18 = vld [vmem:[%s14664_s5 + $0x9d0] sm:$0xff]  }
 0x136   : > { %12521 = vmatpush3.bf16.msra.mxu1 %v13783_v17  ;;  %v13821_v17 = vld [vmem:[%s14664_s5 + $0x910] sm:$0xff]  }
 0x137   : > { %12522 = vmatprep.subr.bf16.mxu1 %v13786_v21  ;;  %v13823_v19 = vld [vmem:[%s14664_s5 + $0x990] sm:$0xff]   ;;  %v13825_v21 = vld [vmem:[%s14664_s5 + $0x918] sm:$0xff]  }
 0x138   : > { %12501 = vmatpush3.bf16.msra.mxu0 %v13785_v20  ;;  %v13824_v20 = vld [vmem:[%s14664_s5 + $0x958] sm:$0xff]  }
 0x139   : > { %12502 = vmatprep.subr.bf16.mxu0 %v13788_v23  ;;  %v13827_v23 = vld [vmem:[%s14664_s5 + $0x998] sm:$0xff]  }
 0x13a   : > { %12523 = vmatpush3.bf16.msra.mxu1 %v13787_v22  ;;  %v13826_v22 = vld [vmem:[%s14664_s5 + $0x9d8] sm:$0xff]  }
 0x13b   : > { %12524 = vmatprep.subr.bf16.mxu1 %v13790_v25  ;;  %v13829_v25 = vld [vmem:[%s14664_s5 + $0x920] sm:$0xff]  }
 0x13c   : > { %12503 = vmatpush3.bf16.msra.mxu0 %v13789_v24  ;;  %v13828_v24 = vld [vmem:[%s14664_s5 + $0x960] sm:$0xff]  }
 0x13d   : > { %12504 = vmatprep.subr.bf16.mxu0 %v13792_v27  ;;  %v13831_v27 = vld [vmem:[%s14664_s5 + $0x9a0] sm:$0xff]  }
 0x13e   : > { %12525 = vmatpush3.bf16.msra.mxu1 %v13791_v26  ;;  %v13830_v26 = vld [vmem:[%s14664_s5 + $0x9e0] sm:$0xff]  }
 0x13f   : > { %12526 = vmatprep.subr.bf16.mxu1 %v13794_v29  ;;  %v13833_v29 = vld [vmem:[%s14664_s5 + $0x928] sm:$0xff]  }
 0x140   : > { %12505 = vmatpush3.bf16.msra.mxu0 %v13793_v28  ;;  %v13832_v28 = vld [vmem:[%s14664_s5 + $0x968] sm:$0xff]  }
 0x141   : > { %12506 = vmatprep.subr.bf16.mxu0 %v13796_v31 }
 0x142   : > { %12527 = vmatpush3.bf16.msra.mxu1 %v13795_v30  ;;  %v13834_v30 = vld [vmem:[%s14664_s5 + $0x9e8] sm:$0xff]  }
 0x143   : > { %12528 = vmatprep.subr.bf16.mxu1 %v13798_v33 }
 0x144   : > { %12507 = vmatpush3.bf16.msra.mxu0 %v13797_v32  ;;  %v13835_v32 = vld [vmem:[%s14664_s5 + $0x9a8] sm:$0xff]  }
 0x145   : > { %12508 = vmatprep.subr.bf16.mxu0 %v13800_v36 }
 0x146   : > { %v12206_v40 = vpop.f32.mrb[4].mxu0  ;;  %12529 = vmatpush3.bf16.msra.mxu1 %v13799_v35  ;;  %v13836_v35 = vld [vmem:[%s14664_s5 + $0x970] sm:$0xff]  }
 0x147   : > { %v12207_v42 = vpop.f32.mrb[5].mxu0  ;;  %12530 = vmatprep.subr.bf16.mxu1 %v13802_v38 }
 0x148   : > { %v12208_v44 = vadd.f32 %v12207_v42, %v12206_v40  ;;  %v12209_v45 = vpop.f32.mrb[6].mxu0  ;;  %v12228_v46 = vpop.f32.mrb[4].mxu1  ;;  %12509 = vmatpush3.bf16.msra.mxu0 %v13801_v37  ;;  %v13838_v40 = vld [vmem:[%s14664_s5 + $0x9f0] sm:$0xff]  }
 0x149   : > { %v12210_v47 = vpop.f32.mrb[7].mxu0  ;;  %v12229_v48 = vpop.f32.mrb[5].mxu1  ;;  %12510 = vmatprep.subr.bf16.mxu0 %v13804_v41 }
 0x14a   : > { %v8824_v51 = vadd.f32 %v12208_v44, %v14988_v10  ;;  %v12230_v52 = vadd.f32 %v12229_v48, %v12228_v46  ;;  %v12231_v53 = vpop.f32.mrb[6].mxu1  ;;  %12531 = vmatpush3.bf16.msra.mxu1 %v13803_v39  ;;  %v2387_v10 = vcombine.high %v2377_v5, %v2377_v5  ;;  %v13837_v39 = vld [vmem:[%s14664_s5 + $0x930] sm:$0xff]   ;;  %v13840_v48 = vld [vmem:[%s14664_s5 + $0x978] sm:$0xff]  }
 0x14b   : > { %v12232_v55 = vpop.f32.mrb[7].mxu1  ;;  %12532 = vmatprep.subr.bf16.mxu1 %v13806_v49  ;;  %v13839_v46 = vld [vmem:[%s14664_s5 + $0x9b0] sm:$0xff]   ;;  %v2370_v53 = vrot.slane %v15037_v3, %v14699_v34  ;;  %v13857_v3 = vld [vmem:[%s14664_s5 + $0xa58] sm:$0xff]  }
 0x14c   : > { %v15025_v57 = vadd.f32 %v12230_v52, %v8824_v51  ;;  %12511 = vmatpush3.bf16.msra.mxu0 %v13805_v43  ;;  %9421 = vmatprep.mubr.bf16.mxu1 %v2387_v10  ;;  %v13842_v51 = vld [vmem:[%s14664_s5 + $0x9f8] sm:$0xff]   ;;  %v13846_v55 = vld [vmem:[%s14664_s5 + $0xa00] sm:$0xff]  }
 0x14d   : > { %12512 = vmatprep.subr.bf16.mxu0 %v13808_v54  ;;  %v13844_v52 = vld [vmem:[%s14664_s5 + $0x9b8] sm:$0xff]   ;;  %v13845_v54 = vld [vmem:[%s14664_s5 + $0xa40] sm:$0xff]  }
 0x14e   : > { %12533 = vmatpush3.bf16.msra.mxu1 %v13807_v50  ;;  %v13841_v50 = vld [vmem:[%s14664_s5 + $0x938] sm:$0xff]   ;;  %v13864_v10 = vld [vmem:[%s14664_s5 + $0xaa0] sm:$0xff]  }
 0x14f   : > { %12534 = vmatprep.subr.bf16.mxu1 %v13810_v58  ;;  %v2386_v58 = vcombine.high %v2370_v53, %v2370_v53  ;;  %v13859_v5 = vld [vmem:[%s14664_s5 + $0xad8] sm:$0xff]  }
 0x150   : > { %12513 = vmatpush3.bf16.msra.mxu0 %v13809_v56  ;;  %v13847_v56 = vld [vmem:[%s14664_s5 + $0xac0] sm:$0xff]  }
 0x151   : > { %12542 = vmatprep.subr.bf16.mxu0 %v13812_v63  ;;  %v13853_v63 = vld [vmem:[%s14664_s5 + $0xa50] sm:$0xff]  }
 0x152   : > { %12535 = vmatpush3.bf16.msra.mxu1 %v13811_v61  ;;  %v13851_v61 = vld [vmem:[%s14664_s5 + $0xac8] sm:$0xff]  }
 0x153   : > { %12564 = vmatprep.subr.bf16.mxu1 %v13814_v4  ;;  %9382 = vmatmul.mubr.bf16.vlgmr.msra.gmra.mrb[32].mxu0 %v2363_v1  ;;  %v13855_v1 = vld [vmem:[%s14664_s5 + $0xad0] sm:$0xff]   ;;  %v13858_v4 = vld [vmem:[%s14664_s5 + $0xa18] sm:$0xff]  }
 0x154   : > { %12543 = vmatpush3.bf16.msra.mxu0 %v13813_v2  ;;  %9461 = vmatprep.mubr.bf16.mxu0 %v2384_v12  ;;  %v13856_v2 = vld [vmem:[%s14664_s5 + $0xa90] sm:$0xff]   ;;  %v13866_v12 = vld [vmem:[%s14664_s5 + $0xa28] sm:$0xff]  }
 0x155   : > { %9422 = vmatmul.mubr.bf16.vlgmr.msra.gmra.mrb[32].mxu1 %v2385_v8  ;;  %12544 = vmatprep.subr.bf16.mxu0 %v13816_v9  ;;  %v13862_v8 = vld [vmem:[%s14664_s5 + $0xa20] sm:$0xff]  }
 0x156   : > { %12565 = vmatpush3.bf16.msra.mxu1 %v13815_v6  ;;  %9501 = vmatprep.mubr.bf16.mxu1 %v2388_v15  ;;  %v13860_v6 = vld [vmem:[%s14664_s5 + $0xa98] sm:$0xff]   ;;  %v13863_v9 = vld [vmem:[%s14664_s5 + $0xae0] sm:$0xff]   ;;  %v13868_v15 = vld [vmem:[%s14664_s5 + $0xaa8] sm:$0xff]  }
 0x157   : > { %12566 = vmatprep.subr.bf16.mxu1 %v13818_v13  ;;  %v13867_v13 = vld [vmem:[%s14664_s5 + $0xae8] sm:$0xff]  }
 0x158   : > { %12545 = vmatpush3.bf16.msra.mxu0 %v13817_v11  ;;  %v13865_v11 = vld [vmem:[%s14664_s5 + $0xa68] sm:$0xff]  }
 0x159   : > { %12546 = vmatprep.subr.bf16.mxu0 %v13820_v16 }
 0x15a   : > { %12567 = vmatpush3.bf16.msra.mxu1 %v13819_v14 }
 0x15b   : > { %12568 = vmatprep.subr.bf16.mxu1 %v13822_v18 }
 0x15c   : > { %12547 = vmatpush3.bf16.msra.mxu0 %v13821_v17  ;;  %v13869_v17 = vld [vmem:[%s14664_s5 + $0xa70] sm:$0xff]  }
 0x15d   : > { %12548 = vmatprep.subr.bf16.mxu0 %v13824_v20 }
 0x15e   : > { %12569 = vmatpush3.bf16.msra.mxu1 %v13823_v19 }
 0x15f   : > { %12570 = vmatprep.subr.bf16.mxu1 %v13826_v22 }
 0x160   : > { %12549 = vmatpush3.bf16.msra.mxu0 %v13825_v21 }
 0x161   : > { %12550 = vmatprep.subr.bf16.mxu0 %v13828_v24  ;;  %v13871_v24 = vld [vmem:[%s14664_s5 + $0xaf0] sm:$0xff]  }
 0x162   : > { %12571 = vmatpush3.bf16.msra.mxu1 %v13827_v23  ;;  %v13870_v23 = vld [vmem:[%s14664_s5 + $0xa30] sm:$0xff]  }
 0x163   : > { %12572 = vmatprep.subr.bf16.mxu1 %v13830_v26 }
 0x164   : > { %12551 = vmatpush3.bf16.msra.mxu0 %v13829_v25 }
 0x165   : > { %12552 = vmatprep.subr.bf16.mxu0 %v13832_v28  ;;  %v13872_v28 = vld [vmem:[%s14664_s5 + $0xab0] sm:$0xff]  }
 0x166   : > { %v12250_v31 = vpop.f32.mrb[8].mxu0  ;;  %12573 = vmatpush3.bf16.msra.mxu1 %v13831_v27 }
 0x167   : > { %v12251_v33 = vpop.f32.mrb[9].mxu0  ;;  %12574 = vmatprep.subr.bf16.mxu1 %v13834_v30  ;;  %v13873_v30 = vld [vmem:[%s14664_s5 + $0xa78] sm:$0xff]  }
 0x168   : > { %v12252_v36 = vadd.f32 %v12251_v33, %v12250_v31  ;;  %v12253_v37 = vpop.f32.mrb[10].mxu0  ;;  %v12272_v38 = vpop.f32.mrb[8].mxu1  ;;  %12553 = vmatpush3.bf16.msra.mxu0 %v13833_v29  ;;  %v13875_v33 = vld [vmem:[%s14664_s5 + $0xaf8] sm:$0xff]  }
 0x169   : > { %v12254_v41 = vpop.f32.mrb[11].mxu0  ;;  %v12273_v42 = vpop.f32.mrb[9].mxu1  ;;  %12554 = vmatprep.subr.bf16.mxu0 %v13836_v35  ;;  %v208_v35 = vld [vmem:[%s15934_s0 + $0x28] sm:$0xff]  ;;  %v13876_v37 = vld [vmem:[%s14664_s5 + $0xab8] sm:$0xff]  }
 0x16a   : > { %v8904_v43 = vadd.f32 %v12252_v36, %v15025_v57  ;;  %v12274_v44 = vadd.f32 %v12273_v42, %v12272_v38  ;;  %v12275_v45 = vpop.f32.mrb[10].mxu1  ;;  %12575 = vmatpush3.bf16.msra.mxu1 %v13835_v32  ;;  %v13848_v57 = vld [vmem:[%s14664_s5 + $0xa80] sm:$0xff]   ;;  %v13874_v32 = vld [vmem:[%s14664_s5 + $0xa38] sm:$0xff]   ;;  %v2396_v36 = vrot.slane %v208_v35, %v14699_v34  ;;  %v2389_v38 = vcombine.high %v208_v35, %v208_v35  ;;  %v13914_v35 = vld [vmem:[%s14664_s5 + $0xc48] sm:$0xff]  }
 0x16b   : > { %v12276_v47 = vpop.f32.mrb[11].mxu1  ;;  %12576 = vmatprep.subr.bf16.mxu1 %v13838_v40  ;;  %v13878_v45 = vld [vmem:[%s14664_s5 + $0xb00] sm:$0xff]  }
 0x16c   : > { %v15071_v49 = vadd.f32 %v12274_v44, %v8904_v43  ;;  %12555 = vmatpush3.bf16.msra.mxu0 %v13837_v39  ;;  %v13877_v39 = vld [vmem:[%s14664_s5 + $0xb40] sm:$0xff]   ;;  %v2404_v40 = vcombine.high %v2396_v36, %v2396_v36  ;;  %v2412_v41 = vrot.slane %v2396_v36, %v14699_v34  ;;  %v15120_v42 = vrot.slane %v2389_v38, %v14699_v34  ;;  %v13915_v36 = vld [vmem:[%s14664_s5 + $0xc08] sm:$0xff]  }
 0x16d   : > { %12556 = vmatprep.subr.bf16.mxu0 %v13840_v48  ;;  %v13879_v43 = vld [vmem:[%s14664_s5 + $0xbc0] sm:$0xff]   ;;  %v13881_v48 = vld [vmem:[%s14664_s5 + $0xb48] sm:$0xff]  }
 0x16e   : > { %12577 = vmatpush3.bf16.msra.mxu1 %v13839_v46  ;;  %v2426_v44 = vrot.slane %v2404_v40, %v14699_v34  ;;  %v2405_v46 = vcombine.high %v15120_v42, %v15120_v42  ;;  %v2434_v47 = vcombine.high %v2412_v41, %v2412_v41  ;;  %v13917_v38 = vld [vmem:[%s14664_s5 + $0xc88] sm:$0xff]   ;;  %v13919_v40 = vld [vmem:[%s14664_s5 + $0xc10] sm:$0xff]  }
 0x16f   : > { %12578 = vmatprep.subr.bf16.mxu1 %v13842_v51 }
 0x170   : > { %12557 = vmatpush3.bf16.msra.mxu0 %v13841_v50  ;;  %v13880_v50 = vld [vmem:[%s14664_s5 + $0xb80] sm:$0xff]   ;;  %v2433_v51 = vrot.slane %v2405_v46, %v14699_v34  ;;  %v13925_v46 = vld [vmem:[%s14664_s5 + $0xc98] sm:$0xff]  }
 0x171   : > { %12586 = vmatprep.subr.bf16.mxu0 %v13845_v54 }
 0x172   : > { %12579 = vmatpush3.bf16.msra.mxu1 %v13844_v52  ;;  %v13883_v52 = vld [vmem:[%s14664_s5 + $0xbc8] sm:$0xff]   ;;  %v2437_v54 = vcombine.high %v2433_v51, %v2433_v51 }
 0x173   : > { %9462 = vmatmul.mubr.bf16.vlgmr.msra.gmra.mrb[36].mxu0 %v2370_v53  ;;  %12608 = vmatprep.subr.bf16.mxu1 %v13847_v56  ;;  %v13882_v53 = vld [vmem:[%s14664_s5 + $0xb08] sm:$0xff]  }
 0x174   : > { %12587 = vmatpush3.bf16.msra.mxu0 %v13846_v55  ;;  %9541 = vmatprep.mubr.bf16.mxu0 %v2426_v44  ;;  %v13885_v55 = vld [vmem:[%s14664_s5 + $0xb50] sm:$0xff]   ;;  %v13884_v56 = vld [vmem:[%s14664_s5 + $0xb88] sm:$0xff]  }
 0x175   : > { %9502 = vmatmul.mubr.bf16.vlgmr.msra.gmra.mrb[36].mxu1 %v2386_v58  ;;  %12588 = vmatprep.subr.bf16.mxu0 %v13849_v59  ;;  %v13886_v58 = vld [vmem:[%s14664_s5 + $0xb10] sm:$0xff]   ;;  %v13889_v59 = vld [vmem:[%s14664_s5 + $0xb58] sm:$0xff]  }
 0x176   : > { %12609 = vmatpush3.bf16.msra.mxu1 %v13848_v57  ;;  %v13887_v57 = vld [vmem:[%s14664_s5 + $0xbd0] sm:$0xff]  }
 0x177   : > { %12610 = vmatprep.subr.bf16.mxu1 %v13851_v61  ;;  %v13891_v61 = vld [vmem:[%s14664_s5 + $0xbd8] sm:$0xff]  }
 0x178   : > { %12589 = vmatpush3.bf16.msra.mxu0 %v13850_v60  ;;  %v13888_v60 = vld [vmem:[%s14664_s5 + $0xb90] sm:$0xff]  }
 0x179   : > { %12590 = vmatprep.subr.bf16.mxu0 %v13853_v63  ;;  %v13893_v63 = vld [vmem:[%s14664_s5 + $0xb60] sm:$0xff]  }
 0x17a   : > { %12611 = vmatpush3.bf16.msra.mxu1 %v13852_v62  ;;  %v13890_v62 = vld [vmem:[%s14664_s5 + $0xb18] sm:$0xff]  }
 0x17b   : > { %12612 = vmatprep.subr.bf16.mxu1 %v13855_v1  ;;  %v13895_v1 = vld [vmem:[%s14664_s5 + $0xbe0] sm:$0xff]  }
 0x17c   : > { %12591 = vmatpush3.bf16.msra.mxu0 %v13854_v0  ;;  %v13892_v0 = vld [vmem:[%s14664_s5 + $0xb98] sm:$0xff]  }
 0x17d   : > { %12592 = vmatprep.subr.bf16.mxu0 %v13857_v3  ;;  %v13897_v3 = vld [vmem:[%s14664_s5 + $0xb68] sm:$0xff]  }
 0x17e   : > { %12613 = vmatpush3.bf16.msra.mxu1 %v13856_v2  ;;  %v13894_v2 = vld [vmem:[%s14664_s5 + $0xb20] sm:$0xff]  }
 0x17f   : > { %12614 = vmatprep.subr.bf16.mxu1 %v13859_v5 }
 0x180   : > { %12593 = vmatpush3.bf16.msra.mxu0 %v13858_v4  ;;  %v13896_v4 = vld [vmem:[%s14664_s5 + $0xba0] sm:$0xff]  }
 0x181   : > { %12594 = vmatprep.subr.bf16.mxu0 %v13861_v7 }
 0x182   : > { %12615 = vmatpush3.bf16.msra.mxu1 %v13860_v6  ;;  %v13899_v6 = vld [vmem:[%s14664_s5 + $0xbe8] sm:$0xff]  }
 0x183   : > { %12616 = vmatprep.subr.bf16.mxu1 %v13863_v9 }
 0x184   : > { %12595 = vmatpush3.bf16.msra.mxu0 %v13862_v8  ;;  %v13898_v8 = vld [vmem:[%s14664_s5 + $0xb28] sm:$0xff]  }
 0x185   : > { %12596 = vmatprep.subr.bf16.mxu0 %v13865_v11 }
 0x186   : > { %v12294_v14 = vpop.f32.mrb[12].mxu0  ;;  %12617 = vmatpush3.bf16.msra.mxu1 %v13864_v10 }
 0x187   : > { %v12295_v16 = vpop.f32.mrb[13].mxu0  ;;  %12618 = vmatprep.subr.bf16.mxu1 %v13867_v13  ;;  %v13901_v13 = vld [vmem:[%s14664_s5 + $0xb70] sm:$0xff]  }
 0x188   : > { %v12296_v18 = vadd.f32 %v12295_v16, %v12294_v14  ;;  %v12297_v19 = vpop.f32.mrb[14].mxu0  ;;  %v12316_v20 = vpop.f32.mrb[12].mxu1  ;;  %12597 = vmatpush3.bf16.msra.mxu0 %v13866_v12  ;;  %v13900_v12 = vld [vmem:[%s14664_s5 + $0xba8] sm:$0xff]   ;;  %v13902_v16 = vld [vmem:[%s14664_s5 + $0xb30] sm:$0xff]  }
 0x189   : > { %v12298_v21 = vpop.f32.mrb[15].mxu0  ;;  %v12317_v22 = vpop.f32.mrb[13].mxu1  ;;  %12598 = vmatprep.subr.bf16.mxu0 %v13869_v17 }
 0x18a   : > { %v8984_v25 = vadd.f32 %v12296_v18, %v15071_v49  ;;  %v12318_v26 = vadd.f32 %v12317_v22, %v12316_v20  ;;  %v12319_v27 = vpop.f32.mrb[14].mxu1  ;;  %12619 = vmatpush3.bf16.msra.mxu1 %v13868_v15  ;;  %v2436_v49 = vcombine.high %v2426_v44, %v2426_v44  ;;  %v13903_v20 = vld [vmem:[%s14664_s5 + $0xbf0] sm:$0xff]   ;;  %v13923_v44 = vld [vmem:[%s14664_s5 + $0xc18] sm:$0xff]  }
 0x18b   : > { %v12320_v29 = vpop.f32.mrb[15].mxu1  ;;  %12620 = vmatprep.subr.bf16.mxu1 %v13871_v24  ;;  %v13904_v22 = vld [vmem:[%s14664_s5 + $0xbb0] sm:$0xff]   ;;  %v13905_v24 = vld [vmem:[%s14664_s5 + $0xb78] sm:$0xff]  }
 0x18c   : > { %v15108_v31 = vadd.f32 %v12318_v26, %v8984_v25  ;;  %12599 = vmatpush3.bf16.msra.mxu0 %v13870_v23  ;;  %9581 = vmatprep.mubr.bf16.mxu1 %v2436_v49  ;;  %v13906_v25 = vld [vmem:[%s14664_s5 + $0xb38] sm:$0xff]   ;;  %v13910_v29 = vld [vmem:[%s14664_s5 + $0xc40] sm:$0xff]  }
 0x18d   : > { %12600 = vmatprep.subr.bf16.mxu0 %v13873_v30  ;;  %v13907_v26 = vld [vmem:[%s14664_s5 + $0xbf8] sm:$0xff]   ;;  %v13911_v30 = vld [vmem:[%s14664_s5 + $0xc00] sm:$0xff]  }
 0x18e   : > { %12621 = vmatpush3.bf16.msra.mxu1 %v13872_v28  ;;  %v13909_v27 = vld [vmem:[%s14664_s5 + $0xbb8] sm:$0xff]   ;;  %v2419_v28 = vrot.slane %v15120_v42, %v14699_v34  ;;  %v13921_v42 = vld [vmem:[%s14664_s5 + $0xc90] sm:$0xff]   ;;  %v13928_v49 = vld [vmem:[%s14664_s5 + $0xce0] sm:$0xff]  }
 0x18f   : > { %12622 = vmatprep.subr.bf16.mxu1 %v13875_v33 }
 0x190   : > { %12601 = vmatpush3.bf16.msra.mxu0 %v13874_v32  ;;  %v13913_v32 = vld [vmem:[%s14664_s5 + $0xc80] sm:$0xff]   ;;  %v2435_v33 = vcombine.high %v2419_v28, %v2419_v28 }
 0x191   : > { %12630 = vmatprep.subr.bf16.mxu0 %v13877_v39  ;;  %v13918_v39 = vld [vmem:[%s14664_s5 + $0xc50] sm:$0xff]  }
 0x192   : > { %12623 = vmatpush3.bf16.msra.mxu1 %v13876_v37  ;;  %v13916_v37 = vld [vmem:[%s14664_s5 + $0xcc8] sm:$0xff]  }
 0x193   : > { %12652 = vmatprep.subr.bf16.mxu1 %v13879_v43  ;;  %9542 = vmatmul.mubr.bf16.vlgmr.msra.gmra.mrb[40].mxu0 %v2412_v41  ;;  %v13920_v41 = vld [vmem:[%s14664_s5 + $0xcd0] sm:$0xff]   ;;  %v13922_v43 = vld [vmem:[%s14664_s5 + $0xc58] sm:$0xff]  }
 0x194   : > { %12631 = vmatpush3.bf16.msra.mxu0 %v13878_v45  ;;  %9621 = vmatprep.mubr.bf16.mxu0 %v2433_v51  ;;  %v13924_v45 = vld [vmem:[%s14664_s5 + $0xcd8] sm:$0xff]   ;;  %v13930_v51 = vld [vmem:[%s14664_s5 + $0xc68] sm:$0xff]  }
 0x195   : > { %9582 = vmatmul.mubr.bf16.vlgmr.msra.gmra.mrb[40].mxu1 %v2434_v47  ;;  %12632 = vmatprep.subr.bf16.mxu0 %v13881_v48  ;;  %v13926_v47 = vld [vmem:[%s14664_s5 + $0xc60] sm:$0xff]  }
 0x196   : > { %12653 = vmatpush3.bf16.msra.mxu1 %v13880_v50  ;;  %9661 = vmatprep.mubr.bf16.mxu1 %v2437_v54  ;;  %v13927_v48 = vld [vmem:[%s14664_s5 + $0xc20] sm:$0xff]   ;;  %v13932_v54 = vld [vmem:[%s14664_s5 + $0xce8] sm:$0xff]  }
 0x197   : > { %12654 = vmatprep.subr.bf16.mxu1 %v13883_v52  ;;  %v13929_v50 = vld [vmem:[%s14664_s5 + $0xca0] sm:$0xff]   ;;  %v13931_v52 = vld [vmem:[%s14664_s5 + $0xc28] sm:$0xff]  }
 0x198   : > { %12633 = vmatpush3.bf16.msra.mxu0 %v13882_v53 }
 0x199   : > { %12634 = vmatprep.subr.bf16.mxu0 %v13885_v55 }
 0x19a   : > { %12655 = vmatpush3.bf16.msra.mxu1 %v13884_v56  ;;  %v13933_v56 = vld [vmem:[%s14664_s5 + $0xca8] sm:$0xff]  }
 0x19b   : > { %12656 = vmatprep.subr.bf16.mxu1 %v13887_v57 }
 0x19c   : > { %12635 = vmatpush3.bf16.msra.mxu0 %v13886_v58 }
 0x19d   : > { %12636 = vmatprep.subr.bf16.mxu0 %v13889_v59 }
 0x19e   : > { %12657 = vmatpush3.bf16.msra.mxu1 %v13888_v60 }
 0x19f   : > { %12658 = vmatprep.subr.bf16.mxu1 %v13891_v61 }
 0x1a0   : > { %12637 = vmatpush3.bf16.msra.mxu0 %v13890_v62  ;;  %v13934_v62 = vld [vmem:[%s14664_s5 + $0xc70] sm:$0xff]  }
 0x1a1   : > { %12638 = vmatprep.subr.bf16.mxu0 %v13893_v63  ;;  %v13935_v63 = vld [vmem:[%s14664_s5 + $0xc30] sm:$0xff]  }
 0x1a2   : > { %12659 = vmatpush3.bf16.msra.mxu1 %v13892_v0 }
 0x1a3   : > { %12660 = vmatprep.subr.bf16.mxu1 %v13895_v1 }
 0x1a4   : > { %12639 = vmatpush3.bf16.msra.mxu0 %v13894_v2 }
 0x1a5   : > { %12640 = vmatprep.subr.bf16.mxu0 %v13897_v3  ;;  %v13936_v3 = vld [vmem:[%s14664_s5 + $0xcf0] sm:$0xff]  }
 0x1a6   : > { %v12338_v5 = vpop.f32.mrb[16].mxu0  ;;  %12661 = vmatpush3.bf16.msra.mxu1 %v13896_v4 }
 0x1a7   : > { %v12339_v7 = vpop.f32.mrb[17].mxu0  ;;  %12662 = vmatprep.subr.bf16.mxu1 %v13899_v6 }
 0x1a8   : > { %v12340_v9 = vadd.f32 %v12339_v7, %v12338_v5  ;;  %v12341_v10 = vpop.f32.mrb[18].mxu0  ;;  %v12360_v11 = vpop.f32.mrb[16].mxu1  ;;  %12641 = vmatpush3.bf16.msra.mxu0 %v13898_v8  ;;  %v13937_v5 = vld [vmem:[%s14664_s5 + $0xcb0] sm:$0xff]   ;;  %v13938_v7 = vld [vmem:[%s14664_s5 + $0xc78] sm:$0xff]  }
 0x1a9   : > { %v12342_v14 = vpop.f32.mrb[19].mxu0  ;;  %v12361_v15 = vpop.f32.mrb[17].mxu1  ;;  %12642 = vmatprep.subr.bf16.mxu0 %v13901_v13  ;;  %v13939_v8 = vld [vmem:[%s14664_s5 + $0xc38] sm:$0xff]   ;;  %v209_v10 = vld [vmem:[%s15934_s0 + $0x30] sm:$0xff] }
 0x1aa   : > { %v9064_v17 = vadd.f32 %v12340_v9, %v15108_v31  ;;  %v12362_v18 = vadd.f32 %v12361_v15, %v12360_v11  ;;  %v12363_v19 = vpop.f32.mrb[18].mxu1  ;;  %12663 = vmatpush3.bf16.msra.mxu1 %v13900_v12  ;;  %v13912_v31 = vld [vmem:[%s14664_s5 + $0xcc0] sm:$0xff]   ;;  %v13940_v9 = vld [vmem:[%s14664_s5 + $0xcf8] sm:$0xff]   ;;  %v2445_v11 = vrot.slane %v209_v10, %v14699_v34  ;;  %v2438_v13 = vcombine.high %v209_v10, %v209_v10  ;;  %v13979_v10 = vld [vmem:[%s14664_s5 + $0xe48] sm:$0xff]  }
 0x1ab   : > { %v12364_v21 = vpop.f32.mrb[19].mxu1  ;;  %12664 = vmatprep.subr.bf16.mxu1 %v13903_v20  ;;  %v13941_v12 = vld [vmem:[%s14664_s5 + $0xcb8] sm:$0xff]   ;;  %v13942_v14 = vld [vmem:[%s14664_s5 + $0xd40] sm:$0xff]  }
 0x1ac   : > { %v15154_v23 = vadd.f32 %v12362_v18, %v9064_v17  ;;  %12643 = vmatpush3.bf16.msra.mxu0 %v13902_v16  ;;  %v2453_v15 = vcombine.high %v2445_v11, %v2445_v11  ;;  %v2461_v16 = vrot.slane %v2445_v11, %v14699_v34  ;;  %v15204_v17 = vrot.slane %v2438_v13, %v14699_v34  ;;  %v13944_v18 = vld [vmem:[%s14664_s5 + $0xdc0] sm:$0xff]   ;;  %v13980_v11 = vld [vmem:[%s14664_s5 + $0xe08] sm:$0xff]  }
 0x1ad   : > { %12644 = vmatprep.subr.bf16.mxu0 %v13905_v24  ;;  %v13943_v20 = vld [vmem:[%s14664_s5 + $0xd00] sm:$0xff]   ;;  %v13982_v13 = vld [vmem:[%s14664_s5 + $0xe88] sm:$0xff]  }
 0x1ae   : > { %12665 = vmatpush3.bf16.msra.mxu1 %v13904_v22  ;;  %v2475_v19 = vrot.slane %v2453_v15, %v14699_v34  ;;  %v2454_v21 = vcombine.high %v15204_v17, %v15204_v17  ;;  %v2483_v22 = vcombine.high %v2461_v16, %v2461_v16  ;;  %v13984_v15 = vld [vmem:[%s14664_s5 + $0xe10] sm:$0xff]  }
 0x1af   : > { %12666 = vmatprep.subr.bf16.mxu1 %v13907_v26 }
 0x1b0   : > { %12645 = vmatpush3.bf16.msra.mxu0 %v13906_v25  ;;  %v2485_v24 = vcombine.high %v2475_v19, %v2475_v19  ;;  %v13945_v25 = vld [vmem:[%s14664_s5 + $0xd80] sm:$0xff]   ;;  %v2482_v26 = vrot.slane %v2454_v21, %v14699_v34  ;;  %v13990_v21 = vld [vmem:[%s14664_s5 + $0xe98] sm:$0xff]  }
 0x1b1   : > { %12674 = vmatprep.subr.bf16.mxu0 %v13910_v29 }
 0x1b2   : > { %12667 = vmatpush3.bf16.msra.mxu1 %v13909_v27  ;;  %v13948_v27 = vld [vmem:[%s14664_s5 + $0xdc8] sm:$0xff]   ;;  %v2486_v29 = vcombine.high %v2482_v26, %v2482_v26 }
 0x1b3   : > { %9622 = vmatmul.mubr.bf16.vlgmr.msra.gmra.mrb[44].mxu0 %v2419_v28  ;;  %12696 = vmatprep.subr.bf16.mxu1 %v13912_v31  ;;  %v13947_v28 = vld [vmem:[%s14664_s5 + $0xd08] sm:$0xff]  }
 0x1b4   : > { %12675 = vmatpush3.bf16.msra.mxu0 %v13911_v30  ;;  %9701 = vmatprep.mubr.bf16.mxu0 %v2475_v19  ;;  %v13950_v30 = vld [vmem:[%s14664_s5 + $0xd50] sm:$0xff]   ;;  %v13949_v31 = vld [vmem:[%s14664_s5 + $0xd88] sm:$0xff]   ;;  %v13988_v19 = vld [vmem:[%s14664_s5 + $0xe18] sm:$0xff]  }
 0x1b5   : > { %9662 = vmatmul.mubr.bf16.vlgmr.msra.gmra.mrb[44].mxu1 %v2435_v33  ;;  %12676 = vmatprep.subr.bf16.mxu0 %v13914_v35  ;;  %v13951_v33 = vld [vmem:[%s14664_s5 + $0xd10] sm:$0xff]   ;;  %v13954_v35 = vld [vmem:[%s14664_s5 + $0xd58] sm:$0xff]  }
 0x1b6   : > { %12697 = vmatpush3.bf16.msra.mxu1 %v13913_v32  ;;  %9741 = vmatprep.mubr.bf16.mxu1 %v2485_v24  ;;  %v13952_v32 = vld [vmem:[%s14664_s5 + $0xdd0] sm:$0xff]   ;;  %v13993_v24 = vld [vmem:[%s14664_s5 + $0xee0] sm:$0xff]  }
 0x1b7   : > { %12698 = vmatprep.subr.bf16.mxu1 %v13916_v37  ;;  %v13956_v37 = vld [vmem:[%s14664_s5 + $0xdd8] sm:$0xff]  }
 0x1b8   : > { %12677 = vmatpush3.bf16.msra.mxu0 %v13915_v36  ;;  %v13953_v36 = vld [vmem:[%s14664_s5 + $0xd90] sm:$0xff]  }
 0x1b9   : > { %12678 = vmatprep.subr.bf16.mxu0 %v13918_v39  ;;  %v13958_v39 = vld [vmem:[%s14664_s5 + $0xd60] sm:$0xff]  }
 0x1ba   : > { %12699 = vmatpush3.bf16.msra.mxu1 %v13917_v38  ;;  %v13955_v38 = vld [vmem:[%s14664_s5 + $0xd18] sm:$0xff]  }
 0x1bb   : > { %12700 = vmatprep.subr.bf16.mxu1 %v13920_v41  ;;  %v13960_v41 = vld [vmem:[%s14664_s5 + $0xde0] sm:$0xff]  }
 0x1bc   : > { %12679 = vmatpush3.bf16.msra.mxu0 %v13919_v40  ;;  %v13957_v40 = vld [vmem:[%s14664_s5 + $0xd98] sm:$0xff]  }
 0x1bd   : > { %12680 = vmatprep.subr.bf16.mxu0 %v13922_v43  ;;  %v13962_v43 = vld [vmem:[%s14664_s5 + $0xd68] sm:$0xff]  }
 0x1be   : > { %12701 = vmatpush3.bf16.msra.mxu1 %v13921_v42  ;;  %v13959_v42 = vld [vmem:[%s14664_s5 + $0xd20] sm:$0xff]  }
 0x1bf   : > { %12702 = vmatprep.subr.bf16.mxu1 %v13924_v45 }
 0x1c0   : > { %12681 = vmatpush3.bf16.msra.mxu0 %v13923_v44  ;;  %v13961_v44 = vld [vmem:[%s14664_s5 + $0xda0] sm:$0xff]  }
 0x1c1   : > { %12682 = vmatprep.subr.bf16.mxu0 %v13926_v47 }
 0x1c2   : > { %12703 = vmatpush3.bf16.msra.mxu1 %v13925_v46  ;;  %v13964_v46 = vld [vmem:[%s14664_s5 + $0xde8] sm:$0xff]  }
 0x1c3   : > { %12704 = vmatprep.subr.bf16.mxu1 %v13928_v49 }
 0x1c4   : > { %12683 = vmatpush3.bf16.msra.mxu0 %v13927_v48  ;;  %v13963_v48 = vld [vmem:[%s14664_s5 + $0xd28] sm:$0xff]  }
 0x1c5   : > { %12684 = vmatprep.subr.bf16.mxu0 %v13930_v51 }
 0x1c6   : > { %v12382_v53 = vpop.f32.mrb[20].mxu0  ;;  %12705 = vmatpush3.bf16.msra.mxu1 %v13929_v50 }
 0x1c7   : > { %v12383_v55 = vpop.f32.mrb[21].mxu0  ;;  %12706 = vmatprep.subr.bf16.mxu1 %v13932_v54 }
 0x1c8   : > { %v12384_v57 = vadd.f32 %v12383_v55, %v12382_v53  ;;  %v12385_v58 = vpop.f32.mrb[22].mxu0  ;;  %v12404_v59 = vpop.f32.mrb[20].mxu1  ;;  %12685 = vmatpush3.bf16.msra.mxu0 %v13931_v52  ;;  %v13965_v52 = vld [vmem:[%s14664_s5 + $0xda8] sm:$0xff]   ;;  %v13966_v53 = vld [vmem:[%s14664_s5 + $0xd70] sm:$0xff]  }
 0x1c9   : > { %v12386_v60 = vpop.f32.mrb[23].mxu0  ;;  %v12405_v61 = vpop.f32.mrb[21].mxu1  ;;  %12686 = vmatprep.subr.bf16.mxu0 %v13934_v62  ;;  %v13969_v62 = vld [vmem:[%s14664_s5 + $0xdb0] sm:$0xff]  }
 0x1ca   : > { %v9144_v0 = vadd.f32 %v12384_v57, %v15154_v23  ;;  %v12406_v1 = vadd.f32 %v12405_v61, %v12404_v59  ;;  %v12407_v2 = vpop.f32.mrb[22].mxu1  ;;  %12707 = vmatpush3.bf16.msra.mxu1 %v13933_v56  ;;  %v13946_v23 = vld [vmem:[%s14664_s5 + $0xd48] sm:$0xff]   ;;  %v13967_v56 = vld [vmem:[%s14664_s5 + $0xd30] sm:$0xff]  }
 0x1cb   : > { %v12408_v4 = vpop.f32.mrb[23].mxu1  ;;  %12708 = vmatprep.subr.bf16.mxu1 %v13936_v3  ;;  %v13968_v60 = vld [vmem:[%s14664_s5 + $0xdf0] sm:$0xff]   ;;  %v13972_v2 = vld [vmem:[%s14664_s5 + $0xdf8] sm:$0xff]  }
 0x1cc   : > { %v15191_v6 = vadd.f32 %v12406_v1, %v9144_v0  ;;  %12687 = vmatpush3.bf16.msra.mxu0 %v13935_v63  ;;  %v13970_v0 = vld [vmem:[%s14664_s5 + $0xd78] sm:$0xff]   ;;  %v2468_v4 = vrot.slane %v15204_v17, %v14699_v34  ;;  %v13986_v17 = vld [vmem:[%s14664_s5 + $0xe90] sm:$0xff]  }
 0x1cd   : > { %12688 = vmatprep.subr.bf16.mxu0 %v13938_v7  ;;  %v13971_v1 = vld [vmem:[%s14664_s5 + $0xd38] sm:$0xff]   ;;  %v13977_v7 = vld [vmem:[%s14664_s5 + $0xec0] sm:$0xff]  }
 0x1ce   : > { %12709 = vmatpush3.bf16.msra.mxu1 %v13937_v5  ;;  %v13974_v3 = vld [vmem:[%s14664_s5 + $0xdb8] sm:$0xff]   ;;  %v13975_v5 = vld [vmem:[%s14664_s5 + $0xe40] sm:$0xff]  }
 0x1cf   : > { %12710 = vmatprep.subr.bf16.mxu1 %v13940_v9  ;;  %v2484_v9 = vcombine.high %v2468_v4, %v2468_v4 }
 0x1d0   : > { %12689 = vmatpush3.bf16.msra.mxu0 %v13939_v8  ;;  %v13978_v8 = vld [vmem:[%s14664_s5 + $0xe80] sm:$0xff]  }
 0x1d1   : > { %12718 = vmatprep.subr.bf16.mxu0 %v13942_v14  ;;  %v13983_v14 = vld [vmem:[%s14664_s5 + $0xe50] sm:$0xff]  }
 0x1d2   : > { %12711 = vmatpush3.bf16.msra.mxu1 %v13941_v12  ;;  %v13981_v12 = vld [vmem:[%s14664_s5 + $0xec8] sm:$0xff]  }
 0x1d3   : > { %12740 = vmatprep.subr.bf16.mxu1 %v13944_v18  ;;  %9702 = vmatmul.mubr.bf16.vlgmr.msra.gmra.mrb[48].mxu0 %v2461_v16  ;;  %v13985_v16 = vld [vmem:[%s14664_s5 + $0xed0] sm:$0xff]   ;;  %v13987_v18 = vld [vmem:[%s14664_s5 + $0xe58] sm:$0xff]  }
 0x1d4   : > { %12719 = vmatpush3.bf16.msra.mxu0 %v13943_v20  ;;  %9781 = vmatprep.mubr.bf16.mxu0 %v2482_v26  ;;  %v13989_v20 = vld [vmem:[%s14664_s5 + $0xed8] sm:$0xff]   ;;  %v13995_v26 = vld [vmem:[%s14664_s5 + $0xe68] sm:$0xff]  }
 0x1d5   : > { %9742 = vmatmul.mubr.bf16.vlgmr.msra.gmra.mrb[48].mxu1 %v2483_v22  ;;  %12720 = vmatprep.subr.bf16.mxu0 %v13946_v23  ;;  %v13991_v22 = vld [vmem:[%s14664_s5 + $0xe60] sm:$0xff]  }
 0x1d6   : > { %12741 = vmatpush3.bf16.msra.mxu1 %v13945_v25  ;;  %9821 = vmatprep.mubr.bf16.mxu1 %v2486_v29  ;;  %v13992_v23 = vld [vmem:[%s14664_s5 + $0xe20] sm:$0xff]   ;;  %v13997_v29 = vld [vmem:[%s14664_s5 + $0xee8] sm:$0xff]  }
 0x1d7   : > { %12742 = vmatprep.subr.bf16.mxu1 %v13948_v27  ;;  %v13994_v25 = vld [vmem:[%s14664_s5 + $0xea0] sm:$0xff]   ;;  %v13996_v27 = vld [vmem:[%s14664_s5 + $0xe28] sm:$0xff]  }
 0x1d8   : > { %12721 = vmatpush3.bf16.msra.mxu0 %v13947_v28 }
 0x1d9   : > { %12722 = vmatprep.subr.bf16.mxu0 %v13950_v30 }
 0x1da   : > { %12743 = vmatpush3.bf16.msra.mxu1 %v13949_v31  ;;  %v13998_v31 = vld [vmem:[%s14664_s5 + $0xea8] sm:$0xff]  }
 0x1db   : > { %12744 = vmatprep.subr.bf16.mxu1 %v13952_v32 }
 0x1dc   : > { %12723 = vmatpush3.bf16.msra.mxu0 %v13951_v33 }
 0x1dd   : > { %12724 = vmatprep.subr.bf16.mxu0 %v13954_v35 }
 0x1de   : > { %12745 = vmatpush3.bf16.msra.mxu1 %v13953_v36 }
 0x1df   : > { %12746 = vmatprep.subr.bf16.mxu1 %v13956_v37 }
 0x1e0   : > { %12725 = vmatpush3.bf16.msra.mxu0 %v13955_v38  ;;  %v13999_v38 = vld [vmem:[%s14664_s5 + $0xe70] sm:$0xff]  }
 0x1e1   : > { %12726 = vmatprep.subr.bf16.mxu0 %v13958_v39  ;;  %v14000_v39 = vld [vmem:[%s14664_s5 + $0xe30] sm:$0xff]  }
 0x1e2   : > { %12747 = vmatpush3.bf16.msra.mxu1 %v13957_v40 }
 0x1e3   : > { %12748 = vmatprep.subr.bf16.mxu1 %v13960_v41 }
 0x1e4   : > { %12727 = vmatpush3.bf16.msra.mxu0 %v13959_v42 }
 0x1e5   : > { %12728 = vmatprep.subr.bf16.mxu0 %v13962_v43  ;;  %v14001_v43 = vld [vmem:[%s14664_s5 + $0xef0] sm:$0xff]  }
 0x1e6   : > { %v12426_v45 = vpop.f32.mrb[24].mxu0  ;;  %12749 = vmatpush3.bf16.msra.mxu1 %v13961_v44 }
 0x1e7   : > { %v12427_v47 = vpop.f32.mrb[25].mxu0  ;;  %12750 = vmatprep.subr.bf16.mxu1 %v13964_v46 }
 0x1e8   : > { %v12428_v49 = vadd.f32 %v12427_v47, %v12426_v45  ;;  %v12429_v50 = vpop.f32.mrb[26].mxu0  ;;  %v12448_v51 = vpop.f32.mrb[24].mxu1  ;;  %12729 = vmatpush3.bf16.msra.mxu0 %v13963_v48  ;;  %v14002_v45 = vld [vmem:[%s14664_s5 + $0xeb0] sm:$0xff]   ;;  %v14003_v47 = vld [vmem:[%s14664_s5 + $0xe78] sm:$0xff]  }
 0x1e9   : > { %v12430_v54 = vpop.f32.mrb[27].mxu0  ;;  %v12449_v55 = vpop.f32.mrb[25].mxu1  ;;  %12730 = vmatprep.subr.bf16.mxu0 %v13966_v53  ;;  %v14004_v48 = vld [vmem:[%s14664_s5 + $0xe38] sm:$0xff]  }
 0x1ea   : > { %v9224_v57 = vadd.f32 %v12428_v49, %v15191_v6  ;;  %v12450_v58 = vadd.f32 %v12449_v55, %v12448_v51  ;;  %v12451_v59 = vpop.f32.mrb[26].mxu1  ;;  %12751 = vmatpush3.bf16.msra.mxu1 %v13965_v52  ;;  %v13976_v6 = vld [vmem:[%s14664_s5 + $0xe00] sm:$0xff]   ;;  %v14005_v49 = vld [vmem:[%s14664_s5 + $0xef8] sm:$0xff]  }
 0x1eb   : > { %v12452_v61 = vpop.f32.mrb[27].mxu1  ;;  %12752 = vmatprep.subr.bf16.mxu1 %v13968_v60  ;;  %v210_v50 = vld [vmem:[%s15934_s0 + $0x38] sm:$0xff]  ;;  %v14007_v54 = vld [vmem:[%s14664_s5 + $0xf40] sm:$0xff]  }
 0x1ec   : > { %v15238_v63 = vadd.f32 %v12450_v58, %v9224_v57  ;;  %12731 = vmatpush3.bf16.msra.mxu0 %v13967_v56  ;;  %v2494_v51 = vrot.slane %v210_v50, %v14699_v34  ;;  %v14006_v52 = vld [vmem:[%s14664_s5 + $0xeb8] sm:$0xff]   ;;  %v2487_v53 = vcombine.high %v210_v50, %v210_v50  ;;  %v14009_v58 = vld [vmem:[%s14664_s5 + $0xfc0] sm:$0xff]   ;;  %v14044_v50 = vld [vmem:[%s14664_s5 + $0x1048] sm:$0xff]  }
 0x1ed   : > { %12732 = vmatprep.subr.bf16.mxu0 %v13970_v0  ;;  %v14008_v60 = vld [vmem:[%s14664_s5 + $0xf00] sm:$0xff]  }
 0x1ee   : > { %12753 = vmatpush3.bf16.msra.mxu1 %v13969_v62  ;;  %v2502_v55 = vcombine.high %v2494_v51, %v2494_v51  ;;  %v2510_v56 = vrot.slane %v2494_v51, %v14699_v34  ;;  %v15288_v57 = vrot.slane %v2487_v53, %v14699_v34  ;;  %v14045_v51 = vld [vmem:[%s14664_s5 + $0x1008] sm:$0xff]  }
 0x1ef   : > { %12754 = vmatprep.subr.bf16.mxu1 %v13972_v2  ;;  %v14047_v53 = vld [vmem:[%s14664_s5 + $0x1088] sm:$0xff]  }
 0x1f0   : > { %12733 = vmatpush3.bf16.msra.mxu0 %v13971_v1  ;;  %v2524_v59 = vrot.slane %v2502_v55, %v14699_v34  ;;  %v2503_v61 = vcombine.high %v15288_v57, %v15288_v57  ;;  %v2532_v62 = vcombine.high %v2510_v56, %v2510_v56  ;;  %v14010_v1 = vld [vmem:[%s14664_s5 + $0xf80] sm:$0xff]   ;;  %v14049_v55 = vld [vmem:[%s14664_s5 + $0x1010] sm:$0xff]  }
 0x1f1   : > { %12762 = vmatprep.subr.bf16.mxu0 %v13975_v5 }
 0x1f2   : > { %12755 = vmatpush3.bf16.msra.mxu1 %v13974_v3  ;;  %v2534_v0 = vcombine.high %v2524_v59, %v2524_v59  ;;  %v2531_v2 = vrot.slane %v2503_v61, %v14699_v34  ;;  %v14013_v3 = vld [vmem:[%s14664_s5 + $0xfc8] sm:$0xff]   ;;  %v14055_v61 = vld [vmem:[%s14664_s5 + $0x1098] sm:$0xff]  }
 0x1f3   : > { %9782 = vmatmul.mubr.bf16.vlgmr.msra.gmra.mrb[52].mxu0 %v2468_v4  ;;  %12784 = vmatprep.subr.bf16.mxu1 %v13977_v7  ;;  %v14012_v4 = vld [vmem:[%s14664_s5 + $0xf08] sm:$0xff]  }
 0x1f4   : > { %12763 = vmatpush3.bf16.msra.mxu0 %v13976_v6  ;;  %9861 = vmatprep.mubr.bf16.mxu0 %v2524_v59  ;;  %v2535_v5 = vcombine.high %v2531_v2, %v2531_v2  ;;  %v14015_v6 = vld [vmem:[%s14664_s5 + $0xf50] sm:$0xff]   ;;  %v14014_v7 = vld [vmem:[%s14664_s5 + $0xf88] sm:$0xff]   ;;  %v14053_v59 = vld [vmem:[%s14664_s5 + $0x1018] sm:$0xff]  }
 0x1f5   : > { %9822 = vmatmul.mubr.bf16.vlgmr.msra.gmra.mrb[52].mxu1 %v2484_v9  ;;  %12764 = vmatprep.subr.bf16.mxu0 %v13979_v10  ;;  %v14016_v9 = vld [vmem:[%s14664_s5 + $0xf10] sm:$0xff]   ;;  %v14019_v10 = vld [vmem:[%s14664_s5 + $0xf58] sm:$0xff]  }
 0x1f6   : > { %12785 = vmatpush3.bf16.msra.mxu1 %v13978_v8  ;;  %9901 = vmatprep.mubr.bf16.mxu1 %v2534_v0  ;;  %v14017_v8 = vld [vmem:[%s14664_s5 + $0xfd0] sm:$0xff]   ;;  %v14058_v0 = vld [vmem:[%s14664_s5 + $0x10e0] sm:$0xff]  }
 0x1f7   : > { %12786 = vmatprep.subr.bf16.mxu1 %v13981_v12  ;;  %v14021_v12 = vld [vmem:[%s14664_s5 + $0xfd8] sm:$0xff]  }
 0x1f8   : > { %12765 = vmatpush3.bf16.msra.mxu0 %v13980_v11  ;;  %v14018_v11 = vld [vmem:[%s14664_s5 + $0xf90] sm:$0xff]  }
 0x1f9   : > { %12766 = vmatprep.subr.bf16.mxu0 %v13983_v14  ;;  %v14023_v14 = vld [vmem:[%s14664_s5 + $0xf60] sm:$0xff]  }
 0x1fa   : > { %12787 = vmatpush3.bf16.msra.mxu1 %v13982_v13  ;;  %v14020_v13 = vld [vmem:[%s14664_s5 + $0xf18] sm:$0xff]  }
 0x1fb   : > { %12788 = vmatprep.subr.bf16.mxu1 %v13985_v16  ;;  %v14025_v16 = vld [vmem:[%s14664_s5 + $0xfe0] sm:$0xff]  }
 0x1fc   : > { %12767 = vmatpush3.bf16.msra.mxu0 %v13984_v15  ;;  %v14022_v15 = vld [vmem:[%s14664_s5 + $0xf98] sm:$0xff]  }
 0x1fd   : > { %12768 = vmatprep.subr.bf16.mxu0 %v13987_v18  ;;  %v14027_v18 = vld [vmem:[%s14664_s5 + $0xf68] sm:$0xff]  }
 0x1fe   : > { %12789 = vmatpush3.bf16.msra.mxu1 %v13986_v17  ;;  %v14024_v17 = vld [vmem:[%s14664_s5 + $0xf20] sm:$0xff]  }
 0x1ff   : > { %12790 = vmatprep.subr.bf16.mxu1 %v13989_v20 }
 0x200   : > { %12769 = vmatpush3.bf16.msra.mxu0 %v13988_v19  ;;  %v14026_v19 = vld [vmem:[%s14664_s5 + $0xfa0] sm:$0xff]  }
 0x201   : > { %12770 = vmatprep.subr.bf16.mxu0 %v13991_v22 }
 0x202   : > { %12791 = vmatpush3.bf16.msra.mxu1 %v13990_v21  ;;  %v14029_v21 = vld [vmem:[%s14664_s5 + $0xfe8] sm:$0xff]  }
 0x203   : > { %12792 = vmatprep.subr.bf16.mxu1 %v13993_v24 }
 0x204   : > { %12771 = vmatpush3.bf16.msra.mxu0 %v13992_v23  ;;  %v14028_v23 = vld [vmem:[%s14664_s5 + $0xf28] sm:$0xff]  }
 0x205   : > { %12772 = vmatprep.subr.bf16.mxu0 %v13995_v26 }
 0x206   : > { %v12470_v28 = vpop.f32.mrb[28].mxu0  ;;  %12793 = vmatpush3.bf16.msra.mxu1 %v13994_v25 }
 0x207   : > { %v12471_v30 = vpop.f32.mrb[29].mxu0  ;;  %12794 = vmatprep.subr.bf16.mxu1 %v13997_v29 }
 0x208   : > { %v12472_v32 = vadd.f32 %v12471_v30, %v12470_v28  ;;  %v12473_v33 = vpop.f32.mrb[30].mxu0  ;;  %v12492_v35 = vpop.f32.mrb[28].mxu1  ;;  %12773 = vmatpush3.bf16.msra.mxu0 %v13996_v27  ;;  %v14030_v27 = vld [vmem:[%s14664_s5 + $0xfa8] sm:$0xff]   ;;  %v14031_v28 = vld [vmem:[%s14664_s5 + $0xf70] sm:$0xff]  }
 0x209   : > { %v12474_v36 = vpop.f32.mrb[31].mxu0  ;;  %v12493_v37 = vpop.f32.mrb[29].mxu1  ;;  %12774 = vmatprep.subr.bf16.mxu0 %v13999_v38  ;;  %v14034_v38 = vld [vmem:[%s14664_s5 + $0xfb0] sm:$0xff]  }
 0x20a   : > { %v9304_v40 = vadd.f32 %v12472_v32, %v15238_v63  ;;  %v12494_v41 = vadd.f32 %v12493_v37, %v12492_v35  ;;  %v12495_v42 = vpop.f32.mrb[30].mxu1  ;;  %12795 = vmatpush3.bf16.msra.mxu1 %v13998_v31  ;;  %v14011_v63 = vld [vmem:[%s14664_s5 + $0xf48] sm:$0xff]   ;;  %v14032_v31 = vld [vmem:[%s14664_s5 + $0xf30] sm:$0xff]  }
 0x20b   : > { %v12496_v44 = vpop.f32.mrb[31].mxu1  ;;  %12796 = vmatprep.subr.bf16.mxu1 %v14001_v43  ;;  %v14033_v36 = vld [vmem:[%s14664_s5 + $0xff0] sm:$0xff]   ;;  %v14037_v42 = vld [vmem:[%s14664_s5 + $0xff8] sm:$0xff]  }
 0x20c   : > { %v15275_v46 = vadd.f32 %v12494_v41, %v9304_v40  ;;  %12775 = vmatpush3.bf16.msra.mxu0 %v14000_v39  ;;  %v14035_v40 = vld [vmem:[%s14664_s5 + $0xf78] sm:$0xff]   ;;  %v2517_v44 = vrot.slane %v15288_v57, %v14699_v34  ;;  %v14051_v57 = vld [vmem:[%s14664_s5 + $0x1090] sm:$0xff]  }
 0x20d   : > { %12776 = vmatprep.subr.bf16.mxu0 %v14003_v47  ;;  %v14036_v41 = vld [vmem:[%s14664_s5 + $0xf38] sm:$0xff]   ;;  %v14042_v47 = vld [vmem:[%s14664_s5 + $0x10c0] sm:$0xff]  }
 0x20e   : > { %12797 = vmatpush3.bf16.msra.mxu1 %v14002_v45  ;;  %v14039_v43 = vld [vmem:[%s14664_s5 + $0xfb8] sm:$0xff]   ;;  %v14040_v45 = vld [vmem:[%s14664_s5 + $0x1040] sm:$0xff]  }
 0x20f   : > { %12798 = vmatprep.subr.bf16.mxu1 %v14005_v49  ;;  %v2533_v49 = vcombine.high %v2517_v44, %v2517_v44 }
 0x210   : > { %12777 = vmatpush3.bf16.msra.mxu0 %v14004_v48  ;;  %v14043_v48 = vld [vmem:[%s14664_s5 + $0x1080] sm:$0xff]  }
 0x211   : > { %12806 = vmatprep.subr.bf16.mxu0 %v14007_v54  ;;  %v14048_v54 = vld [vmem:[%s14664_s5 + $0x1050] sm:$0xff]  }
 0x212   : > { %12799 = vmatpush3.bf16.msra.mxu1 %v14006_v52  ;;  %v14046_v52 = vld [vmem:[%s14664_s5 + $0x10c8] sm:$0xff]  }
 0x213   : > { %12828 = vmatprep.subr.bf16.mxu1 %v14009_v58  ;;  %9862 = vmatmul.mubr.bf16.vlgmr.msra.gmra.mrb[56].mxu0 %v2510_v56  ;;  %v14050_v56 = vld [vmem:[%s14664_s5 + $0x10d0] sm:$0xff]   ;;  %v14052_v58 = vld [vmem:[%s14664_s5 + $0x1058] sm:$0xff]  }
 0x214   : > { %12807 = vmatpush3.bf16.msra.mxu0 %v14008_v60  ;;  %9941 = vmatprep.mubr.bf16.mxu0 %v2531_v2  ;;  %v14054_v60 = vld [vmem:[%s14664_s5 + $0x10d8] sm:$0xff]   ;;  %v14060_v2 = vld [vmem:[%s14664_s5 + $0x1068] sm:$0xff]  }
 0x215   : > { %9902 = vmatmul.mubr.bf16.vlgmr.msra.gmra.mrb[56].mxu1 %v2532_v62  ;;  %12808 = vmatprep.subr.bf16.mxu0 %v14011_v63  ;;  %v14056_v62 = vld [vmem:[%s14664_s5 + $0x1060] sm:$0xff]  }
 0x216   : > { %12829 = vmatpush3.bf16.msra.mxu1 %v14010_v1  ;;  %9981 = vmatprep.mubr.bf16.mxu1 %v2535_v5  ;;  %v14057_v63 = vld [vmem:[%s14664_s5 + $0x1020] sm:$0xff]   ;;  %v14062_v5 = vld [vmem:[%s14664_s5 + $0x10e8] sm:$0xff]  }
 0x217   : > { %12830 = vmatprep.subr.bf16.mxu1 %v14013_v3  ;;  %v14059_v1 = vld [vmem:[%s14664_s5 + $0x10a0] sm:$0xff]   ;;  %v14061_v3 = vld [vmem:[%s14664_s5 + $0x1028] sm:$0xff]  }
 0x218   : > { %12809 = vmatpush3.bf16.msra.mxu0 %v14012_v4 }
 0x219   : > { %12810 = vmatprep.subr.bf16.mxu0 %v14015_v6 }
 0x21a   : > { %12831 = vmatpush3.bf16.msra.mxu1 %v14014_v7  ;;  %v14063_v7 = vld [vmem:[%s14664_s5 + $0x10a8] sm:$0xff]  }
 0x21b   : > { %12832 = vmatprep.subr.bf16.mxu1 %v14017_v8 }
 0x21c   : > { %12811 = vmatpush3.bf16.msra.mxu0 %v14016_v9 }
 0x21d   : > { %12812 = vmatprep.subr.bf16.mxu0 %v14019_v10 }
 0x21e   : > { %12833 = vmatpush3.bf16.msra.mxu1 %v14018_v11 }
 0x21f   : > { %12834 = vmatprep.subr.bf16.mxu1 %v14021_v12 }
 0x220   : > { %12813 = vmatpush3.bf16.msra.mxu0 %v14020_v13  ;;  %v14064_v13 = vld [vmem:[%s14664_s5 + $0x1070] sm:$0xff]  }
 0x221   : > { %12814 = vmatprep.subr.bf16.mxu0 %v14023_v14  ;;  %v14065_v14 = vld [vmem:[%s14664_s5 + $0x1030] sm:$0xff]  }
 0x222   : > { %12835 = vmatpush3.bf16.msra.mxu1 %v14022_v15 }
 0x223   : > { %12836 = vmatprep.subr.bf16.mxu1 %v14025_v16 }
 0x224   : > { %12815 = vmatpush3.bf16.msra.mxu0 %v14024_v17 }
 0x225   : > { %12816 = vmatprep.subr.bf16.mxu0 %v14027_v18  ;;  %v14066_v18 = vld [vmem:[%s14664_s5 + $0x10f0] sm:$0xff]  }
 0x226   : > { %v12514_v20 = vpop.f32.mrb[32].mxu0  ;;  %12837 = vmatpush3.bf16.msra.mxu1 %v14026_v19 }
 0x227   : > { %v12515_v22 = vpop.f32.mrb[33].mxu0  ;;  %12838 = vmatprep.subr.bf16.mxu1 %v14029_v21 }
 0x228   : > { %v12516_v24 = vadd.f32 %v12515_v22, %v12514_v20  ;;  %v12517_v25 = vpop.f32.mrb[34].mxu0  ;;  %v12536_v26 = vpop.f32.mrb[32].mxu1  ;;  %12817 = vmatpush3.bf16.msra.mxu0 %v14028_v23  ;;  %v14067_v20 = vld [vmem:[%s14664_s5 + $0x10b0] sm:$0xff]   ;;  %v14068_v22 = vld [vmem:[%s14664_s5 + $0x1078] sm:$0xff]  }
 0x229   : > { %v12518_v29 = vpop.f32.mrb[35].mxu0  ;;  %v12537_v30 = vpop.f32.mrb[33].mxu1  ;;  %12818 = vmatprep.subr.bf16.mxu0 %v14031_v28  ;;  %v14069_v23 = vld [vmem:[%s14664_s5 + $0x1038] sm:$0xff]   ;;  %v211_v25 = vld [vmem:[%s15934_s0 + $0x40] sm:$0xff] }
 0x22a   : > { %v9384_v32 = vadd.f32 %v12516_v24, %v15275_v46  ;;  %v12538_v33 = vadd.f32 %v12537_v30, %v12536_v26  ;;  %v12539_v35 = vpop.f32.mrb[34].mxu1  ;;  %12839 = vmatpush3.bf16.msra.mxu1 %v14030_v27  ;;  %v14041_v46 = vld [vmem:[%s14664_s5 + $0x1000] sm:$0xff]   ;;  %v14070_v24 = vld [vmem:[%s14664_s5 + $0x10f8] sm:$0xff]   ;;  %v2543_v26 = vrot.slane %v211_v25, %v14699_v34  ;;  %v2536_v28 = vcombine.high %v211_v25, %v211_v25  ;;  %v14109_v25 = vld [vmem:[%s14664_s5 + $0x1248] sm:$0xff]  }
 0x22b   : > { %v12540_v37 = vpop.f32.mrb[35].mxu1  ;;  %12840 = vmatprep.subr.bf16.mxu1 %v14033_v36  ;;  %v14071_v27 = vld [vmem:[%s14664_s5 + $0x10b8] sm:$0xff]   ;;  %v14072_v29 = vld [vmem:[%s14664_s5 + $0x1140] sm:$0xff]  }
 0x22c   : > { %v15322_v39 = vadd.f32 %v12538_v33, %v9384_v32  ;;  %12819 = vmatpush3.bf16.msra.mxu0 %v14032_v31  ;;  %v2551_v30 = vcombine.high %v2543_v26, %v2543_v26  ;;  %v2559_v31 = vrot.slane %v2543_v26, %v14699_v34  ;;  %v15372_v32 = vrot.slane %v2536_v28, %v14699_v34  ;;  %v14074_v33 = vld [vmem:[%s14664_s5 + $0x11c0] sm:$0xff]   ;;  %v14110_v26 = vld [vmem:[%s14664_s5 + $0x1208] sm:$0xff]  }
 0x22d   : > { %12820 = vmatprep.subr.bf16.mxu0 %v14035_v40  ;;  %v14073_v36 = vld [vmem:[%s14664_s5 + $0x1100] sm:$0xff]   ;;  %v14112_v28 = vld [vmem:[%s14664_s5 + $0x1288] sm:$0xff]  }
 0x22e   : > { %12841 = vmatpush3.bf16.msra.mxu1 %v14034_v38  ;;  %v2573_v35 = vrot.slane %v2551_v30, %v14699_v34  ;;  %v2552_v37 = vcombine.high %v15372_v32, %v15372_v32  ;;  %v2581_v38 = vcombine.high %v2559_v31, %v2559_v31  ;;  %v14114_v30 = vld [vmem:[%s14664_s5 + $0x1210] sm:$0xff]  }
 0x22f   : > { %12842 = vmatprep.subr.bf16.mxu1 %v14037_v42 }
 0x230   : > { %12821 = vmatpush3.bf16.msra.mxu0 %v14036_v41  ;;  %v2583_v40 = vcombine.high %v2573_v35, %v2573_v35  ;;  %v14075_v41 = vld [vmem:[%s14664_s5 + $0x1180] sm:$0xff]   ;;  %v2580_v42 = vrot.slane %v2552_v37, %v14699_v34  ;;  %v14120_v37 = vld [vmem:[%s14664_s5 + $0x1298] sm:$0xff]  }
 0x231   : > { %12850 = vmatprep.subr.bf16.mxu0 %v14040_v45 }
 0x232   : > { %12843 = vmatpush3.bf16.msra.mxu1 %v14039_v43  ;;  %v14078_v43 = vld [vmem:[%s14664_s5 + $0x11c8] sm:$0xff]   ;;  %v2584_v45 = vcombine.high %v2580_v42, %v2580_v42 }
 0x233   : > { %9942 = vmatmul.mubr.bf16.vlgmr.msra.gmra.mrb[60].mxu0 %v2517_v44  ;;  %12872 = vmatprep.subr.bf16.mxu1 %v14042_v47  ;;  %v14077_v44 = vld [vmem:[%s14664_s5 + $0x1108] sm:$0xff]  }
 0x234   : > { %12851 = vmatpush3.bf16.msra.mxu0 %v14041_v46  ;;  %10021 = vmatprep.mubr.bf16.mxu0 %v2573_v35  ;;  %v14080_v46 = vld [vmem:[%s14664_s5 + $0x1150] sm:$0xff]   ;;  %v14079_v47 = vld [vmem:[%s14664_s5 + $0x1188] sm:$0xff]   ;;  %v14118_v35 = vld [vmem:[%s14664_s5 + $0x1218] sm:$0xff]  }
 0x235   : > { %9982 = vmatmul.mubr.bf16.vlgmr.msra.gmra.mrb[60].mxu1 %v2533_v49  ;;  %12852 = vmatprep.subr.bf16.mxu0 %v14044_v50  ;;  %v14081_v49 = vld [vmem:[%s14664_s5 + $0x1110] sm:$0xff]   ;;  %v14084_v50 = vld [vmem:[%s14664_s5 + $0x1158] sm:$0xff]  }
 0x236   : > { %12873 = vmatpush3.bf16.msra.mxu1 %v14043_v48  ;;  %10061 = vmatprep.mubr.bf16.mxu1 %v2583_v40  ;;  %v14082_v48 = vld [vmem:[%s14664_s5 + $0x11d0] sm:$0xff]   ;;  %v14123_v40 = vld [vmem:[%s14664_s5 + $0x12e0] sm:$0xff]  }
 0x237   : > { %12874 = vmatprep.subr.bf16.mxu1 %v14046_v52  ;;  %v14086_v52 = vld [vmem:[%s14664_s5 + $0x11d8] sm:$0xff]  }
 0x238   : > { %12853 = vmatpush3.bf16.msra.mxu0 %v14045_v51  ;;  %v14083_v51 = vld [vmem:[%s14664_s5 + $0x1190] sm:$0xff]  }
 0x239   : > { %12854 = vmatprep.subr.bf16.mxu0 %v14048_v54  ;;  %v14088_v54 = vld [vmem:[%s14664_s5 + $0x1160] sm:$0xff]  }
 0x23a   : > { %12875 = vmatpush3.bf16.msra.mxu1 %v14047_v53  ;;  %v14085_v53 = vld [vmem:[%s14664_s5 + $0x1118] sm:$0xff]  }
 0x23b   : > { %12876 = vmatprep.subr.bf16.mxu1 %v14050_v56  ;;  %v14090_v56 = vld [vmem:[%s14664_s5 + $0x11e0] sm:$0xff]  }
 0x23c   : > { %12855 = vmatpush3.bf16.msra.mxu0 %v14049_v55  ;;  %v14087_v55 = vld [vmem:[%s14664_s5 + $0x1198] sm:$0xff]  }
 0x23d   : > { %12856 = vmatprep.subr.bf16.mxu0 %v14052_v58  ;;  %v14092_v58 = vld [vmem:[%s14664_s5 + $0x1168] sm:$0xff]  }
 0x23e   : > { %12877 = vmatpush3.bf16.msra.mxu1 %v14051_v57  ;;  %v14089_v57 = vld [vmem:[%s14664_s5 + $0x1120] sm:$0xff]  }
 0x23f   : > { %12878 = vmatprep.subr.bf16.mxu1 %v14054_v60 }
 0x240   : > { %12857 = vmatpush3.bf16.msra.mxu0 %v14053_v59  ;;  %v14091_v59 = vld [vmem:[%s14664_s5 + $0x11a0] sm:$0xff]  }
 0x241   : > { %12858 = vmatprep.subr.bf16.mxu0 %v14056_v62 }
 0x242   : > { %12879 = vmatpush3.bf16.msra.mxu1 %v14055_v61  ;;  %v14094_v61 = vld [vmem:[%s14664_s5 + $0x11e8] sm:$0xff]  }
 0x243   : > { %12880 = vmatprep.subr.bf16.mxu1 %v14058_v0 }
 0x244   : > { %12859 = vmatpush3.bf16.msra.mxu0 %v14057_v63  ;;  %v14093_v63 = vld [vmem:[%s14664_s5 + $0x1128] sm:$0xff]  }
 0x245   : > { %12860 = vmatprep.subr.bf16.mxu0 %v14060_v2 }
 0x246   : > { %v12558_v4 = vpop.f32.mrb[36].mxu0  ;;  %12881 = vmatpush3.bf16.msra.mxu1 %v14059_v1 }
 0x247   : > { %v12559_v6 = vpop.f32.mrb[37].mxu0  ;;  %12882 = vmatprep.subr.bf16.mxu1 %v14062_v5 }
 0x248   : > { %v12560_v8 = vadd.f32 %v12559_v6, %v12558_v4  ;;  %v12561_v9 = vpop.f32.mrb[38].mxu0  ;;  %v12580_v10 = vpop.f32.mrb[36].mxu1  ;;  %12861 = vmatpush3.bf16.msra.mxu0 %v14061_v3  ;;  %v14095_v3 = vld [vmem:[%s14664_s5 + $0x11a8] sm:$0xff]   ;;  %v14096_v4 = vld [vmem:[%s14664_s5 + $0x1170] sm:$0xff]  }
 0x249   : > { %v12562_v11 = vpop.f32.mrb[39].mxu0  ;;  %v12581_v12 = vpop.f32.mrb[37].mxu1  ;;  %12862 = vmatprep.subr.bf16.mxu0 %v14064_v13  ;;  %v14099_v13 = vld [vmem:[%s14664_s5 + $0x11b0] sm:$0xff]  }
 0x24a   : > { %v9464_v15 = vadd.f32 %v12560_v8, %v15322_v39  ;;  %v12582_v16 = vadd.f32 %v12581_v12, %v12580_v10  ;;  %v12583_v17 = vpop.f32.mrb[38].mxu1  ;;  %12883 = vmatpush3.bf16.msra.mxu1 %v14063_v7  ;;  %v14076_v39 = vld [vmem:[%s14664_s5 + $0x1148] sm:$0xff]   ;;  %v14097_v7 = vld [vmem:[%s14664_s5 + $0x1130] sm:$0xff]  }
 0x24b   : > { %v12584_v19 = vpop.f32.mrb[39].mxu1  ;;  %12884 = vmatprep.subr.bf16.mxu1 %v14066_v18  ;;  %v14098_v11 = vld [vmem:[%s14664_s5 + $0x11f0] sm:$0xff]   ;;  %v14102_v17 = vld [vmem:[%s14664_s5 + $0x11f8] sm:$0xff]  }
 0x24c   : > { %v15359_v21 = vadd.f32 %v12582_v16, %v9464_v15  ;;  %12863 = vmatpush3.bf16.msra.mxu0 %v14065_v14  ;;  %v14100_v15 = vld [vmem:[%s14664_s5 + $0x1178] sm:$0xff]   ;;  %v2566_v19 = vrot.slane %v15372_v32, %v14699_v34  ;;  %v14116_v32 = vld [vmem:[%s14664_s5 + $0x1290] sm:$0xff]  }
 0x24d   : > { %12864 = vmatprep.subr.bf16.mxu0 %v14068_v22  ;;  %v14101_v16 = vld [vmem:[%s14664_s5 + $0x1138] sm:$0xff]   ;;  %v14107_v22 = vld [vmem:[%s14664_s5 + $0x12c0] sm:$0xff]  }
 0x24e   : > { %12885 = vmatpush3.bf16.msra.mxu1 %v14067_v20  ;;  %v14104_v18 = vld [vmem:[%s14664_s5 + $0x11b8] sm:$0xff]   ;;  %v14105_v20 = vld [vmem:[%s14664_s5 + $0x1240] sm:$0xff]  }
 0x24f   : > { %12886 = vmatprep.subr.bf16.mxu1 %v14070_v24  ;;  %v2582_v24 = vcombine.high %v2566_v19, %v2566_v19 }
 0x250   : > { %12865 = vmatpush3.bf16.msra.mxu0 %v14069_v23  ;;  %v14108_v23 = vld [vmem:[%s14664_s5 + $0x1280] sm:$0xff]  }
 0x251   : > { %12894 = vmatprep.subr.bf16.mxu0 %v14072_v29  ;;  %v14113_v29 = vld [vmem:[%s14664_s5 + $0x1250] sm:$0xff]  }
 0x252   : > { %12887 = vmatpush3.bf16.msra.mxu1 %v14071_v27  ;;  %v14111_v27 = vld [vmem:[%s14664_s5 + $0x12c8] sm:$0xff]  }
 0x253   : > { %12916 = vmatprep.subr.bf16.mxu1 %v14074_v33  ;;  %10022 = vmatmul.mubr.bf16.vlgmr.msra.gmra.mrb[64].mxu0 %v2559_v31  ;;  %v14115_v31 = vld [vmem:[%s14664_s5 + $0x12d0] sm:$0xff]   ;;  %v14117_v33 = vld [vmem:[%s14664_s5 + $0x1258] sm:$0xff]  }
 0x254   : > { %12895 = vmatpush3.bf16.msra.mxu0 %v14073_v36  ;;  %10101 = vmatprep.mubr.bf16.mxu0 %v2580_v42  ;;  %v14119_v36 = vld [vmem:[%s14664_s5 + $0x12d8] sm:$0xff]   ;;  %v14125_v42 = vld [vmem:[%s14664_s5 + $0x1268] sm:$0xff]  }
 0x255   : > { %10062 = vmatmul.mubr.bf16.vlgmr.msra.gmra.mrb[64].mxu1 %v2581_v38  ;;  %12896 = vmatprep.subr.bf16.mxu0 %v14076_v39  ;;  %v14121_v38 = vld [vmem:[%s14664_s5 + $0x1260] sm:$0xff]  }
 0x256   : > { %12917 = vmatpush3.bf16.msra.mxu1 %v14075_v41  ;;  %10141 = vmatprep.mubr.bf16.mxu1 %v2584_v45  ;;  %v14122_v39 = vld [vmem:[%s14664_s5 + $0x1220] sm:$0xff]   ;;  %v14127_v45 = vld [vmem:[%s14664_s5 + $0x12e8] sm:$0xff]  }
 0x257   : > { %12918 = vmatprep.subr.bf16.mxu1 %v14078_v43  ;;  %v14124_v41 = vld [vmem:[%s14664_s5 + $0x12a0] sm:$0xff]   ;;  %v14126_v43 = vld [vmem:[%s14664_s5 + $0x1228] sm:$0xff]  }
 0x258   : > { %12897 = vmatpush3.bf16.msra.mxu0 %v14077_v44 }
 0x259   : > { %12898 = vmatprep.subr.bf16.mxu0 %v14080_v46 }
 0x25a   : > { %12919 = vmatpush3.bf16.msra.mxu1 %v14079_v47  ;;  %v14128_v47 = vld [vmem:[%s14664_s5 + $0x12a8] sm:$0xff]  }
 0x25b   : > { %12920 = vmatprep.subr.bf16.mxu1 %v14082_v48 }
 0x25c   : > { %12899 = vmatpush3.bf16.msra.mxu0 %v14081_v49 }
 0x25d   : > { %12900 = vmatprep.subr.bf16.mxu0 %v14084_v50 }
 0x25e   : > { %12921 = vmatpush3.bf16.msra.mxu1 %v14083_v51 }
 0x25f   : > { %12922 = vmatprep.subr.bf16.mxu1 %v14086_v52 }
 0x260   : > { %12901 = vmatpush3.bf16.msra.mxu0 %v14085_v53  ;;  %v14129_v53 = vld [vmem:[%s14664_s5 + $0x1270] sm:$0xff]  }
 0x261   : > { %12902 = vmatprep.subr.bf16.mxu0 %v14088_v54  ;;  %v14130_v54 = vld [vmem:[%s14664_s5 + $0x1230] sm:$0xff]  }
 0x262   : > { %12923 = vmatpush3.bf16.msra.mxu1 %v14087_v55 }
 0x263   : > { %12924 = vmatprep.subr.bf16.mxu1 %v14090_v56 }
 0x264   : > { %12903 = vmatpush3.bf16.msra.mxu0 %v14089_v57 }
 0x265   : > { %12904 = vmatprep.subr.bf16.mxu0 %v14092_v58  ;;  %v14131_v58 = vld [vmem:[%s14664_s5 + $0x12f0] sm:$0xff]  }
 0x266   : > { %v12602_v60 = vpop.f32.mrb[40].mxu0  ;;  %12925 = vmatpush3.bf16.msra.mxu1 %v14091_v59 }
 0x267   : > { %v12603_v62 = vpop.f32.mrb[41].mxu0  ;;  %12926 = vmatprep.subr.bf16.mxu1 %v14094_v61 }
 0x268   : > { %v12604_v0 = vadd.f32 %v12603_v62, %v12602_v60  ;;  %v12605_v1 = vpop.f32.mrb[42].mxu0  ;;  %v12624_v2 = vpop.f32.mrb[40].mxu1  ;;  %12905 = vmatpush3.bf16.msra.mxu0 %v14093_v63  ;;  %v14132_v60 = vld [vmem:[%s14664_s5 + $0x12b0] sm:$0xff]   ;;  %v14133_v62 = vld [vmem:[%s14664_s5 + $0x1278] sm:$0xff]  }
 0x269   : > { %v12606_v5 = vpop.f32.mrb[43].mxu0  ;;  %v12625_v6 = vpop.f32.mrb[41].mxu1  ;;  %12906 = vmatprep.subr.bf16.mxu0 %v14096_v4  ;;  %v14134_v63 = vld [vmem:[%s14664_s5 + $0x1238] sm:$0xff]   ;;  %v212_v1 = vld [vmem:[%s15934_s0 + $0x48] sm:$0xff] }
 0x26a   : > { %v9544_v8 = vadd.f32 %v12604_v0, %v15359_v21  ;;  %v12626_v9 = vadd.f32 %v12625_v6, %v12624_v2  ;;  %v12627_v10 = vpop.f32.mrb[42].mxu1  ;;  %12927 = vmatpush3.bf16.msra.mxu1 %v14095_v3  ;;  %v14106_v21 = vld [vmem:[%s14664_s5 + $0x1200] sm:$0xff]   ;;  %v14135_v0 = vld [vmem:[%s14664_s5 + $0x12f8] sm:$0xff]   ;;  %v2592_v2 = vrot.slane %v212_v1, %v14699_v34  ;;  %v2585_v4 = vcombine.high %v212_v1, %v212_v1  ;;  %v14174_v1 = vld [vmem:[%s14664_s5 + $0x1448] sm:$0xff]  }
 0x26b   : > { %v12628_v12 = vpop.f32.mrb[43].mxu1  ;;  %12928 = vmatprep.subr.bf16.mxu1 %v14098_v11  ;;  %v14136_v3 = vld [vmem:[%s14664_s5 + $0x12b8] sm:$0xff]   ;;  %v14137_v5 = vld [vmem:[%s14664_s5 + $0x1340] sm:$0xff]  }
 0x26c   : > { %v15406_v14 = vadd.f32 %v12626_v9, %v9544_v8  ;;  %12907 = vmatpush3.bf16.msra.mxu0 %v14097_v7  ;;  %v2600_v6 = vcombine.high %v2592_v2, %v2592_v2  ;;  %v2608_v7 = vrot.slane %v2592_v2, %v14699_v34  ;;  %v15456_v8 = vrot.slane %v2585_v4, %v14699_v34  ;;  %v14139_v9 = vld [vmem:[%s14664_s5 + $0x13c0] sm:$0xff]   ;;  %v14175_v2 = vld [vmem:[%s14664_s5 + $0x1408] sm:$0xff]  }
 0x26d   : > { %12908 = vmatprep.subr.bf16.mxu0 %v14100_v15  ;;  %v14138_v11 = vld [vmem:[%s14664_s5 + $0x1300] sm:$0xff]   ;;  %v14177_v4 = vld [vmem:[%s14664_s5 + $0x1488] sm:$0xff]  }
 0x26e   : > { %12929 = vmatpush3.bf16.msra.mxu1 %v14099_v13  ;;  %v2622_v10 = vrot.slane %v2600_v6, %v14699_v34  ;;  %v2601_v12 = vcombine.high %v15456_v8, %v15456_v8  ;;  %v2630_v13 = vcombine.high %v2608_v7, %v2608_v7  ;;  %v14179_v6 = vld [vmem:[%s14664_s5 + $0x1410] sm:$0xff]  }
 0x26f   : > { %12930 = vmatprep.subr.bf16.mxu1 %v14102_v17 }
 0x270   : > { %12909 = vmatpush3.bf16.msra.mxu0 %v14101_v16  ;;  %v2632_v15 = vcombine.high %v2622_v10, %v2622_v10  ;;  %v14140_v16 = vld [vmem:[%s14664_s5 + $0x1380] sm:$0xff]   ;;  %v2629_v17 = vrot.slane %v2601_v12, %v14699_v34  ;;  %v14185_v12 = vld [vmem:[%s14664_s5 + $0x1498] sm:$0xff]  }
 0x271   : > { %12938 = vmatprep.subr.bf16.mxu0 %v14105_v20 }
 0x272   : > { %12931 = vmatpush3.bf16.msra.mxu1 %v14104_v18  ;;  %v14143_v18 = vld [vmem:[%s14664_s5 + $0x13c8] sm:$0xff]   ;;  %v2633_v20 = vcombine.high %v2629_v17, %v2629_v17 }
 0x273   : > { %10102 = vmatmul.mubr.bf16.vlgmr.msra.gmra.mrb[68].mxu0 %v2566_v19  ;;  %12960 = vmatprep.subr.bf16.mxu1 %v14107_v22  ;;  %v14142_v19 = vld [vmem:[%s14664_s5 + $0x1308] sm:$0xff]  }
 0x274   : > { %12939 = vmatpush3.bf16.msra.mxu0 %v14106_v21  ;;  %10181 = vmatprep.mubr.bf16.mxu0 %v2622_v10  ;;  %v14145_v21 = vld [vmem:[%s14664_s5 + $0x1350] sm:$0xff]   ;;  %v14144_v22 = vld [vmem:[%s14664_s5 + $0x1388] sm:$0xff]   ;;  %v14183_v10 = vld [vmem:[%s14664_s5 + $0x1418] sm:$0xff]  }
 0x275   : > { %10142 = vmatmul.mubr.bf16.vlgmr.msra.gmra.mrb[68].mxu1 %v2582_v24  ;;  %12940 = vmatprep.subr.bf16.mxu0 %v14109_v25  ;;  %v14146_v24 = vld [vmem:[%s14664_s5 + $0x1310] sm:$0xff]   ;;  %v14149_v25 = vld [vmem:[%s14664_s5 + $0x1358] sm:$0xff]  }
 0x276   : > { %12961 = vmatpush3.bf16.msra.mxu1 %v14108_v23  ;;  %10221 = vmatprep.mubr.bf16.mxu1 %v2632_v15  ;;  %v14147_v23 = vld [vmem:[%s14664_s5 + $0x13d0] sm:$0xff]   ;;  %v14188_v15 = vld [vmem:[%s14664_s5 + $0x14e0] sm:$0xff]  }
 0x277   : > { %12962 = vmatprep.subr.bf16.mxu1 %v14111_v27  ;;  %v14151_v27 = vld [vmem:[%s14664_s5 + $0x13d8] sm:$0xff]  }
 0x278   : > { %12941 = vmatpush3.bf16.msra.mxu0 %v14110_v26  ;;  %v14148_v26 = vld [vmem:[%s14664_s5 + $0x1390] sm:$0xff]  }
 0x279   : > { %12942 = vmatprep.subr.bf16.mxu0 %v14113_v29  ;;  %v14153_v29 = vld [vmem:[%s14664_s5 + $0x1360] sm:$0xff]  }
 0x27a   : > { %12963 = vmatpush3.bf16.msra.mxu1 %v14112_v28  ;;  %v14150_v28 = vld [vmem:[%s14664_s5 + $0x1318] sm:$0xff]  }
 0x27b   : > { %12964 = vmatprep.subr.bf16.mxu1 %v14115_v31  ;;  %v14155_v31 = vld [vmem:[%s14664_s5 + $0x13e0] sm:$0xff]  }
 0x27c   : > { %12943 = vmatpush3.bf16.msra.mxu0 %v14114_v30  ;;  %v14152_v30 = vld [vmem:[%s14664_s5 + $0x1398] sm:$0xff]  }
 0x27d   : > { %12944 = vmatprep.subr.bf16.mxu0 %v14117_v33  ;;  %v14157_v33 = vld [vmem:[%s14664_s5 + $0x1368] sm:$0xff]  }
 0x27e   : > { %12965 = vmatpush3.bf16.msra.mxu1 %v14116_v32  ;;  %v14154_v32 = vld [vmem:[%s14664_s5 + $0x1320] sm:$0xff]  }
 0x27f   : > { %12966 = vmatprep.subr.bf16.mxu1 %v14119_v36 }
 0x280   : > { %12945 = vmatpush3.bf16.msra.mxu0 %v14118_v35  ;;  %v14156_v35 = vld [vmem:[%s14664_s5 + $0x13a0] sm:$0xff]  }
 0x281   : > { %12946 = vmatprep.subr.bf16.mxu0 %v14121_v38 }
 0x282   : > { %12967 = vmatpush3.bf16.msra.mxu1 %v14120_v37  ;;  %v14159_v37 = vld [vmem:[%s14664_s5 + $0x13e8] sm:$0xff]  }
 0x283   : > { %12968 = vmatprep.subr.bf16.mxu1 %v14123_v40 }
 0x284   : > { %12947 = vmatpush3.bf16.msra.mxu0 %v14122_v39  ;;  %v14158_v39 = vld [vmem:[%s14664_s5 + $0x1328] sm:$0xff]  }
 0x285   : > { %12948 = vmatprep.subr.bf16.mxu0 %v14125_v42 }
 0x286   : > { %v12646_v44 = vpop.f32.mrb[44].mxu0  ;;  %12969 = vmatpush3.bf16.msra.mxu1 %v14124_v41 }
 0x287   : > { %v12647_v46 = vpop.f32.mrb[45].mxu0  ;;  %12970 = vmatprep.subr.bf16.mxu1 %v14127_v45 }
 0x288   : > { %v12648_v48 = vadd.f32 %v12647_v46, %v12646_v44  ;;  %v12649_v49 = vpop.f32.mrb[46].mxu0  ;;  %v12668_v50 = vpop.f32.mrb[44].mxu1  ;;  %12949 = vmatpush3.bf16.msra.mxu0 %v14126_v43  ;;  %v14160_v43 = vld [vmem:[%s14664_s5 + $0x13a8] sm:$0xff]   ;;  %v14161_v44 = vld [vmem:[%s14664_s5 + $0x1370] sm:$0xff]  }
 0x289   : > { %v12650_v51 = vpop.f32.mrb[47].mxu0  ;;  %v12669_v52 = vpop.f32.mrb[45].mxu1  ;;  %12950 = vmatprep.subr.bf16.mxu0 %v14129_v53  ;;  %v14164_v53 = vld [vmem:[%s14664_s5 + $0x13b0] sm:$0xff]  }
 0x28a   : > { %v9624_v55 = vadd.f32 %v12648_v48, %v15406_v14  ;;  %v12670_v56 = vadd.f32 %v12669_v52, %v12668_v50  ;;  %v12671_v57 = vpop.f32.mrb[46].mxu1  ;;  %12971 = vmatpush3.bf16.msra.mxu1 %v14128_v47  ;;  %v14141_v14 = vld [vmem:[%s14664_s5 + $0x1348] sm:$0xff]   ;;  %v14162_v47 = vld [vmem:[%s14664_s5 + $0x1330] sm:$0xff]  }
 0x28b   : > { %v12672_v59 = vpop.f32.mrb[47].mxu1  ;;  %12972 = vmatprep.subr.bf16.mxu1 %v14131_v58  ;;  %v14163_v51 = vld [vmem:[%s14664_s5 + $0x13f0] sm:$0xff]   ;;  %v14167_v57 = vld [vmem:[%s14664_s5 + $0x13f8] sm:$0xff]  }
 0x28c   : > { %v15443_v61 = vadd.f32 %v12670_v56, %v9624_v55  ;;  %12951 = vmatpush3.bf16.msra.mxu0 %v14130_v54  ;;  %v14165_v55 = vld [vmem:[%s14664_s5 + $0x1378] sm:$0xff]   ;;  %v2615_v59 = vrot.slane %v15456_v8, %v14699_v34  ;;  %v14181_v8 = vld [vmem:[%s14664_s5 + $0x1490] sm:$0xff]  }
 0x28d   : > { %12952 = vmatprep.subr.bf16.mxu0 %v14133_v62  ;;  %v14166_v56 = vld [vmem:[%s14664_s5 + $0x1338] sm:$0xff]   ;;  %v14172_v62 = vld [vmem:[%s14664_s5 + $0x14c0] sm:$0xff]  }
 0x28e   : > { %12973 = vmatpush3.bf16.msra.mxu1 %v14132_v60  ;;  %v14169_v58 = vld [vmem:[%s14664_s5 + $0x13b8] sm:$0xff]   ;;  %v14170_v60 = vld [vmem:[%s14664_s5 + $0x1440] sm:$0xff]  }
 0x28f   : > { %12974 = vmatprep.subr.bf16.mxu1 %v14135_v0  ;;  %v2631_v0 = vcombine.high %v2615_v59, %v2615_v59 }
 0x290   : > { %12953 = vmatpush3.bf16.msra.mxu0 %v14134_v63  ;;  %v14173_v63 = vld [vmem:[%s14664_s5 + $0x1480] sm:$0xff]  }
 0x291   : > { %12982 = vmatprep.subr.bf16.mxu0 %v14137_v5  ;;  %v14178_v5 = vld [vmem:[%s14664_s5 + $0x1450] sm:$0xff]  }
 0x292   : > { %12975 = vmatpush3.bf16.msra.mxu1 %v14136_v3  ;;  %v14176_v3 = vld [vmem:[%s14664_s5 + $0x14c8] sm:$0xff]  }
 0x293   : > { %13004 = vmatprep.subr.bf16.mxu1 %v14139_v9  ;;  %10182 = vmatmul.mubr.bf16.vlgmr.msra.gmra.mrb[72].mxu0 %v2608_v7  ;;  %v14180_v7 = vld [vmem:[%s14664_s5 + $0x14d0] sm:$0xff]   ;;  %v14182_v9 = vld [vmem:[%s14664_s5 + $0x1458] sm:$0xff]  }
 0x294   : > { %12983 = vmatpush3.bf16.msra.mxu0 %v14138_v11  ;;  %10261 = vmatprep.mubr.bf16.mxu0 %v2629_v17  ;;  %v14184_v11 = vld [vmem:[%s14664_s5 + $0x14d8] sm:$0xff]   ;;  %v14190_v17 = vld [vmem:[%s14664_s5 + $0x1468] sm:$0xff]  }
 0x295   : > { %10222 = vmatmul.mubr.bf16.vlgmr.msra.gmra.mrb[72].mxu1 %v2630_v13  ;;  %12984 = vmatprep.subr.bf16.mxu0 %v14141_v14  ;;  %v14186_v13 = vld [vmem:[%s14664_s5 + $0x1460] sm:$0xff]  }
 0x296   : > { %13005 = vmatpush3.bf16.msra.mxu1 %v14140_v16  ;;  %10301 = vmatprep.mubr.bf16.mxu1 %v2633_v20  ;;  %v14187_v14 = vld [vmem:[%s14664_s5 + $0x1420] sm:$0xff]   ;;  %v14192_v20 = vld [vmem:[%s14664_s5 + $0x14e8] sm:$0xff]  }
 0x297   : > { %13006 = vmatprep.subr.bf16.mxu1 %v14143_v18  ;;  %v14189_v16 = vld [vmem:[%s14664_s5 + $0x14a0] sm:$0xff]   ;;  %v14191_v18 = vld [vmem:[%s14664_s5 + $0x1428] sm:$0xff]  }
 0x298   : > { %12985 = vmatpush3.bf16.msra.mxu0 %v14142_v19 }
 0x299   : > { %12986 = vmatprep.subr.bf16.mxu0 %v14145_v21 }
 0x29a   : > { %13007 = vmatpush3.bf16.msra.mxu1 %v14144_v22  ;;  %v14193_v22 = vld [vmem:[%s14664_s5 + $0x14a8] sm:$0xff]  }
 0x29b   : > { %13008 = vmatprep.subr.bf16.mxu1 %v14147_v23 }
 0x29c   : > { %12987 = vmatpush3.bf16.msra.mxu0 %v14146_v24 }
 0x29d   : > { %12988 = vmatprep.subr.bf16.mxu0 %v14149_v25 }
 0x29e   : > { %13009 = vmatpush3.bf16.msra.mxu1 %v14148_v26 }
 0x29f   : > { %13010 = vmatprep.subr.bf16.mxu1 %v14151_v27 }
 0x2a0   : > { %12989 = vmatpush3.bf16.msra.mxu0 %v14150_v28  ;;  %v14194_v28 = vld [vmem:[%s14664_s5 + $0x1470] sm:$0xff]  }
 0x2a1   : > { %12990 = vmatprep.subr.bf16.mxu0 %v14153_v29  ;;  %v14195_v29 = vld [vmem:[%s14664_s5 + $0x1430] sm:$0xff]  }
 0x2a2   : > { %13011 = vmatpush3.bf16.msra.mxu1 %v14152_v30 }
 0x2a3   : > { %13012 = vmatprep.subr.bf16.mxu1 %v14155_v31 }
 0x2a4   : > { %12991 = vmatpush3.bf16.msra.mxu0 %v14154_v32 }
 0x2a5   : > { %12992 = vmatprep.subr.bf16.mxu0 %v14157_v33  ;;  %v14196_v33 = vld [vmem:[%s14664_s5 + $0x14f0] sm:$0xff]  }
 0x2a6   : > { %v12690_v36 = vpop.f32.mrb[48].mxu0  ;;  %13013 = vmatpush3.bf16.msra.mxu1 %v14156_v35 }
 0x2a7   : > { %v12691_v38 = vpop.f32.mrb[49].mxu0  ;;  %13014 = vmatprep.subr.bf16.mxu1 %v14159_v37 }
 0x2a8   : > { %v12692_v40 = vadd.f32 %v12691_v38, %v12690_v36  ;;  %v12693_v41 = vpop.f32.mrb[50].mxu0  ;;  %v12712_v42 = vpop.f32.mrb[48].mxu1  ;;  %12993 = vmatpush3.bf16.msra.mxu0 %v14158_v39  ;;  %v14197_v36 = vld [vmem:[%s14664_s5 + $0x14b0] sm:$0xff]   ;;  %v14198_v38 = vld [vmem:[%s14664_s5 + $0x1478] sm:$0xff]  }
 0x2a9   : > { %v12694_v45 = vpop.f32.mrb[51].mxu0  ;;  %v12713_v46 = vpop.f32.mrb[49].mxu1  ;;  %12994 = vmatprep.subr.bf16.mxu0 %v14161_v44  ;;  %v14199_v39 = vld [vmem:[%s14664_s5 + $0x1438] sm:$0xff]   ;;  %v213_v41 = vld [vmem:[%s15934_s0 + $0x50] sm:$0xff] }
 0x2aa   : > { %v9704_v48 = vadd.f32 %v12692_v40, %v15443_v61  ;;  %v12714_v49 = vadd.f32 %v12713_v46, %v12712_v42  ;;  %v12715_v50 = vpop.f32.mrb[50].mxu1  ;;  %13015 = vmatpush3.bf16.msra.mxu1 %v14160_v43  ;;  %v14171_v61 = vld [vmem:[%s14664_s5 + $0x1400] sm:$0xff]   ;;  %v14200_v40 = vld [vmem:[%s14664_s5 + $0x14f8] sm:$0xff]   ;;  %v2641_v42 = vrot.slane %v213_v41, %v14699_v34  ;;  %v2634_v44 = vcombine.high %v213_v41, %v213_v41  ;;  %v14239_v41 = vld [vmem:[%s14664_s5 + $0x1648] sm:$0xff]  }
 0x2ab   : > { %v12716_v52 = vpop.f32.mrb[51].mxu1  ;;  %13016 = vmatprep.subr.bf16.mxu1 %v14163_v51  ;;  %v14201_v43 = vld [vmem:[%s14664_s5 + $0x14b8] sm:$0xff]   ;;  %v14202_v45 = vld [vmem:[%s14664_s5 + $0x1540] sm:$0xff]  }
 0x2ac   : > { %v15490_v54 = vadd.f32 %v12714_v49, %v9704_v48  ;;  %12995 = vmatpush3.bf16.msra.mxu0 %v14162_v47  ;;  %v2649_v46 = vcombine.high %v2641_v42, %v2641_v42  ;;  %v2657_v47 = vrot.slane %v2641_v42, %v14699_v34  ;;  %v15540_v48 = vrot.slane %v2634_v44, %v14699_v34  ;;  %v14204_v49 = vld [vmem:[%s14664_s5 + $0x15c0] sm:$0xff]   ;;  %v14240_v42 = vld [vmem:[%s14664_s5 + $0x1608] sm:$0xff]  }
 0x2ad   : > { %12996 = vmatprep.subr.bf16.mxu0 %v14165_v55  ;;  %v14203_v51 = vld [vmem:[%s14664_s5 + $0x1500] sm:$0xff]   ;;  %v14242_v44 = vld [vmem:[%s14664_s5 + $0x1688] sm:$0xff]  }
 0x2ae   : > { %13017 = vmatpush3.bf16.msra.mxu1 %v14164_v53  ;;  %v2671_v50 = vrot.slane %v2649_v46, %v14699_v34  ;;  %v2650_v52 = vcombine.high %v15540_v48, %v15540_v48  ;;  %v2679_v53 = vcombine.high %v2657_v47, %v2657_v47  ;;  %v14244_v46 = vld [vmem:[%s14664_s5 + $0x1610] sm:$0xff]  }
 0x2af   : > { %13018 = vmatprep.subr.bf16.mxu1 %v14167_v57 }
 0x2b0   : > { %12997 = vmatpush3.bf16.msra.mxu0 %v14166_v56  ;;  %v2681_v55 = vcombine.high %v2671_v50, %v2671_v50  ;;  %v14205_v56 = vld [vmem:[%s14664_s5 + $0x1580] sm:$0xff]   ;;  %v2678_v57 = vrot.slane %v2650_v52, %v14699_v34  ;;  %v14250_v52 = vld [vmem:[%s14664_s5 + $0x1698] sm:$0xff]  }
 0x2b1   : > { %13026 = vmatprep.subr.bf16.mxu0 %v14170_v60 }
 0x2b2   : > { %13019 = vmatpush3.bf16.msra.mxu1 %v14169_v58  ;;  %v14208_v58 = vld [vmem:[%s14664_s5 + $0x15c8] sm:$0xff]   ;;  %v2682_v60 = vcombine.high %v2678_v57, %v2678_v57 }
 0x2b3   : > { %10262 = vmatmul.mubr.bf16.vlgmr.msra.gmra.mrb[76].mxu0 %v2615_v59  ;;  %13048 = vmatprep.subr.bf16.mxu1 %v14172_v62  ;;  %v14207_v59 = vld [vmem:[%s14664_s5 + $0x1508] sm:$0xff]  }
 0x2b4   : > { %13027 = vmatpush3.bf16.msra.mxu0 %v14171_v61  ;;  %10341 = vmatprep.mubr.bf16.mxu0 %v2671_v50  ;;  %v14210_v61 = vld [vmem:[%s14664_s5 + $0x1550] sm:$0xff]   ;;  %v14209_v62 = vld [vmem:[%s14664_s5 + $0x1588] sm:$0xff]   ;;  %v14248_v50 = vld [vmem:[%s14664_s5 + $0x1618] sm:$0xff]  }
 0x2b5   : > { %10302 = vmatmul.mubr.bf16.vlgmr.msra.gmra.mrb[76].mxu1 %v2631_v0  ;;  %13028 = vmatprep.subr.bf16.mxu0 %v14174_v1  ;;  %v14211_v0 = vld [vmem:[%s14664_s5 + $0x1510] sm:$0xff]   ;;  %v14214_v1 = vld [vmem:[%s14664_s5 + $0x1558] sm:$0xff]  }
 0x2b6   : > { %13049 = vmatpush3.bf16.msra.mxu1 %v14173_v63  ;;  %10381 = vmatprep.mubr.bf16.mxu1 %v2681_v55  ;;  %v14212_v63 = vld [vmem:[%s14664_s5 + $0x15d0] sm:$0xff]   ;;  %v14253_v55 = vld [vmem:[%s14664_s5 + $0x16e0] sm:$0xff]  }
 0x2b7   : > { %13050 = vmatprep.subr.bf16.mxu1 %v14176_v3  ;;  %v14216_v3 = vld [vmem:[%s14664_s5 + $0x15d8] sm:$0xff]  }
 0x2b8   : > { %13029 = vmatpush3.bf16.msra.mxu0 %v14175_v2  ;;  %v14213_v2 = vld [vmem:[%s14664_s5 + $0x1590] sm:$0xff]  }
 0x2b9   : > { %13030 = vmatprep.subr.bf16.mxu0 %v14178_v5  ;;  %v14218_v5 = vld [vmem:[%s14664_s5 + $0x1560] sm:$0xff]  }
 0x2ba   : > { %13051 = vmatpush3.bf16.msra.mxu1 %v14177_v4  ;;  %v14215_v4 = vld [vmem:[%s14664_s5 + $0x1518] sm:$0xff]  }
 0x2bb   : > { %13052 = vmatprep.subr.bf16.mxu1 %v14180_v7  ;;  %v14220_v7 = vld [vmem:[%s14664_s5 + $0x15e0] sm:$0xff]  }
 0x2bc   : > { %13031 = vmatpush3.bf16.msra.mxu0 %v14179_v6  ;;  %v14217_v6 = vld [vmem:[%s14664_s5 + $0x1598] sm:$0xff]  }
 0x2bd   : > { %13032 = vmatprep.subr.bf16.mxu0 %v14182_v9  ;;  %v14222_v9 = vld [vmem:[%s14664_s5 + $0x1568] sm:$0xff]  }
 0x2be   : > { %13053 = vmatpush3.bf16.msra.mxu1 %v14181_v8  ;;  %v14219_v8 = vld [vmem:[%s14664_s5 + $0x1520] sm:$0xff]  }
 0x2bf   : > { %13054 = vmatprep.subr.bf16.mxu1 %v14184_v11 }
 0x2c0   : > { %13033 = vmatpush3.bf16.msra.mxu0 %v14183_v10  ;;  %v14221_v10 = vld [vmem:[%s14664_s5 + $0x15a0] sm:$0xff]  }
 0x2c1   : > { %13034 = vmatprep.subr.bf16.mxu0 %v14186_v13 }
 0x2c2   : > { %13055 = vmatpush3.bf16.msra.mxu1 %v14185_v12  ;;  %v14224_v12 = vld [vmem:[%s14664_s5 + $0x15e8] sm:$0xff]  }
 0x2c3   : > { %13056 = vmatprep.subr.bf16.mxu1 %v14188_v15 }
 0x2c4   : > { %13035 = vmatpush3.bf16.msra.mxu0 %v14187_v14  ;;  %v14223_v14 = vld [vmem:[%s14664_s5 + $0x1528] sm:$0xff]  }
 0x2c5   : > { %13036 = vmatprep.subr.bf16.mxu0 %v14190_v17 }
 0x2c6   : > { %v12734_v19 = vpop.f32.mrb[52].mxu0  ;;  %13057 = vmatpush3.bf16.msra.mxu1 %v14189_v16 }
 0x2c7   : > { %v12735_v21 = vpop.f32.mrb[53].mxu0  ;;  %13058 = vmatprep.subr.bf16.mxu1 %v14192_v20 }
 0x2c8   : > { %v12736_v23 = vadd.f32 %v12735_v21, %v12734_v19  ;;  %v12737_v24 = vpop.f32.mrb[54].mxu0  ;;  %v12756_v25 = vpop.f32.mrb[52].mxu1  ;;  %13037 = vmatpush3.bf16.msra.mxu0 %v14191_v18  ;;  %v14225_v18 = vld [vmem:[%s14664_s5 + $0x15a8] sm:$0xff]   ;;  %v14226_v19 = vld [vmem:[%s14664_s5 + $0x1570] sm:$0xff]  }
 0x2c9   : > { %v12738_v26 = vpop.f32.mrb[55].mxu0  ;;  %v12757_v27 = vpop.f32.mrb[53].mxu1  ;;  %13038 = vmatprep.subr.bf16.mxu0 %v14194_v28  ;;  %v14229_v28 = vld [vmem:[%s14664_s5 + $0x15b0] sm:$0xff]  }
 0x2ca   : > { %v9784_v30 = vadd.f32 %v12736_v23, %v15490_v54  ;;  %v12758_v31 = vadd.f32 %v12757_v27, %v12756_v25  ;;  %v12759_v32 = vpop.f32.mrb[54].mxu1  ;;  %13059 = vmatpush3.bf16.msra.mxu1 %v14193_v22  ;;  %v14206_v54 = vld [vmem:[%s14664_s5 + $0x1548] sm:$0xff]   ;;  %v14227_v22 = vld [vmem:[%s14664_s5 + $0x1530] sm:$0xff]  }
 0x2cb   : > { %v12760_v35 = vpop.f32.mrb[55].mxu1  ;;  %13060 = vmatprep.subr.bf16.mxu1 %v14196_v33  ;;  %v14228_v26 = vld [vmem:[%s14664_s5 + $0x15f0] sm:$0xff]   ;;  %v14232_v32 = vld [vmem:[%s14664_s5 + $0x15f8] sm:$0xff]  }
 0x2cc   : > { %v15527_v37 = vadd.f32 %v12758_v31, %v9784_v30  ;;  %13039 = vmatpush3.bf16.msra.mxu0 %v14195_v29  ;;  %v14230_v30 = vld [vmem:[%s14664_s5 + $0x1578] sm:$0xff]   ;;  %v2664_v35 = vrot.slane %v15540_v48, %v14699_v34  ;;  %v14246_v48 = vld [vmem:[%s14664_s5 + $0x1690] sm:$0xff]  }
 0x2cd   : > { %13040 = vmatprep.subr.bf16.mxu0 %v14198_v38  ;;  %v14231_v31 = vld [vmem:[%s14664_s5 + $0x1538] sm:$0xff]   ;;  %v14237_v38 = vld [vmem:[%s14664_s5 + $0x16c0] sm:$0xff]  }
 0x2ce   : > { %13061 = vmatpush3.bf16.msra.mxu1 %v14197_v36  ;;  %v14234_v33 = vld [vmem:[%s14664_s5 + $0x15b8] sm:$0xff]   ;;  %v14235_v36 = vld [vmem:[%s14664_s5 + $0x1640] sm:$0xff]  }
 0x2cf   : > { %13062 = vmatprep.subr.bf16.mxu1 %v14200_v40  ;;  %v2680_v40 = vcombine.high %v2664_v35, %v2664_v35 }
 0x2d0   : > { %13041 = vmatpush3.bf16.msra.mxu0 %v14199_v39  ;;  %v14238_v39 = vld [vmem:[%s14664_s5 + $0x1680] sm:$0xff]  }
 0x2d1   : > { %13070 = vmatprep.subr.bf16.mxu0 %v14202_v45  ;;  %v14243_v45 = vld [vmem:[%s14664_s5 + $0x1650] sm:$0xff]  }
 0x2d2   : > { %13063 = vmatpush3.bf16.msra.mxu1 %v14201_v43  ;;  %v14241_v43 = vld [vmem:[%s14664_s5 + $0x16c8] sm:$0xff]  }
 0x2d3   : > { %13092 = vmatprep.subr.bf16.mxu1 %v14204_v49  ;;  %10342 = vmatmul.mubr.bf16.vlgmr.msra.gmra.mrb[80].mxu0 %v2657_v47  ;;  %v14245_v47 = vld [vmem:[%s14664_s5 + $0x16d0] sm:$0xff]   ;;  %v14247_v49 = vld [vmem:[%s14664_s5 + $0x1658] sm:$0xff]  }
 0x2d4   : > { %13071 = vmatpush3.bf16.msra.mxu0 %v14203_v51  ;;  %10421 = vmatprep.mubr.bf16.mxu0 %v2678_v57  ;;  %v14249_v51 = vld [vmem:[%s14664_s5 + $0x16d8] sm:$0xff]   ;;  %v14255_v57 = vld [vmem:[%s14664_s5 + $0x1668] sm:$0xff]  }
 0x2d5   : > { %10382 = vmatmul.mubr.bf16.vlgmr.msra.gmra.mrb[80].mxu1 %v2679_v53  ;;  %13072 = vmatprep.subr.bf16.mxu0 %v14206_v54  ;;  %v14251_v53 = vld [vmem:[%s14664_s5 + $0x1660] sm:$0xff]  }
 0x2d6   : > { %13093 = vmatpush3.bf16.msra.mxu1 %v14205_v56  ;;  %10461 = vmatprep.mubr.bf16.mxu1 %v2682_v60  ;;  %v14252_v54 = vld [vmem:[%s14664_s5 + $0x1620] sm:$0xff]   ;;  %v14257_v60 = vld [vmem:[%s14664_s5 + $0x16e8] sm:$0xff]  }
 0x2d7   : > { %13094 = vmatprep.subr.bf16.mxu1 %v14208_v58  ;;  %v14254_v56 = vld [vmem:[%s14664_s5 + $0x16a0] sm:$0xff]   ;;  %v14256_v58 = vld [vmem:[%s14664_s5 + $0x1628] sm:$0xff]  }
 0x2d8   : > { %13073 = vmatpush3.bf16.msra.mxu0 %v14207_v59 }
 0x2d9   : > { %13074 = vmatprep.subr.bf16.mxu0 %v14210_v61 }
 0x2da   : > { %13095 = vmatpush3.bf16.msra.mxu1 %v14209_v62  ;;  %v14258_v62 = vld [vmem:[%s14664_s5 + $0x16a8] sm:$0xff]  }
 0x2db   : > { %13096 = vmatprep.subr.bf16.mxu1 %v14212_v63 }
 0x2dc   : > { %13075 = vmatpush3.bf16.msra.mxu0 %v14211_v0 }
 0x2dd   : > { %13076 = vmatprep.subr.bf16.mxu0 %v14214_v1 }
 0x2de   : > { %13097 = vmatpush3.bf16.msra.mxu1 %v14213_v2 }
 0x2df   : > { %13098 = vmatprep.subr.bf16.mxu1 %v14216_v3 }
 0x2e0   : > { %13077 = vmatpush3.bf16.msra.mxu0 %v14215_v4  ;;  %v14259_v4 = vld [vmem:[%s14664_s5 + $0x1670] sm:$0xff]  }
 0x2e1   : > { %13078 = vmatprep.subr.bf16.mxu0 %v14218_v5  ;;  %v14260_v5 = vld [vmem:[%s14664_s5 + $0x1630] sm:$0xff]  }
 0x2e2   : > { %13099 = vmatpush3.bf16.msra.mxu1 %v14217_v6 }
 0x2e3   : > { %13100 = vmatprep.subr.bf16.mxu1 %v14220_v7 }
 0x2e4   : > { %13079 = vmatpush3.bf16.msra.mxu0 %v14219_v8 }
 0x2e5   : > { %13080 = vmatprep.subr.bf16.mxu0 %v14222_v9  ;;  %v14261_v9 = vld [vmem:[%s14664_s5 + $0x16f0] sm:$0xff]  }
 0x2e6   : > { %v12778_v11 = vpop.f32.mrb[56].mxu0  ;;  %13101 = vmatpush3.bf16.msra.mxu1 %v14221_v10 }
 0x2e7   : > { %v12779_v13 = vpop.f32.mrb[57].mxu0  ;;  %13102 = vmatprep.subr.bf16.mxu1 %v14224_v12 }
 0x2e8   : > { %v12780_v15 = vadd.f32 %v12779_v13, %v12778_v11  ;;  %v12781_v16 = vpop.f32.mrb[58].mxu0  ;;  %v12800_v17 = vpop.f32.mrb[56].mxu1  ;;  %13081 = vmatpush3.bf16.msra.mxu0 %v14223_v14  ;;  %v14262_v11 = vld [vmem:[%s14664_s5 + $0x16b0] sm:$0xff]   ;;  %v14263_v13 = vld [vmem:[%s14664_s5 + $0x1678] sm:$0xff]  }
 0x2e9   : > { %v12782_v20 = vpop.f32.mrb[59].mxu0  ;;  %v12801_v21 = vpop.f32.mrb[57].mxu1  ;;  %13082 = vmatprep.subr.bf16.mxu0 %v14226_v19  ;;  %v14264_v14 = vld [vmem:[%s14664_s5 + $0x1638] sm:$0xff]  }
 0x2ea   : > { %v9864_v23 = vadd.f32 %v12780_v15, %v15527_v37  ;;  %v12802_v24 = vadd.f32 %v12801_v21, %v12800_v17  ;;  %v12803_v25 = vpop.f32.mrb[58].mxu1  ;;  %13103 = vmatpush3.bf16.msra.mxu1 %v14225_v18  ;;  %v14236_v37 = vld [vmem:[%s14664_s5 + $0x1600] sm:$0xff]   ;;  %v14265_v15 = vld [vmem:[%s14664_s5 + $0x16f8] sm:$0xff]  }
 0x2eb   : > { %v12804_v27 = vpop.f32.mrb[59].mxu1  ;;  %13104 = vmatprep.subr.bf16.mxu1 %v14228_v26  ;;  %v214_v16 = vld [vmem:[%s15934_s0 + $0x58] sm:$0xff]  ;;  %v14267_v20 = vld [vmem:[%s14664_s5 + $0x1740] sm:$0xff]  }
 0x2ec   : > { %v15574_v29 = vadd.f32 %v12802_v24, %v9864_v23  ;;  %13083 = vmatpush3.bf16.msra.mxu0 %v14227_v22  ;;  %v2690_v17 = vrot.slane %v214_v16, %v14699_v34  ;;  %v14266_v18 = vld [vmem:[%s14664_s5 + $0x16b8] sm:$0xff]   ;;  %v2683_v19 = vcombine.high %v214_v16, %v214_v16  ;;  %v14269_v24 = vld [vmem:[%s14664_s5 + $0x17c0] sm:$0xff]   ;;  %v14304_v16 = vld [vmem:[%s14664_s5 + $0x1848] sm:$0xff]  }
 0x2ed   : > { %13084 = vmatprep.subr.bf16.mxu0 %v14230_v30  ;;  %v14268_v26 = vld [vmem:[%s14664_s5 + $0x1700] sm:$0xff]  }
 0x2ee   : > { %13105 = vmatpush3.bf16.msra.mxu1 %v14229_v28  ;;  %v2698_v21 = vcombine.high %v2690_v17, %v2690_v17  ;;  %v2706_v22 = vrot.slane %v2690_v17, %v14699_v34  ;;  %v15624_v23 = vrot.slane %v2683_v19, %v14699_v34  ;;  %v14305_v17 = vld [vmem:[%s14664_s5 + $0x1808] sm:$0xff]  }
 0x2ef   : > { %13106 = vmatprep.subr.bf16.mxu1 %v14232_v32  ;;  %v14307_v19 = vld [vmem:[%s14664_s5 + $0x1888] sm:$0xff]  }
 0x2f0   : > { %13085 = vmatpush3.bf16.msra.mxu0 %v14231_v31  ;;  %v2720_v25 = vrot.slane %v2698_v21, %v14699_v34  ;;  %v2699_v27 = vcombine.high %v15624_v23, %v15624_v23  ;;  %v2728_v28 = vcombine.high %v2706_v22, %v2706_v22  ;;  %v14270_v31 = vld [vmem:[%s14664_s5 + $0x1780] sm:$0xff]   ;;  %v14309_v21 = vld [vmem:[%s14664_s5 + $0x1810] sm:$0xff]  }
 0x2f1   : > { %13114 = vmatprep.subr.bf16.mxu0 %v14235_v36 }
 0x2f2   : > { %13107 = vmatpush3.bf16.msra.mxu1 %v14234_v33  ;;  %v2730_v30 = vcombine.high %v2720_v25, %v2720_v25  ;;  %v2727_v32 = vrot.slane %v2699_v27, %v14699_v34  ;;  %v14273_v33 = vld [vmem:[%s14664_s5 + $0x17c8] sm:$0xff]   ;;  %v14315_v27 = vld [vmem:[%s14664_s5 + $0x1898] sm:$0xff]  }
 0x2f3   : > { %10422 = vmatmul.mubr.bf16.vlgmr.msra.gmra.mrb[84].mxu0 %v2664_v35  ;;  %13136 = vmatprep.subr.bf16.mxu1 %v14237_v38  ;;  %v14272_v35 = vld [vmem:[%s14664_s5 + $0x1708] sm:$0xff]  }
 0x2f4   : > { %13115 = vmatpush3.bf16.msra.mxu0 %v14236_v37  ;;  %10501 = vmatprep.mubr.bf16.mxu0 %v2720_v25  ;;  %v2731_v36 = vcombine.high %v2727_v32, %v2727_v32  ;;  %v14275_v37 = vld [vmem:[%s14664_s5 + $0x1750] sm:$0xff]   ;;  %v14274_v38 = vld [vmem:[%s14664_s5 + $0x1788] sm:$0xff]   ;;  %v14313_v25 = vld [vmem:[%s14664_s5 + $0x1818] sm:$0xff]  }
 0x2f5   : > { %10462 = vmatmul.mubr.bf16.vlgmr.msra.gmra.mrb[84].mxu1 %v2680_v40  ;;  %13116 = vmatprep.subr.bf16.mxu0 %v14239_v41  ;;  %v14276_v40 = vld [vmem:[%s14664_s5 + $0x1710] sm:$0xff]   ;;  %v14279_v41 = vld [vmem:[%s14664_s5 + $0x1758] sm:$0xff]  }
 0x2f6   : > { %13137 = vmatpush3.bf16.msra.mxu1 %v14238_v39  ;;  %10541 = vmatprep.mubr.bf16.mxu1 %v2730_v30  ;;  %v14277_v39 = vld [vmem:[%s14664_s5 + $0x17d0] sm:$0xff]   ;;  %v14318_v30 = vld [vmem:[%s14664_s5 + $0x18e0] sm:$0xff]  }
 0x2f7   : > { %13138 = vmatprep.subr.bf16.mxu1 %v14241_v43  ;;  %v14281_v43 = vld [vmem:[%s14664_s5 + $0x17d8] sm:$0xff]  }
 0x2f8   : > { %13117 = vmatpush3.bf16.msra.mxu0 %v14240_v42  ;;  %v14278_v42 = vld [vmem:[%s14664_s5 + $0x1790] sm:$0xff]  }
 0x2f9   : > { %13118 = vmatprep.subr.bf16.mxu0 %v14243_v45  ;;  %v14283_v45 = vld [vmem:[%s14664_s5 + $0x1760] sm:$0xff]  }
 0x2fa   : > { %13139 = vmatpush3.bf16.msra.mxu1 %v14242_v44  ;;  %v14280_v44 = vld [vmem:[%s14664_s5 + $0x1718] sm:$0xff]  }
 0x2fb   : > { %13140 = vmatprep.subr.bf16.mxu1 %v14245_v47  ;;  %v14285_v47 = vld [vmem:[%s14664_s5 + $0x17e0] sm:$0xff]  }
 0x2fc   : > { %13119 = vmatpush3.bf16.msra.mxu0 %v14244_v46  ;;  %v14282_v46 = vld [vmem:[%s14664_s5 + $0x1798] sm:$0xff]  }
 0x2fd   : > { %13120 = vmatprep.subr.bf16.mxu0 %v14247_v49  ;;  %v14287_v49 = vld [vmem:[%s14664_s5 + $0x1768] sm:$0xff]  }
 0x2fe   : > { %13141 = vmatpush3.bf16.msra.mxu1 %v14246_v48  ;;  %v14284_v48 = vld [vmem:[%s14664_s5 + $0x1720] sm:$0xff]  }
 0x2ff   : > { %13142 = vmatprep.subr.bf16.mxu1 %v14249_v51 }
 0x300   : > { %13121 = vmatpush3.bf16.msra.mxu0 %v14248_v50  ;;  %v14286_v50 = vld [vmem:[%s14664_s5 + $0x17a0] sm:$0xff]  }
 0x301   : > { %13122 = vmatprep.subr.bf16.mxu0 %v14251_v53 }
 0x302   : > { %13143 = vmatpush3.bf16.msra.mxu1 %v14250_v52  ;;  %v14289_v52 = vld [vmem:[%s14664_s5 + $0x17e8] sm:$0xff]  }
 0x303   : > { %13144 = vmatprep.subr.bf16.mxu1 %v14253_v55 }
 0x304   : > { %13123 = vmatpush3.bf16.msra.mxu0 %v14252_v54  ;;  %v14288_v54 = vld [vmem:[%s14664_s5 + $0x1728] sm:$0xff]  }
 0x305   : > { %13124 = vmatprep.subr.bf16.mxu0 %v14255_v57 }
 0x306   : > { %v12822_v59 = vpop.f32.mrb[60].mxu0  ;;  %13145 = vmatpush3.bf16.msra.mxu1 %v14254_v56 }
 0x307   : > { %v12823_v61 = vpop.f32.mrb[61].mxu0  ;;  %13146 = vmatprep.subr.bf16.mxu1 %v14257_v60 }
 0x308   : > { %v12824_v63 = vadd.f32 %v12823_v61, %v12822_v59  ;;  %v12825_v0 = vpop.f32.mrb[62].mxu0  ;;  %v12844_v1 = vpop.f32.mrb[60].mxu1  ;;  %13125 = vmatpush3.bf16.msra.mxu0 %v14256_v58  ;;  %v14290_v58 = vld [vmem:[%s14664_s5 + $0x17a8] sm:$0xff]   ;;  %v14291_v59 = vld [vmem:[%s14664_s5 + $0x1770] sm:$0xff]  }
 0x309   : > { %v12826_v2 = vpop.f32.mrb[63].mxu0  ;;  %v12845_v3 = vpop.f32.mrb[61].mxu1  ;;  %13126 = vmatprep.subr.bf16.mxu0 %v14259_v4  ;;  %v14294_v4 = vld [vmem:[%s14664_s5 + $0x17b0] sm:$0xff]  }
 0x30a   : > { %v9944_v6 = vadd.f32 %v12824_v63, %v15574_v29  ;;  %v12846_v7 = vadd.f32 %v12845_v3, %v12844_v1  ;;  %v12847_v8 = vpop.f32.mrb[62].mxu1  ;;  %13147 = vmatpush3.bf16.msra.mxu1 %v14258_v62  ;;  %v14271_v29 = vld [vmem:[%s14664_s5 + $0x1748] sm:$0xff]   ;;  %v14292_v62 = vld [vmem:[%s14664_s5 + $0x1730] sm:$0xff]  }
 0x30b   : > { %v12848_v10 = vpop.f32.mrb[63].mxu1  ;;  %13148 = vmatprep.subr.bf16.mxu1 %v14261_v9  ;;  %v14293_v2 = vld [vmem:[%s14664_s5 + $0x17f0] sm:$0xff]   ;;  %v14297_v8 = vld [vmem:[%s14664_s5 + $0x17f8] sm:$0xff]  }
 0x30c   : > { %v15611_v12 = vadd.f32 %v12846_v7, %v9944_v6  ;;  %13127 = vmatpush3.bf16.msra.mxu0 %v14260_v5  ;;  %v14295_v6 = vld [vmem:[%s14664_s5 + $0x1778] sm:$0xff]   ;;  %v2713_v10 = vrot.slane %v15624_v23, %v14699_v34  ;;  %v14311_v23 = vld [vmem:[%s14664_s5 + $0x1890] sm:$0xff]  }
 0x30d   : > { %13128 = vmatprep.subr.bf16.mxu0 %v14263_v13  ;;  %v14296_v7 = vld [vmem:[%s14664_s5 + $0x1738] sm:$0xff]   ;;  %v14302_v13 = vld [vmem:[%s14664_s5 + $0x18c0] sm:$0xff]  }
 0x30e   : > { %13149 = vmatpush3.bf16.msra.mxu1 %v14262_v11  ;;  %v14299_v9 = vld [vmem:[%s14664_s5 + $0x17b8] sm:$0xff]   ;;  %v14300_v11 = vld [vmem:[%s14664_s5 + $0x1840] sm:$0xff]  }
 0x30f   : > { %13150 = vmatprep.subr.bf16.mxu1 %v14265_v15  ;;  %v2729_v15 = vcombine.high %v2713_v10, %v2713_v10 }
 0x310   : > { %13129 = vmatpush3.bf16.msra.mxu0 %v14264_v14  ;;  %v14303_v14 = vld [vmem:[%s14664_s5 + $0x1880] sm:$0xff]  }
 0x311   : > { %13158 = vmatprep.subr.bf16.mxu0 %v14267_v20  ;;  %v14308_v20 = vld [vmem:[%s14664_s5 + $0x1850] sm:$0xff]  }
 0x312   : > { %13151 = vmatpush3.bf16.msra.mxu1 %v14266_v18  ;;  %v14306_v18 = vld [vmem:[%s14664_s5 + $0x18c8] sm:$0xff]  }
 0x313   : > { %13180 = vmatprep.subr.bf16.mxu1 %v14269_v24  ;;  %10502 = vmatmul.mubr.bf16.vlgmr.msra.gmra.mrb[88].mxu0 %v2706_v22  ;;  %v14310_v22 = vld [vmem:[%s14664_s5 + $0x18d0] sm:$0xff]   ;;  %v14312_v24 = vld [vmem:[%s14664_s5 + $0x1858] sm:$0xff]  }
 0x314   : > { %13159 = vmatpush3.bf16.msra.mxu0 %v14268_v26  ;;  %10581 = vmatprep.mubr.bf16.mxu0 %v2727_v32  ;;  %v14314_v26 = vld [vmem:[%s14664_s5 + $0x18d8] sm:$0xff]   ;;  %v14320_v32 = vld [vmem:[%s14664_s5 + $0x1868] sm:$0xff]  }
 0x315   : > { %10542 = vmatmul.mubr.bf16.vlgmr.msra.gmra.mrb[88].mxu1 %v2728_v28  ;;  %13160 = vmatprep.subr.bf16.mxu0 %v14271_v29  ;;  %v14316_v28 = vld [vmem:[%s14664_s5 + $0x1860] sm:$0xff]  }
 0x316   : > { %13181 = vmatpush3.bf16.msra.mxu1 %v14270_v31  ;;  %10621 = vmatprep.mubr.bf16.mxu1 %v2731_v36  ;;  %v14317_v29 = vld [vmem:[%s14664_s5 + $0x1820] sm:$0xff]   ;;  %v14322_v36 = vld [vmem:[%s14664_s5 + $0x18e8] sm:$0xff]  }
 0x317   : > { %13182 = vmatprep.subr.bf16.mxu1 %v14273_v33  ;;  %v14319_v31 = vld [vmem:[%s14664_s5 + $0x18a0] sm:$0xff]   ;;  %v14321_v33 = vld [vmem:[%s14664_s5 + $0x1828] sm:$0xff]  }
 0x318   : > { %13161 = vmatpush3.bf16.msra.mxu0 %v14272_v35 }
 0x319   : > { %13162 = vmatprep.subr.bf16.mxu0 %v14275_v37 }
 0x31a   : > { %13183 = vmatpush3.bf16.msra.mxu1 %v14274_v38  ;;  %v14323_v38 = vld [vmem:[%s14664_s5 + $0x18a8] sm:$0xff]  }
 0x31b   : > { %13184 = vmatprep.subr.bf16.mxu1 %v14277_v39 }
 0x31c   : > { %13163 = vmatpush3.bf16.msra.mxu0 %v14276_v40 }
 0x31d   : > { %13164 = vmatprep.subr.bf16.mxu0 %v14279_v41 }
 0x31e   : > { %13185 = vmatpush3.bf16.msra.mxu1 %v14278_v42 }
 0x31f   : > { %13186 = vmatprep.subr.bf16.mxu1 %v14281_v43 }
 0x320   : > { %13165 = vmatpush3.bf16.msra.mxu0 %v14280_v44  ;;  %v14324_v44 = vld [vmem:[%s14664_s5 + $0x1870] sm:$0xff]  }
 0x321   : > { %13166 = vmatprep.subr.bf16.mxu0 %v14283_v45  ;;  %v14325_v45 = vld [vmem:[%s14664_s5 + $0x1830] sm:$0xff]  }
 0x322   : > { %13187 = vmatpush3.bf16.msra.mxu1 %v14282_v46 }
 0x323   : > { %13188 = vmatprep.subr.bf16.mxu1 %v14285_v47 }
 0x324   : > { %13167 = vmatpush3.bf16.msra.mxu0 %v14284_v48 }
 0x325   : > { %13168 = vmatprep.subr.bf16.mxu0 %v14287_v49  ;;  %v14326_v49 = vld [vmem:[%s14664_s5 + $0x18f0] sm:$0xff]  }
 0x326   : > { %v12866_v51 = vpop.f32.mrb[64].mxu0  ;;  %13189 = vmatpush3.bf16.msra.mxu1 %v14286_v50 }
 0x327   : > { %v12867_v53 = vpop.f32.mrb[65].mxu0  ;;  %13190 = vmatprep.subr.bf16.mxu1 %v14289_v52 }
 0x328   : > { %v12868_v55 = vadd.f32 %v12867_v53, %v12866_v51  ;;  %v12869_v56 = vpop.f32.mrb[66].mxu0  ;;  %v12888_v57 = vpop.f32.mrb[64].mxu1  ;;  %13169 = vmatpush3.bf16.msra.mxu0 %v14288_v54  ;;  %v14327_v51 = vld [vmem:[%s14664_s5 + $0x18b0] sm:$0xff]   ;;  %v14328_v53 = vld [vmem:[%s14664_s5 + $0x1878] sm:$0xff]  }
 0x329   : > { %v12870_v60 = vpop.f32.mrb[67].mxu0  ;;  %v12889_v61 = vpop.f32.mrb[65].mxu1  ;;  %13170 = vmatprep.subr.bf16.mxu0 %v14291_v59  ;;  %v14329_v54 = vld [vmem:[%s14664_s5 + $0x1838] sm:$0xff]   ;;  %v215_v56 = vld [vmem:[%s15934_s0 + $0x60] sm:$0xff] }
 0x32a   : > { %v10024_v63 = vadd.f32 %v12868_v55, %v15611_v12  ;;  %v12890_v0 = vadd.f32 %v12889_v61, %v12888_v57  ;;  %v12891_v1 = vpop.f32.mrb[66].mxu1  ;;  %13191 = vmatpush3.bf16.msra.mxu1 %v14290_v58  ;;  %v14301_v12 = vld [vmem:[%s14664_s5 + $0x1800] sm:$0xff]   ;;  %v14330_v55 = vld [vmem:[%s14664_s5 + $0x18f8] sm:$0xff]   ;;  %v2739_v57 = vrot.slane %v215_v56, %v14699_v34  ;;  %v2732_v59 = vcombine.high %v215_v56, %v215_v56  ;;  %v14369_v56 = vld [vmem:[%s14664_s5 + $0x1a48] sm:$0xff]  }
 0x32b   : > { %v12892_v3 = vpop.f32.mrb[67].mxu1  ;;  %13192 = vmatprep.subr.bf16.mxu1 %v14293_v2  ;;  %v14331_v58 = vld [vmem:[%s14664_s5 + $0x18b8] sm:$0xff]   ;;  %v14332_v60 = vld [vmem:[%s14664_s5 + $0x1940] sm:$0xff]  }
 0x32c   : > { %v15658_v5 = vadd.f32 %v12890_v0, %v10024_v63  ;;  %13171 = vmatpush3.bf16.msra.mxu0 %v14292_v62  ;;  %v2747_v61 = vcombine.high %v2739_v57, %v2739_v57  ;;  %v2755_v62 = vrot.slane %v2739_v57, %v14699_v34  ;;  %v15708_v63 = vrot.slane %v2732_v59, %v14699_v34  ;;  %v14334_v0 = vld [vmem:[%s14664_s5 + $0x19c0] sm:$0xff]   ;;  %v14370_v57 = vld [vmem:[%s14664_s5 + $0x1a08] sm:$0xff]  }
 0x32d   : > { %13172 = vmatprep.subr.bf16.mxu0 %v14295_v6  ;;  %v14333_v2 = vld [vmem:[%s14664_s5 + $0x1900] sm:$0xff]   ;;  %v14372_v59 = vld [vmem:[%s14664_s5 + $0x1a88] sm:$0xff]  }
 0x32e   : > { %13193 = vmatpush3.bf16.msra.mxu1 %v14294_v4  ;;  %v2769_v1 = vrot.slane %v2747_v61, %v14699_v34  ;;  %v2748_v3 = vcombine.high %v15708_v63, %v15708_v63  ;;  %v2777_v4 = vcombine.high %v2755_v62, %v2755_v62  ;;  %v14374_v61 = vld [vmem:[%s14664_s5 + $0x1a10] sm:$0xff]  }
 0x32f   : > { %13194 = vmatprep.subr.bf16.mxu1 %v14297_v8 }
 0x330   : > { %13173 = vmatpush3.bf16.msra.mxu0 %v14296_v7  ;;  %v2779_v6 = vcombine.high %v2769_v1, %v2769_v1  ;;  %v14335_v7 = vld [vmem:[%s14664_s5 + $0x1980] sm:$0xff]   ;;  %v2776_v8 = vrot.slane %v2748_v3, %v14699_v34  ;;  %v14380_v3 = vld [vmem:[%s14664_s5 + $0x1a98] sm:$0xff]  }
 0x331   : > { %13202 = vmatprep.subr.bf16.mxu0 %v14300_v11 }
 0x332   : > { %13195 = vmatpush3.bf16.msra.mxu1 %v14299_v9  ;;  %v14338_v9 = vld [vmem:[%s14664_s5 + $0x19c8] sm:$0xff]   ;;  %v2780_v11 = vcombine.high %v2776_v8, %v2776_v8 }
 0x333   : > { %10582 = vmatmul.mubr.bf16.vlgmr.msra.gmra.mrb[92].mxu0 %v2713_v10  ;;  %13224 = vmatprep.subr.bf16.mxu1 %v14302_v13  ;;  %v14337_v10 = vld [vmem:[%s14664_s5 + $0x1908] sm:$0xff]  }
 0x334   : > { %13203 = vmatpush3.bf16.msra.mxu0 %v14301_v12  ;;  %10661 = vmatprep.mubr.bf16.mxu0 %v2769_v1  ;;  %v14340_v12 = vld [vmem:[%s14664_s5 + $0x1950] sm:$0xff]   ;;  %v14339_v13 = vld [vmem:[%s14664_s5 + $0x1988] sm:$0xff]   ;;  %v14378_v1 = vld [vmem:[%s14664_s5 + $0x1a18] sm:$0xff]  }
 0x335   : > { %10622 = vmatmul.mubr.bf16.vlgmr.msra.gmra.mrb[92].mxu1 %v2729_v15  ;;  %13204 = vmatprep.subr.bf16.mxu0 %v14304_v16  ;;  %v14341_v15 = vld [vmem:[%s14664_s5 + $0x1910] sm:$0xff]   ;;  %v14344_v16 = vld [vmem:[%s14664_s5 + $0x1958] sm:$0xff]  }
 0x336   : > { %13225 = vmatpush3.bf16.msra.mxu1 %v14303_v14  ;;  %10701 = vmatprep.mubr.bf16.mxu1 %v2779_v6  ;;  %v14342_v14 = vld [vmem:[%s14664_s5 + $0x19d0] sm:$0xff]   ;;  %v14383_v6 = vld [vmem:[%s14664_s5 + $0x1ae0] sm:$0xff]  }
 0x337   : > { %13226 = vmatprep.subr.bf16.mxu1 %v14306_v18  ;;  %v14346_v18 = vld [vmem:[%s14664_s5 + $0x19d8] sm:$0xff]  }
 0x338   : > { %13205 = vmatpush3.bf16.msra.mxu0 %v14305_v17  ;;  %v14343_v17 = vld [vmem:[%s14664_s5 + $0x1990] sm:$0xff]  }
 0x339   : > { %13206 = vmatprep.subr.bf16.mxu0 %v14308_v20  ;;  %v14348_v20 = vld [vmem:[%s14664_s5 + $0x1960] sm:$0xff]  }
 0x33a   : > { %13227 = vmatpush3.bf16.msra.mxu1 %v14307_v19  ;;  %v14345_v19 = vld [vmem:[%s14664_s5 + $0x1918] sm:$0xff]  }
 0x33b   : > { %13228 = vmatprep.subr.bf16.mxu1 %v14310_v22  ;;  %v14350_v22 = vld [vmem:[%s14664_s5 + $0x19e0] sm:$0xff]  }
 0x33c   : > { %13207 = vmatpush3.bf16.msra.mxu0 %v14309_v21  ;;  %v14347_v21 = vld [vmem:[%s14664_s5 + $0x1998] sm:$0xff]  }
 0x33d   : > { %13208 = vmatprep.subr.bf16.mxu0 %v14312_v24  ;;  %v14352_v24 = vld [vmem:[%s14664_s5 + $0x1968] sm:$0xff]  }
 0x33e   : > { %13229 = vmatpush3.bf16.msra.mxu1 %v14311_v23  ;;  %v14349_v23 = vld [vmem:[%s14664_s5 + $0x1920] sm:$0xff]  }
 0x33f   : > { %13230 = vmatprep.subr.bf16.mxu1 %v14314_v26 }
 0x340   : > { %13209 = vmatpush3.bf16.msra.mxu0 %v14313_v25  ;;  %v14351_v25 = vld [vmem:[%s14664_s5 + $0x19a0] sm:$0xff]  }
 0x341   : > { %13210 = vmatprep.subr.bf16.mxu0 %v14316_v28 }
 0x342   : > { %13231 = vmatpush3.bf16.msra.mxu1 %v14315_v27  ;;  %v14354_v27 = vld [vmem:[%s14664_s5 + $0x19e8] sm:$0xff]  }
 0x343   : > { %13232 = vmatprep.subr.bf16.mxu1 %v14318_v30 }
 0x344   : > { %13211 = vmatpush3.bf16.msra.mxu0 %v14317_v29  ;;  %v14353_v29 = vld [vmem:[%s14664_s5 + $0x1928] sm:$0xff]  }
 0x345   : > { %13212 = vmatprep.subr.bf16.mxu0 %v14320_v32 }
 0x346   : > { %v12910_v35 = vpop.f32.mrb[68].mxu0  ;;  %13233 = vmatpush3.bf16.msra.mxu1 %v14319_v31 }
 0x347   : > { %v12911_v37 = vpop.f32.mrb[69].mxu0  ;;  %13234 = vmatprep.subr.bf16.mxu1 %v14322_v36 }
 0x348   : > { %v12912_v39 = vadd.f32 %v12911_v37, %v12910_v35  ;;  %v12913_v40 = vpop.f32.mrb[70].mxu0  ;;  %v12932_v41 = vpop.f32.mrb[68].mxu1  ;;  %13213 = vmatpush3.bf16.msra.mxu0 %v14321_v33  ;;  %v14355_v33 = vld [vmem:[%s14664_s5 + $0x19a8] sm:$0xff]   ;;  %v14356_v35 = vld [vmem:[%s14664_s5 + $0x1970] sm:$0xff]  }
 0x349   : > { %v12914_v42 = vpop.f32.mrb[71].mxu0  ;;  %v12933_v43 = vpop.f32.mrb[69].mxu1  ;;  %13214 = vmatprep.subr.bf16.mxu0 %v14324_v44  ;;  %v14359_v44 = vld [vmem:[%s14664_s5 + $0x19b0] sm:$0xff]  }
 0x34a   : > { %v10104_v46 = vadd.f32 %v12912_v39, %v15658_v5  ;;  %v12934_v47 = vadd.f32 %v12933_v43, %v12932_v41  ;;  %v12935_v48 = vpop.f32.mrb[70].mxu1  ;;  %13235 = vmatpush3.bf16.msra.mxu1 %v14323_v38  ;;  %v14336_v5 = vld [vmem:[%s14664_s5 + $0x1948] sm:$0xff]   ;;  %v14357_v38 = vld [vmem:[%s14664_s5 + $0x1930] sm:$0xff]  }
 0x34b   : > { %v12936_v50 = vpop.f32.mrb[71].mxu1  ;;  %13236 = vmatprep.subr.bf16.mxu1 %v14326_v49  ;;  %v14358_v42 = vld [vmem:[%s14664_s5 + $0x19f0] sm:$0xff]   ;;  %v14362_v48 = vld [vmem:[%s14664_s5 + $0x19f8] sm:$0xff]  }
 0x34c   : > { %v15695_v52 = vadd.f32 %v12934_v47, %v10104_v46  ;;  %13215 = vmatpush3.bf16.msra.mxu0 %v14325_v45  ;;  %v14360_v46 = vld [vmem:[%s14664_s5 + $0x1978] sm:$0xff]   ;;  %v2762_v50 = vrot.slane %v15708_v63, %v14699_v34  ;;  %v14376_v63 = vld [vmem:[%s14664_s5 + $0x1a90] sm:$0xff]  }
 0x34d   : > { %13216 = vmatprep.subr.bf16.mxu0 %v14328_v53  ;;  %v14361_v47 = vld [vmem:[%s14664_s5 + $0x1938] sm:$0xff]   ;;  %v14367_v53 = vld [vmem:[%s14664_s5 + $0x1ac0] sm:$0xff]  }
 0x34e   : > { %13237 = vmatpush3.bf16.msra.mxu1 %v14327_v51  ;;  %v14364_v49 = vld [vmem:[%s14664_s5 + $0x19b8] sm:$0xff]   ;;  %v14365_v51 = vld [vmem:[%s14664_s5 + $0x1a40] sm:$0xff]  }
 0x34f   : > { %13238 = vmatprep.subr.bf16.mxu1 %v14330_v55  ;;  %v2778_v55 = vcombine.high %v2762_v50, %v2762_v50 }
 0x350   : > { %13217 = vmatpush3.bf16.msra.mxu0 %v14329_v54  ;;  %v14368_v54 = vld [vmem:[%s14664_s5 + $0x1a80] sm:$0xff]  }
 0x351   : > { %13246 = vmatprep.subr.bf16.mxu0 %v14332_v60  ;;  %v14373_v60 = vld [vmem:[%s14664_s5 + $0x1a50] sm:$0xff]  }
 0x352   : > { %13239 = vmatpush3.bf16.msra.mxu1 %v14331_v58  ;;  %v14371_v58 = vld [vmem:[%s14664_s5 + $0x1ac8] sm:$0xff]  }
 0x353   : > { %13268 = vmatprep.subr.bf16.mxu1 %v14334_v0  ;;  %10662 = vmatmul.mubr.bf16.vlgmr.msra.gmra.mrb[96].mxu0 %v2755_v62  ;;  %v14375_v62 = vld [vmem:[%s14664_s5 + $0x1ad0] sm:$0xff]   ;;  %v14377_v0 = vld [vmem:[%s14664_s5 + $0x1a58] sm:$0xff]  }
 0x354   : > { %13247 = vmatpush3.bf16.msra.mxu0 %v14333_v2  ;;  %10741 = vmatprep.mubr.bf16.mxu0 %v2776_v8  ;;  %v14379_v2 = vld [vmem:[%s14664_s5 + $0x1ad8] sm:$0xff]   ;;  %v14385_v8 = vld [vmem:[%s14664_s5 + $0x1a68] sm:$0xff]  }
 0x355   : > { %10702 = vmatmul.mubr.bf16.vlgmr.msra.gmra.mrb[96].mxu1 %v2777_v4  ;;  %13248 = vmatprep.subr.bf16.mxu0 %v14336_v5  ;;  %v14381_v4 = vld [vmem:[%s14664_s5 + $0x1a60] sm:$0xff]  }
 0x356   : > { %13269 = vmatpush3.bf16.msra.mxu1 %v14335_v7  ;;  %10781 = vmatprep.mubr.bf16.mxu1 %v2780_v11  ;;  %v14382_v5 = vld [vmem:[%s14664_s5 + $0x1a20] sm:$0xff]   ;;  %v14387_v11 = vld [vmem:[%s14664_s5 + $0x1ae8] sm:$0xff]  }
 0x357   : > { %13270 = vmatprep.subr.bf16.mxu1 %v14338_v9  ;;  %v14384_v7 = vld [vmem:[%s14664_s5 + $0x1aa0] sm:$0xff]   ;;  %v14386_v9 = vld [vmem:[%s14664_s5 + $0x1a28] sm:$0xff]  }
 0x358   : > { %13249 = vmatpush3.bf16.msra.mxu0 %v14337_v10 }
 0x359   : > { %13250 = vmatprep.subr.bf16.mxu0 %v14340_v12 }
 0x35a   : > { %13271 = vmatpush3.bf16.msra.mxu1 %v14339_v13  ;;  %v14388_v13 = vld [vmem:[%s14664_s5 + $0x1aa8] sm:$0xff]  }
 0x35b   : > { %13272 = vmatprep.subr.bf16.mxu1 %v14342_v14 }
 0x35c   : > { %13251 = vmatpush3.bf16.msra.mxu0 %v14341_v15 }
 0x35d   : > { %13252 = vmatprep.subr.bf16.mxu0 %v14344_v16 }
 0x35e   : > { %13273 = vmatpush3.bf16.msra.mxu1 %v14343_v17 }
 0x35f   : > { %13274 = vmatprep.subr.bf16.mxu1 %v14346_v18 }
 0x360   : > { %13253 = vmatpush3.bf16.msra.mxu0 %v14345_v19  ;;  %v14389_v19 = vld [vmem:[%s14664_s5 + $0x1a70] sm:$0xff]  }
 0x361   : > { %13254 = vmatprep.subr.bf16.mxu0 %v14348_v20  ;;  %v14390_v20 = vld [vmem:[%s14664_s5 + $0x1a30] sm:$0xff]  }
 0x362   : > { %13275 = vmatpush3.bf16.msra.mxu1 %v14347_v21 }
 0x363   : > { %13276 = vmatprep.subr.bf16.mxu1 %v14350_v22 }
 0x364   : > { %13255 = vmatpush3.bf16.msra.mxu0 %v14349_v23 }
 0x365   : > { %13256 = vmatprep.subr.bf16.mxu0 %v14352_v24  ;;  %v14391_v24 = vld [vmem:[%s14664_s5 + $0x1af0] sm:$0xff]  }
 0x366   : > { %v12954_v26 = vpop.f32.mrb[72].mxu0  ;;  %13277 = vmatpush3.bf16.msra.mxu1 %v14351_v25 }
 0x367   : > { %v12955_v28 = vpop.f32.mrb[73].mxu0  ;;  %13278 = vmatprep.subr.bf16.mxu1 %v14354_v27 }
 0x368   : > { %v12956_v30 = vadd.f32 %v12955_v28, %v12954_v26  ;;  %v12957_v31 = vpop.f32.mrb[74].mxu0  ;;  %v12976_v32 = vpop.f32.mrb[72].mxu1  ;;  %13257 = vmatpush3.bf16.msra.mxu0 %v14353_v29  ;;  %v14392_v26 = vld [vmem:[%s14664_s5 + $0x1ab0] sm:$0xff]   ;;  %v14393_v28 = vld [vmem:[%s14664_s5 + $0x1a78] sm:$0xff]  }
 0x369   : > { %v12958_v36 = vpop.f32.mrb[75].mxu0  ;;  %v12977_v37 = vpop.f32.mrb[73].mxu1  ;;  %13258 = vmatprep.subr.bf16.mxu0 %v14356_v35  ;;  %v14394_v29 = vld [vmem:[%s14664_s5 + $0x1a38] sm:$0xff]   ;;  %v216_v31 = vld [vmem:[%s15934_s0 + $0x68] sm:$0xff] }
 0x36a   : > { %v10184_v39 = vadd.f32 %v12956_v30, %v15695_v52  ;;  %v12978_v40 = vadd.f32 %v12977_v37, %v12976_v32  ;;  %v12979_v41 = vpop.f32.mrb[74].mxu1  ;;  %13279 = vmatpush3.bf16.msra.mxu1 %v14355_v33  ;;  %v14366_v52 = vld [vmem:[%s14664_s5 + $0x1a00] sm:$0xff]   ;;  %v14395_v30 = vld [vmem:[%s14664_s5 + $0x1af8] sm:$0xff]   ;;  %v2788_v32 = vrot.slane %v216_v31, %v14699_v34  ;;  %v2781_v35 = vcombine.high %v216_v31, %v216_v31  ;;  %v14434_v31 = vld [vmem:[%s14664_s5 + $0x1c48] sm:$0xff]  }
 0x36b   : > { %v12980_v43 = vpop.f32.mrb[75].mxu1  ;;  %13280 = vmatprep.subr.bf16.mxu1 %v14358_v42  ;;  %v14396_v33 = vld [vmem:[%s14664_s5 + $0x1ab8] sm:$0xff]   ;;  %v14397_v36 = vld [vmem:[%s14664_s5 + $0x1b40] sm:$0xff]  }
 0x36c   : > { %v15742_v45 = vadd.f32 %v12978_v40, %v10184_v39  ;;  %13259 = vmatpush3.bf16.msra.mxu0 %v14357_v38  ;;  %v2796_v37 = vcombine.high %v2788_v32, %v2788_v32  ;;  %v2804_v38 = vrot.slane %v2788_v32, %v14699_v34  ;;  %v15792_v39 = vrot.slane %v2781_v35, %v14699_v34  ;;  %v14399_v40 = vld [vmem:[%s14664_s5 + $0x1bc0] sm:$0xff]   ;;  %v14435_v32 = vld [vmem:[%s14664_s5 + $0x1c08] sm:$0xff]  }
 0x36d   : > { %13260 = vmatprep.subr.bf16.mxu0 %v14360_v46  ;;  %v14398_v42 = vld [vmem:[%s14664_s5 + $0x1b00] sm:$0xff]   ;;  %v14437_v35 = vld [vmem:[%s14664_s5 + $0x1c88] sm:$0xff]  }
 0x36e   : > { %13281 = vmatpush3.bf16.msra.mxu1 %v14359_v44  ;;  %v2818_v41 = vrot.slane %v2796_v37, %v14699_v34  ;;  %v2797_v43 = vcombine.high %v15792_v39, %v15792_v39  ;;  %v2826_v44 = vcombine.high %v2804_v38, %v2804_v38  ;;  %v14439_v37 = vld [vmem:[%s14664_s5 + $0x1c10] sm:$0xff]  }
 0x36f   : > { %13282 = vmatprep.subr.bf16.mxu1 %v14362_v48 }
 0x370   : > { %13261 = vmatpush3.bf16.msra.mxu0 %v14361_v47  ;;  %v2828_v46 = vcombine.high %v2818_v41, %v2818_v41  ;;  %v14400_v47 = vld [vmem:[%s14664_s5 + $0x1b80] sm:$0xff]   ;;  %v2825_v48 = vrot.slane %v2797_v43, %v14699_v34  ;;  %v14445_v43 = vld [vmem:[%s14664_s5 + $0x1c98] sm:$0xff]  }
 0x371   : > { %13290 = vmatprep.subr.bf16.mxu0 %v14365_v51 }
 0x372   : > { %13283 = vmatpush3.bf16.msra.mxu1 %v14364_v49  ;;  %v14403_v49 = vld [vmem:[%s14664_s5 + $0x1bc8] sm:$0xff]   ;;  %v2829_v51 = vcombine.high %v2825_v48, %v2825_v48 }
 0x373   : > { %10742 = vmatmul.mubr.bf16.vlgmr.msra.gmra.mrb[100].mxu0 %v2762_v50  ;;  %13312 = vmatprep.subr.bf16.mxu1 %v14367_v53  ;;  %v14402_v50 = vld [vmem:[%s14664_s5 + $0x1b08] sm:$0xff]  }
 0x374   : > { %13291 = vmatpush3.bf16.msra.mxu0 %v14366_v52  ;;  %10821 = vmatprep.mubr.bf16.mxu0 %v2818_v41  ;;  %v14405_v52 = vld [vmem:[%s14664_s5 + $0x1b50] sm:$0xff]   ;;  %v14404_v53 = vld [vmem:[%s14664_s5 + $0x1b88] sm:$0xff]   ;;  %v14443_v41 = vld [vmem:[%s14664_s5 + $0x1c18] sm:$0xff]  }
 0x375   : > { %10782 = vmatmul.mubr.bf16.vlgmr.msra.gmra.mrb[100].mxu1 %v2778_v55  ;;  %13292 = vmatprep.subr.bf16.mxu0 %v14369_v56  ;;  %v14406_v55 = vld [vmem:[%s14664_s5 + $0x1b10] sm:$0xff]   ;;  %v14409_v56 = vld [vmem:[%s14664_s5 + $0x1b58] sm:$0xff]  }
 0x376   : > { %13313 = vmatpush3.bf16.msra.mxu1 %v14368_v54  ;;  %10861 = vmatprep.mubr.bf16.mxu1 %v2828_v46  ;;  %v14407_v54 = vld [vmem:[%s14664_s5 + $0x1bd0] sm:$0xff]   ;;  %v14448_v46 = vld [vmem:[%s14664_s5 + $0x1ce0] sm:$0xff]  }
 0x377   : > { %13314 = vmatprep.subr.bf16.mxu1 %v14371_v58  ;;  %v14411_v58 = vld [vmem:[%s14664_s5 + $0x1bd8] sm:$0xff]  }
 0x378   : > { %13293 = vmatpush3.bf16.msra.mxu0 %v14370_v57  ;;  %v14408_v57 = vld [vmem:[%s14664_s5 + $0x1b90] sm:$0xff]  }
 0x379   : > { %13294 = vmatprep.subr.bf16.mxu0 %v14373_v60  ;;  %v14413_v60 = vld [vmem:[%s14664_s5 + $0x1b60] sm:$0xff]  }
 0x37a   : > { %13315 = vmatpush3.bf16.msra.mxu1 %v14372_v59  ;;  %v14410_v59 = vld [vmem:[%s14664_s5 + $0x1b18] sm:$0xff]  }
 0x37b   : > { %13316 = vmatprep.subr.bf16.mxu1 %v14375_v62  ;;  %v14415_v62 = vld [vmem:[%s14664_s5 + $0x1be0] sm:$0xff]  }
 0x37c   : > { %13295 = vmatpush3.bf16.msra.mxu0 %v14374_v61  ;;  %v14412_v61 = vld [vmem:[%s14664_s5 + $0x1b98] sm:$0xff]  }
 0x37d   : > { %13296 = vmatprep.subr.bf16.mxu0 %v14377_v0  ;;  %v14417_v0 = vld [vmem:[%s14664_s5 + $0x1b68] sm:$0xff]  }
 0x37e   : > { %13317 = vmatpush3.bf16.msra.mxu1 %v14376_v63  ;;  %v14414_v63 = vld [vmem:[%s14664_s5 + $0x1b20] sm:$0xff]  }
 0x37f   : > { %13318 = vmatprep.subr.bf16.mxu1 %v14379_v2 }
 0x380   : > { %13297 = vmatpush3.bf16.msra.mxu0 %v14378_v1  ;;  %v14416_v1 = vld [vmem:[%s14664_s5 + $0x1ba0] sm:$0xff]  }
 0x381   : > { %13298 = vmatprep.subr.bf16.mxu0 %v14381_v4 }
 0x382   : > { %13319 = vmatpush3.bf16.msra.mxu1 %v14380_v3  ;;  %v14419_v3 = vld [vmem:[%s14664_s5 + $0x1be8] sm:$0xff]  }
 0x383   : > { %13320 = vmatprep.subr.bf16.mxu1 %v14383_v6 }
 0x384   : > { %13299 = vmatpush3.bf16.msra.mxu0 %v14382_v5  ;;  %v14418_v5 = vld [vmem:[%s14664_s5 + $0x1b28] sm:$0xff]  }
 0x385   : > { %13300 = vmatprep.subr.bf16.mxu0 %v14385_v8 }
 0x386   : > { %v12998_v10 = vpop.f32.mrb[76].mxu0  ;;  %13321 = vmatpush3.bf16.msra.mxu1 %v14384_v7 }
 0x387   : > { %v12999_v12 = vpop.f32.mrb[77].mxu0  ;;  %13322 = vmatprep.subr.bf16.mxu1 %v14387_v11 }
 0x388   : > { %v13000_v14 = vadd.f32 %v12999_v12, %v12998_v10  ;;  %v13001_v15 = vpop.f32.mrb[78].mxu0  ;;  %v13020_v16 = vpop.f32.mrb[76].mxu1  ;;  %13301 = vmatpush3.bf16.msra.mxu0 %v14386_v9  ;;  %v14420_v9 = vld [vmem:[%s14664_s5 + $0x1ba8] sm:$0xff]   ;;  %v14421_v10 = vld [vmem:[%s14664_s5 + $0x1b70] sm:$0xff]  }
 0x389   : > { %v13002_v17 = vpop.f32.mrb[79].mxu0  ;;  %v13021_v18 = vpop.f32.mrb[77].mxu1  ;;  %13302 = vmatprep.subr.bf16.mxu0 %v14389_v19  ;;  %v14424_v19 = vld [vmem:[%s14664_s5 + $0x1bb0] sm:$0xff]  }
 0x38a   : > { %v10264_v21 = vadd.f32 %v13000_v14, %v15742_v45  ;;  %v13022_v22 = vadd.f32 %v13021_v18, %v13020_v16  ;;  %v13023_v23 = vpop.f32.mrb[78].mxu1  ;;  %13323 = vmatpush3.bf16.msra.mxu1 %v14388_v13  ;;  %v14401_v45 = vld [vmem:[%s14664_s5 + $0x1b48] sm:$0xff]   ;;  %v14422_v13 = vld [vmem:[%s14664_s5 + $0x1b30] sm:$0xff]  }
 0x38b   : > { %v13024_v25 = vpop.f32.mrb[79].mxu1  ;;  %13324 = vmatprep.subr.bf16.mxu1 %v14391_v24  ;;  %v14423_v17 = vld [vmem:[%s14664_s5 + $0x1bf0] sm:$0xff]   ;;  %v14427_v23 = vld [vmem:[%s14664_s5 + $0x1bf8] sm:$0xff]  }
 0x38c   : > { %v15779_v27 = vadd.f32 %v13022_v22, %v10264_v21  ;;  %13303 = vmatpush3.bf16.msra.mxu0 %v14390_v20  ;;  %v14425_v21 = vld [vmem:[%s14664_s5 + $0x1b78] sm:$0xff]   ;;  %v2811_v25 = vrot.slane %v15792_v39, %v14699_v34  ;;  %v14441_v39 = vld [vmem:[%s14664_s5 + $0x1c90] sm:$0xff]  }
 0x38d   : > { %13304 = vmatprep.subr.bf16.mxu0 %v14393_v28  ;;  %v14426_v22 = vld [vmem:[%s14664_s5 + $0x1b38] sm:$0xff]   ;;  %v14432_v28 = vld [vmem:[%s14664_s5 + $0x1cc0] sm:$0xff]  }
 0x38e   : > { %13325 = vmatpush3.bf16.msra.mxu1 %v14392_v26  ;;  %v14429_v24 = vld [vmem:[%s14664_s5 + $0x1bb8] sm:$0xff]   ;;  %v14430_v26 = vld [vmem:[%s14664_s5 + $0x1c40] sm:$0xff]  }
 0x38f   : > { %13326 = vmatprep.subr.bf16.mxu1 %v14395_v30  ;;  %v2827_v30 = vcombine.high %v2811_v25, %v2811_v25 }
 0x390   : > { %13305 = vmatpush3.bf16.msra.mxu0 %v14394_v29  ;;  %v14433_v29 = vld [vmem:[%s14664_s5 + $0x1c80] sm:$0xff]  }
 0x391   : > { %13334 = vmatprep.subr.bf16.mxu0 %v14397_v36  ;;  %v14438_v36 = vld [vmem:[%s14664_s5 + $0x1c50] sm:$0xff]  }
 0x392   : > { %13327 = vmatpush3.bf16.msra.mxu1 %v14396_v33  ;;  %v14436_v33 = vld [vmem:[%s14664_s5 + $0x1cc8] sm:$0xff]  }
 0x393   : > { %13356 = vmatprep.subr.bf16.mxu1 %v14399_v40  ;;  %10822 = vmatmul.mubr.bf16.vlgmr.msra.gmra.mrb[104].mxu0 %v2804_v38  ;;  %v14440_v38 = vld [vmem:[%s14664_s5 + $0x1cd0] sm:$0xff]   ;;  %v14442_v40 = vld [vmem:[%s14664_s5 + $0x1c58] sm:$0xff]  }
 0x394   : > { %13335 = vmatpush3.bf16.msra.mxu0 %v14398_v42  ;;  %10901 = vmatprep.mubr.bf16.mxu0 %v2825_v48  ;;  %v14444_v42 = vld [vmem:[%s14664_s5 + $0x1cd8] sm:$0xff]   ;;  %v14450_v48 = vld [vmem:[%s14664_s5 + $0x1c68] sm:$0xff]  }
 0x395   : > { %10862 = vmatmul.mubr.bf16.vlgmr.msra.gmra.mrb[104].mxu1 %v2826_v44  ;;  %13336 = vmatprep.subr.bf16.mxu0 %v14401_v45  ;;  %v14446_v44 = vld [vmem:[%s14664_s5 + $0x1c60] sm:$0xff]  }
 0x396   : > { %13357 = vmatpush3.bf16.msra.mxu1 %v14400_v47  ;;  %10941 = vmatprep.mubr.bf16.mxu1 %v2829_v51  ;;  %v14447_v45 = vld [vmem:[%s14664_s5 + $0x1c20] sm:$0xff]   ;;  %v14452_v51 = vld [vmem:[%s14664_s5 + $0x1ce8] sm:$0xff]  }
 0x397   : > { %13358 = vmatprep.subr.bf16.mxu1 %v14403_v49  ;;  %v14449_v47 = vld [vmem:[%s14664_s5 + $0x1ca0] sm:$0xff]   ;;  %v14451_v49 = vld [vmem:[%s14664_s5 + $0x1c28] sm:$0xff]  }
 0x398   : > { %13337 = vmatpush3.bf16.msra.mxu0 %v14402_v50 }
 0x399   : > { %13338 = vmatprep.subr.bf16.mxu0 %v14405_v52 }
 0x39a   : > { %13359 = vmatpush3.bf16.msra.mxu1 %v14404_v53  ;;  %v14453_v53 = vld [vmem:[%s14664_s5 + $0x1ca8] sm:$0xff]  }
 0x39b   : > { %13360 = vmatprep.subr.bf16.mxu1 %v14407_v54 }
 0x39c   : > { %13339 = vmatpush3.bf16.msra.mxu0 %v14406_v55 }
 0x39d   : > { %13340 = vmatprep.subr.bf16.mxu0 %v14409_v56 }
 0x39e   : > { %13361 = vmatpush3.bf16.msra.mxu1 %v14408_v57 }
 0x39f   : > { %13362 = vmatprep.subr.bf16.mxu1 %v14411_v58 }
 0x3a0   : > { %13341 = vmatpush3.bf16.msra.mxu0 %v14410_v59  ;;  %v14454_v59 = vld [vmem:[%s14664_s5 + $0x1c70] sm:$0xff]  }
 0x3a1   : > { %13342 = vmatprep.subr.bf16.mxu0 %v14413_v60  ;;  %v14455_v60 = vld [vmem:[%s14664_s5 + $0x1c30] sm:$0xff]  }
 0x3a2   : > { %13363 = vmatpush3.bf16.msra.mxu1 %v14412_v61 }
 0x3a3   : > { %13364 = vmatprep.subr.bf16.mxu1 %v14415_v62 }
 0x3a4   : > { %13343 = vmatpush3.bf16.msra.mxu0 %v14414_v63 }
 0x3a5   : > { %13344 = vmatprep.subr.bf16.mxu0 %v14417_v0  ;;  %v14456_v0 = vld [vmem:[%s14664_s5 + $0x1cf0] sm:$0xff]  }
 0x3a6   : > { %v13042_v2 = vpop.f32.mrb[80].mxu0  ;;  %13365 = vmatpush3.bf16.msra.mxu1 %v14416_v1 }
 0x3a7   : > { %v13043_v4 = vpop.f32.mrb[81].mxu0  ;;  %13366 = vmatprep.subr.bf16.mxu1 %v14419_v3 }
 0x3a8   : > { %v13044_v6 = vadd.f32 %v13043_v4, %v13042_v2  ;;  %v13045_v7 = vpop.f32.mrb[82].mxu0  ;;  %v13064_v8 = vpop.f32.mrb[80].mxu1  ;;  %13345 = vmatpush3.bf16.msra.mxu0 %v14418_v5  ;;  %v14457_v2 = vld [vmem:[%s14664_s5 + $0x1cb0] sm:$0xff]   ;;  %v14458_v4 = vld [vmem:[%s14664_s5 + $0x1c78] sm:$0xff]  }
 0x3a9   : > { %v13046_v11 = vpop.f32.mrb[83].mxu0  ;;  %v13065_v12 = vpop.f32.mrb[81].mxu1  ;;  %13346 = vmatprep.subr.bf16.mxu0 %v14421_v10  ;;  %v14459_v5 = vld [vmem:[%s14664_s5 + $0x1c38] sm:$0xff]   ;;  %v217_v7 = vld [vmem:[%s15934_s0 + $0x70] sm:$0x7f] }
 0x3aa   : > { %v10344_v14 = vadd.f32 %v13044_v6, %v15779_v27  ;;  %v13066_v15 = vadd.f32 %v13065_v12, %v13064_v8  ;;  %v13067_v16 = vpop.f32.mrb[82].mxu1  ;;  %13367 = vmatpush3.bf16.msra.mxu1 %v14420_v9  ;;  %v14431_v27 = vld [vmem:[%s14664_s5 + $0x1c00] sm:$0xff]   ;;  %v14460_v6 = vld [vmem:[%s14664_s5 + $0x1cf8] sm:$0xff]   ;;  %v2837_v8 = vrot.slane %v217_v7, %v14699_v34  ;;  %v2830_v10 = vcombine.high %v217_v7, %v217_v7 }
 0x3ab   : > { %v13068_v18 = vpop.f32.mrb[83].mxu1  ;;  %13368 = vmatprep.subr.bf16.mxu1 %v14423_v17  ;;  %v14461_v9 = vld [vmem:[%s14664_s5 + $0x1cb8] sm:$0xff]   ;;  %v14462_v11 = vld [vmem:[%s14664_s5 + $0x1d40] sm:$0xff]  }
 0x3ac   : > { %v15826_v20 = vadd.f32 %v13066_v15, %v10344_v14  ;;  %13347 = vmatpush3.bf16.msra.mxu0 %v14422_v13  ;;  %v2845_v12 = vcombine.high %v2837_v8, %v2837_v8  ;;  %v2853_v13 = vrot.slane %v2837_v8, %v14699_v34  ;;  %v15876_v14 = vrot.slane %v2830_v10, %v14699_v34  ;;  %v14463_v16 = vld [vmem:[%s14664_s5 + $0x1d00] sm:$0xff]  }
 0x3ad   : > { %13348 = vmatprep.subr.bf16.mxu0 %v14425_v21  ;;  %v14558_v21 = vmov 0.0  }
 0x3ae   : > { %13369 = vmatpush3.bf16.msra.mxu1 %v14424_v19  ;;  %v2867_v15 = vrot.slane %v2845_v12, %v14699_v34  ;;  %v2846_v17 = vcombine.high %v15876_v14, %v15876_v14  ;;  %v2875_v18 = vcombine.high %v2853_v13, %v2853_v13  ;;  %v14465_v19 = vld [vmem:[%s14664_s5 + $0x1d48] sm:$0xff]  }
 0x3af   : > { %13370 = vmatprep.subr.bf16.mxu1 %v14427_v23 }
 0x3b0   : > { %13349 = vmatpush3.bf16.msra.mxu0 %v14426_v22  ;;  %v14464_v22 = vld [vmem:[%s14664_s5 + $0x1d80] sm:$0xff]   ;;  %v2874_v23 = vrot.slane %v2846_v17, %v14699_v34 }
 0x3b1   : > { %13378 = vmatprep.subr.bf16.mxu0 %v14430_v26  ;;  %v14467_v26 = vld [vmem:[%s14664_s5 + $0x1d88] sm:$0xff]  }
 0x3b2   : > { %13371 = vmatpush3.bf16.msra.mxu1 %v14429_v24  ;;  %v14466_v24 = vld [vmem:[%s14664_s5 + $0x1d08] sm:$0xff]  }
 0x3b3   : > { %10902 = vmatmul.mubr.bf16.vlgmr.msra.gmra.mrb[108].mxu0 %v2811_v25  ;;  %13400 = vmatprep.subr.bf16.mxu1 %v14432_v28  ;;  %v14468_v25 = vld [vmem:[%s14664_s5 + $0x1d50] sm:$0xff]   ;;  %v14471_v28 = vld [vmem:[%s14664_s5 + $0x1d58] sm:$0xff]  }
 0x3b4   : > { %13379 = vmatpush3.bf16.msra.mxu0 %v14431_v27  ;;  %10981 = vmatprep.mubr.bf16.mxu0 %v2867_v15  ;;  %v14469_v27 = vld [vmem:[%s14664_s5 + $0x1d10] sm:$0xff]  }
 0x3b5   : > { %10942 = vmatmul.mubr.bf16.vlgmr.msra.gmra.mrb[108].mxu1 %v2827_v30  ;;  %13380 = vmatprep.subr.bf16.mxu0 %v14434_v31  ;;  %v14472_v30 = vld [vmem:[%s14664_s5 + $0x1d18] sm:$0xff]   ;;  %v14474_v31 = vld [vmem:[%s14664_s5 + $0x1d60] sm:$0xff]  }
 0x3b6   : > { %13401 = vmatpush3.bf16.msra.mxu1 %v14433_v29  ;;  %v14470_v29 = vld [vmem:[%s14664_s5 + $0x1d90] sm:$0xff]  }
 0x3b7   : > { %13402 = vmatprep.subr.bf16.mxu1 %v14436_v33  ;;  %v14475_v33 = vld [vmem:[%s14664_s5 + $0x1d20] sm:$0xff]  }
 0x3b8   : > { %13381 = vmatpush3.bf16.msra.mxu0 %v14435_v32  ;;  %v14473_v32 = vld [vmem:[%s14664_s5 + $0x1d98] sm:$0xff]  }
 0x3b9   : > { %13382 = vmatprep.subr.bf16.mxu0 %v14438_v36  ;;  %v14476_v36 = vld [vmem:[%s14664_s5 + $0x1da0] sm:$0xff]  }
 0x3ba   : > { %13403 = vmatpush3.bf16.msra.mxu1 %v14437_v35  ;;  %v14477_v35 = vld [vmem:[%s14664_s5 + $0x1d68] sm:$0xff]  }
 0x3bb   : > { %13404 = vmatprep.subr.bf16.mxu1 %v14440_v38 }
 0x3bc   : > { %13383 = vmatpush3.bf16.msra.mxu0 %v14439_v37 }
 0x3bd   : > { %13384 = vmatprep.subr.bf16.mxu0 %v14442_v40 }
 0x3be   : > { %13405 = vmatpush3.bf16.msra.mxu1 %v14441_v39  ;;  %v14478_v39 = vld [vmem:[%s14664_s5 + $0x1d28] sm:$0xff]  }
 0x3bf   : > { %13406 = vmatprep.subr.bf16.mxu1 %v14444_v42 }
 0x3c0   : > { %13385 = vmatpush3.bf16.msra.mxu0 %v14443_v41 }
 0x3c1   : > { %13386 = vmatprep.subr.bf16.mxu0 %v14446_v44 }
 0x3c2   : > { %13407 = vmatpush3.bf16.msra.mxu1 %v14445_v43  ;;  %v14480_v43 = vld [vmem:[%s14664_s5 + $0x1d70] sm:$0xff]  }
 0x3c3   : > { %13408 = vmatprep.subr.bf16.mxu1 %v14448_v46  ;;  %v14479_v46 = vld [vmem:[%s14664_s5 + $0x1da8] sm:$0xff]  }
 0x3c4   : > { %13387 = vmatpush3.bf16.msra.mxu0 %v14447_v45 }
 0x3c5   : > { %13388 = vmatprep.subr.bf16.mxu0 %v14450_v48 }
 0x3c6   : > { %v13086_v50 = vpop.f32.mrb[84].mxu0  ;;  %13409 = vmatpush3.bf16.msra.mxu1 %v14449_v47 }
 0x3c7   : > { %v13087_v52 = vpop.f32.mrb[85].mxu0  ;;  %13410 = vmatprep.subr.bf16.mxu1 %v14452_v51  ;;  %v14481_v51 = vld [vmem:[%s14664_s5 + $0x1d30] sm:$0xff]  }
 0x3c8   : > { %v13088_v54 = vadd.f32 %v13087_v52, %v13086_v50  ;;  %v13089_v55 = vpop.f32.mrb[86].mxu0  ;;  %v13108_v56 = vpop.f32.mrb[84].mxu1  ;;  %13389 = vmatpush3.bf16.msra.mxu0 %v14451_v49 }
 0x3c9   : > { %v13090_v57 = vpop.f32.mrb[87].mxu0  ;;  %v13109_v58 = vpop.f32.mrb[85].mxu1  ;;  %13390 = vmatprep.subr.bf16.mxu0 %v14454_v59  ;;  %v14484_v55 = vld [vmem:[%s14664_s5 + $0x1d38] sm:$0xff]  }
 0x3ca   : > { %v10424_v61 = vadd.f32 %v13088_v54, %v15826_v20  ;;  %v13110_v62 = vadd.f32 %v13109_v58, %v13108_v56  ;;  %v13111_v63 = vpop.f32.mrb[86].mxu1  ;;  %13411 = vmatpush3.bf16.msra.mxu1 %v14453_v53  ;;  %v2877_v20 = vcombine.high %v2867_v15, %v2867_v15  ;;  %v14483_v53 = vld [vmem:[%s14664_s5 + $0x1d78] sm:$0xff]   ;;  %v14482_v54 = vld [vmem:[%s14664_s5 + $0x1db0] sm:$0xff]   ;;  %v2860_v56 = vrot.slane %v15876_v14, %v14699_v34 }
 0x3cb   : > { %v13112_v1 = vpop.f32.mrb[87].mxu1  ;;  %13412 = vmatprep.subr.bf16.mxu1 %v14456_v0  ;;  %v14486_v57 = vld [vmem:[%s14664_s5 + $0x1db8] sm:$0xff]   ;;  %s11190_s5 = sshll.u32 %s15945_s16, 1 }
 0x3cc   : > { %v15863_v3 = vadd.f32 %v13110_v62, %v10424_v61  ;;  %13391 = vmatpush3.bf16.msra.mxu0 %v14455_v60  ;;  %11021 = vmatprep.mubr.bf16.mxu1 %v2877_v20  ;;  %v2876_v58 = vcombine.high %v2860_v56, %v2860_v56  ;;  %s201_s19 = scalar_lea.vmem %s15937_s3, %s11190_s5 }
 0x3cd   : > { %13392 = vmatprep.subr.bf16.mxu0 %v14458_v4 }
 0x3ce   : > { %13413 = vmatpush3.bf16.msra.mxu1 %v14457_v2 }
 0x3cf   : > { %13414 = vmatprep.subr.bf16.mxu1 %v14460_v6 }
 0x3d0   : > { %13393 = vmatpush3.bf16.msra.mxu0 %v14459_v5 }
 0x3d1   : > { %13422 = vmatprep.subr.bf16.mxu0 %v14462_v11 }
 0x3d2   : > { %13415 = vmatpush3.bf16.msra.mxu1 %v14461_v9 }
 0x3d3   : > { %13453 = vmatprep.subr.bf16.mxu1 %v14558_v21  ;;  %10982 = vmatmul.mubr.bf16.vlgmr.msra.gmra.mrb[112].mxu0 %v2853_v13 }
 0x3d4   : > { %13423 = vmatpush3.bf16.msra.mxu0 %v14463_v16  ;;  %11061 = vmatprep.mubr.bf16.mxu0 %v2874_v23 }
 0x3d5   : > { %11022 = vmatmul.mubr.bf16.vlgmr.msra.gmra.mrb[112].mxu1 %v2875_v18  ;;  %13424 = vmatprep.subr.bf16.mxu0 %v14465_v19 }
 0x3d6   : > { %13454 = vmatpush3.bf16.msra.mxu1 %v14464_v22  ;;  %13469 = vmatprep.mubr.msk.bf16.mxu1 %vm14559_vm0, %v14558_v21 }
 0x3d7   : > { %13455 = vmatprep.subr.bf16.mxu1 %v14558_v21 }
 0x3d8   : > { %13425 = vmatpush3.bf16.msra.mxu0 %v14466_v24 }
 0x3d9   : > { %13426 = vmatprep.subr.bf16.mxu0 %v14468_v25 }
 0x3da   : > { %13456 = vmatpush3.bf16.msra.mxu1 %v14467_v26 }
 0x3db   : > { %13457 = vmatprep.subr.bf16.mxu1 %v14558_v21 }
 0x3dc   : > { %13427 = vmatpush3.bf16.msra.mxu0 %v14469_v27 }
 0x3dd   : > { %13428 = vmatprep.subr.bf16.mxu0 %v14471_v28 }
 0x3de   : > { %13458 = vmatpush3.bf16.msra.mxu1 %v14470_v29 }
 0x3df   : > { %13459 = vmatprep.subr.bf16.mxu1 %v14558_v21 }
 0x3e0   : > { %13429 = vmatpush3.bf16.msra.mxu0 %v14472_v30 }
 0x3e1   : > { %13430 = vmatprep.subr.bf16.mxu0 %v14474_v31 }
 0x3e2   : > { %13460 = vmatpush3.bf16.msra.mxu1 %v14473_v32 }
 0x3e3   : > { %13461 = vmatprep.subr.bf16.mxu1 %v14558_v21 }
 0x3e4   : > { %13431 = vmatpush3.bf16.msra.mxu0 %v14475_v33 }
 0x3e5   : > { %13432 = vmatprep.subr.bf16.mxu0 %v14477_v35 }
 0x3e6   : > { %v13130_v37 = vpop.f32.mrb[88].mxu0  ;;  %13462 = vmatpush3.bf16.msra.mxu1 %v14476_v36 }
 0x3e7   : > { %v13131_v38 = vpop.f32.mrb[89].mxu0  ;;  %13463 = vmatprep.subr.bf16.mxu1 %v14558_v21 }
 0x3e8   : > { %v13132_v40 = vadd.f32 %v13131_v38, %v13130_v37  ;;  %v13133_v41 = vpop.f32.mrb[90].mxu0  ;;  %v13152_v42 = vpop.f32.mrb[88].mxu1  ;;  %13433 = vmatpush3.bf16.msra.mxu0 %v14478_v39 }
 0x3e9   : > { %v13134_v44 = vpop.f32.mrb[91].mxu0  ;;  %v13153_v45 = vpop.f32.mrb[89].mxu1  ;;  %13434 = vmatprep.subr.bf16.mxu0 %v14480_v43 }
 0x3ea   : > { %v10504_v47 = vadd.f32 %v13132_v40, %v15863_v3  ;;  %v13154_v48 = vadd.f32 %v13153_v45, %v13152_v42  ;;  %v13155_v49 = vpop.f32.mrb[90].mxu1  ;;  %13464 = vmatpush3.bf16.msra.mxu1 %v14479_v46 }
 0x3eb   : > { %v13156_v50 = vpop.f32.mrb[91].mxu1  ;;  %13465 = vmatprep.subr.bf16.mxu1 %v14558_v21 }
 0x3ec   : > { %v10544_v52 = vadd.f32 %v13154_v48, %v10504_v47  ;;  %13435 = vmatpush3.bf16.msra.mxu0 %v14481_v51 }
 0x3ed   : > { %13436 = vmatprep.subr.bf16.mxu0 %v14483_v53 }
 0x3ee   : > { %13466 = vmatpush3.bf16.msra.mxu1 %v14482_v54 }
 0x3ef   : > { %13467 = vmatprep.subr.bf16.mxu1 %v14558_v21 }
 0x3f0   : > { %13437 = vmatpush3.bf16.msra.mxu0 %v14484_v55 }
 0x3f2   : > { %13468 = vmatpush3.bf16.msra.mxu1 %v14486_v57 }
 0x3f3   : > { %11062 = vmatmul.mubr.bf16.vlgmr.msra.gmra.mrb[116].mxu0 %v2860_v56 }
 0x3f5   : > { %13470 = vmatmul.mubr.bf16.vlgmr.msra.gmra.mrb[116].mxu1 %v2876_v58 }
 0x406   : > { %v13174_v59 = vpop.f32.mrb[92].mxu0 }
 0x407   : > { %v13175_v60 = vpop.f32.mrb[93].mxu0 }
 0x408   : > { %v13176_v61 = vadd.f32 %v13175_v60, %v13174_v59  ;;  %v13177_v62 = vpop.f32.mrb[94].mxu0  ;;  %v13196_v63 = vpop.f32.mrb[92].mxu1 }
 0x409   : > { %v13178_v0 = vpop.f32.mrb[95].mxu0  ;;  %v13197_v1 = vpop.f32.mrb[93].mxu1 }
 0x40a   : > { %v10584_v2 = vadd.f32 %v13176_v61, %v10544_v52  ;;  %v13198_v3 = vadd.f32 %v13197_v1, %v13196_v63  ;;  %v13199_v4 = vpop.f32.mrb[94].mxu1 }
 0x40b   : > { %v13200_v34 = vpop.f32.mrb[95].mxu1 }
 0x40c   : > { %v10624_v5 = vadd.f32 %v13198_v3, %v10584_v2 }
 0x426   : > { %v13218_v6 = vpop.f32.mrb[96].mxu0 }
 0x427   : > { %v13219_v7 = vpop.f32.mrb[97].mxu0 }
 0x428   : > { %v13220_v8 = vadd.f32 %v13219_v7, %v13218_v6  ;;  %v13221_v9 = vpop.f32.mrb[98].mxu0  ;;  %v13240_v10 = vpop.f32.mrb[96].mxu1 }
 0x429   : > { %v13222_v11 = vpop.f32.mrb[99].mxu0  ;;  %v13241_v12 = vpop.f32.mrb[97].mxu1 }
 0x42a   : > { %v10664_v13 = vadd.f32 %v13220_v8, %v10624_v5  ;;  %v13242_v14 = vadd.f32 %v13241_v12, %v13240_v10  ;;  %v13243_v15 = vpop.f32.mrb[98].mxu1 }
 0x42b   : > { %v13244_v16 = vpop.f32.mrb[99].mxu1 }
 0x42c   : > { %v10704_v17 = vadd.f32 %v13242_v14, %v10664_v13 }
 0x446   : > { %v13262_v18 = vpop.f32.mrb[100].mxu0 }
 0x447   : > { %v13263_v19 = vpop.f32.mrb[101].mxu0 }
 0x448   : > { %v13264_v20 = vadd.f32 %v13263_v19, %v13262_v18  ;;  %v13265_v21 = vpop.f32.mrb[102].mxu0  ;;  %v13284_v22 = vpop.f32.mrb[100].mxu1 }
 0x449   : > { %v13266_v23 = vpop.f32.mrb[103].mxu0  ;;  %v13285_v24 = vpop.f32.mrb[101].mxu1 }
 0x44a   : > { %v10744_v25 = vadd.f32 %v13264_v20, %v10704_v17  ;;  %v13286_v26 = vadd.f32 %v13285_v24, %v13284_v22  ;;  %v13287_v27 = vpop.f32.mrb[102].mxu1 }
 0x44b   : > { %v13288_v28 = vpop.f32.mrb[103].mxu1 }
 0x44c   : > { %v10784_v29 = vadd.f32 %v13286_v26, %v10744_v25 }
 0x466   : > { %v13306_v30 = vpop.f32.mrb[104].mxu0 }
 0x467   : > { %v13307_v31 = vpop.f32.mrb[105].mxu0 }
 0x468   : > { %v13308_v32 = vadd.f32 %v13307_v31, %v13306_v30  ;;  %v13309_v33 = vpop.f32.mrb[106].mxu0  ;;  %v13328_v35 = vpop.f32.mrb[104].mxu1 }
 0x469   : > { %v13310_v36 = vpop.f32.mrb[107].mxu0  ;;  %v13329_v37 = vpop.f32.mrb[105].mxu1 }
 0x46a   : > { %v10824_v38 = vadd.f32 %v13308_v32, %v10784_v29  ;;  %v13330_v39 = vadd.f32 %v13329_v37, %v13328_v35  ;;  %v13331_v40 = vpop.f32.mrb[106].mxu1 }
 0x46b   : > { %v13332_v41 = vpop.f32.mrb[107].mxu1 }
 0x46c   : > { %v10864_v42 = vadd.f32 %v13330_v39, %v10824_v38 }
 0x486   : > { %v13350_v43 = vpop.f32.mrb[108].mxu0 }
 0x487   : > { %v13351_v44 = vpop.f32.mrb[109].mxu0 }
 0x488   : > { %v13352_v45 = vadd.f32 %v13351_v44, %v13350_v43  ;;  %v13353_v46 = vpop.f32.mrb[110].mxu0  ;;  %v13372_v47 = vpop.f32.mrb[108].mxu1 }
 0x489   : > { %v13354_v48 = vpop.f32.mrb[111].mxu0  ;;  %v13373_v49 = vpop.f32.mrb[109].mxu1 }
 0x48a   : > { %v10904_v50 = vadd.f32 %v13352_v45, %v10864_v42  ;;  %v13374_v51 = vadd.f32 %v13373_v49, %v13372_v47  ;;  %v13375_v52 = vpop.f32.mrb[110].mxu1 }
 0x48b   : > { %v13376_v53 = vpop.f32.mrb[111].mxu1 }
 0x48c   : > { %v10944_v54 = vadd.f32 %v13374_v51, %v10904_v50 }
 0x4a6   : > { %v13394_v55 = vpop.f32.mrb[112].mxu0 }
 0x4a7   : > { %v13395_v56 = vpop.f32.mrb[113].mxu0 }
 0x4a8   : > { %v13396_v57 = vadd.f32 %v13395_v56, %v13394_v55  ;;  %v13397_v58 = vpop.f32.mrb[114].mxu0  ;;  %v13416_v59 = vpop.f32.mrb[112].mxu1 }
 0x4a9   : > { %v13398_v60 = vpop.f32.mrb[115].mxu0  ;;  %v13417_v61 = vpop.f32.mrb[113].mxu1 }
 0x4aa   : > { %v10984_v62 = vadd.f32 %v13396_v57, %v10944_v54  ;;  %v13418_v63 = vadd.f32 %v13417_v61, %v13416_v59  ;;  %v13419_v0 = vpop.f32.mrb[114].mxu1 }
 0x4ab   : > { %v13420_v1 = vpop.f32.mrb[115].mxu1 }
 0x4ac   : > { %v11024_v2 = vadd.f32 %v13418_v63, %v10984_v62 }
 0x4c6   : > { %v13438_v3 = vpop.f32.mrb[116].mxu0 }
 0x4c7   : > { %v13439_v4 = vpop.f32.mrb[117].mxu0 }
 0x4c8   : > { %v13440_v34 = vadd.f32 %v13439_v4, %v13438_v3  ;;  %v13441_v5 = vpop.f32.mrb[118].mxu0  ;;  %v11103_v6 = vpop.f32.mrb[116].mxu1 }
 0x4c9   : > { %v13442_v7 = vpop.f32.mrb[119].mxu0  ;;  %v13471_v8 = vpop.f32.mrb[117].mxu1 }
 0x4ca   : > { %v11064_v9 = vadd.f32 %v13440_v34, %v11024_v2  ;;  %v11106_v10 = vpop.f32.mrb[118].mxu1 }
 0x4cb   : > { %v13472_v11 = vpop.f32.mrb[119].mxu1 }
 0x4cc   : > { %v11104_v12 = vadd.f32 %v11103_v6, %v11064_v9 }
 0x4ce   : > { %v11109_v13 = vmax.f32 %v11104_v12, 0.0 }
 0x4d0   : > { %11110 = vst [vmem:[%s201_s19] sm:$0x3] %v11109_v13 }
 0x4d1 PF: > { %p13_p8 = scmp.ge.s32.totalorder %s14602_s17, 4   ;;  %s15940_s12 = smov %s14543_s13 }
 0x4d2   : > { %s15941_s13 = smov %s14547_s14  ;;  %s15942_s14 = smov %s14612_s20 }
 0x4d3   : > { %s15943_s15 = smov %s14602_s17  ;;  %15 = sbr.rel (!%p13_p8) target bundleno = 3 (0x3), region = 75 }
 0x4da   :  { %11130 = vsyncpa [#allocation3], 1 }
 0x4db   :  { %11132 = vsyncpa [#allocation3 + $0x1], 1 }

</bundles_post_ra>
